<compile_context>
chip_gen: v6e
topology: v6e:2x2x1
jax: 0.10.0
libtpu: 0.0.40
codegen_flags: <defaults>
</compile_context>

<pallas_src>
import jax
import jax.numpy as jnp
from jax import lax
from jax.experimental import pallas as pl
from jax.experimental.pallas import tpu as pltpu

EVAL_STEPS = 7     # NMF2D eval_steps (inference path; module is not .training)
EPS = 1e-6

# dot_general dimension numbers used in the kernel (2-D operands, no batch).
_TT = (((1,), (1,)), ((), ()))   # A @ B^T : contract last dims of both
_CT = (((0,), (0,)), ((), ()))   # A^T @ B : contract first dims (one-time use)


def _make_kernel(bb, n_valid):
    """Build the fused kernel for a static batch-block size and valid-N."""

    def kernel(x_ref, w_in_ref, b_in_ref, basesT_ref, w_out_ref, b_out_ref,
               o_ref):
        w_in = w_in_ref[...]                    # (C, C)  bf16
        w_out = w_out_ref[...]                  # (C, C)  bf16
        b_in = b_in_ref[...]                    # (C, 1)  f32
        b_out = b_out_ref[...]                  # (C, 1)  f32
        basesT0 = basesT_ref[...]               # (R, C)  f32
        basesT0_bf = basesT0.astype(jnp.bfloat16)

        np_ = x_ref.shape[-1]                   # padded pixel count (static)
        mask = (lax.broadcasted_iota(jnp.int32, (1, np_), 1)
                < n_valid).astype(jnp.float32)  # (1, Np) validity mask

        # --- ham_in: 1x1 conv + ReLU, mask folded into the bf16 cast --------
        enjoys = []
        for i in range(bb):
            e = jnp.dot(w_in, x_ref[i].astype(jnp.bfloat16),
                        preferred_element_type=jnp.float32) + b_in   # (C, Np)
            enjoys.append((jnp.maximum(e, 0.0) * mask).astype(jnp.bfloat16))
        enjoys = tuple(enjoys)

        # --- NMF2D init: coef = softmax(x^T @ bases) over R ------------------
        # In (R, N) layout the softmax is a sublane reduction (inv_t == 1).
        def softmax_r(logits):
            m = jnp.max(logits, axis=0, keepdims=True)
            e = jnp.exp(logits - m)
            return e * pl.reciprocal(jnp.sum(e, axis=0, keepdims=True),
                                     approx=True)

        logits = tuple(jnp.dot(basesT0_bf, e, preferred_element_type=jnp.float32)
                       for e in enjoys)                              # (R, Np)
        coefT = [softmax_r(l) for l in logits]
        coefT_bf = [c.astype(jnp.bfloat16) for c in coefT]

        # --- multiplicative-update helpers (all matmuls bf16, f32 accum) ----
        def coef_update(basesT_bf_b, coefT_b, coefT_bf_b, enjoy_b,
                        numT=None, gram=None):
            if numT is None:
                numT = jnp.dot(basesT_bf_b, enjoy_b,
                               preferred_element_type=jnp.float32)   # (R, Np)
            if gram is None:
                gram = lax.dot_general(basesT_bf_b, basesT_bf_b, _TT,
                                       preferred_element_type=jnp.float32)
            denT = jnp.dot(gram.astype(jnp.bfloat16), coefT_bf_b,
                           preferred_element_type=jnp.float32)       # (R, Np)
            c = coefT_b * numT * pl.reciprocal(denT + EPS, approx=True)
            return c, c.astype(jnp.bfloat16)

        def bases_update(basesT_b, basesT_bf_b, coefT_bf_b, enjoy_b):
            num_bT = lax.dot_general(coefT_bf_b, enjoy_b, _TT,
                                     preferred_element_type=jnp.float32)  # (R, C)
            gram_c = lax.dot_general(coefT_bf_b, coefT_bf_b, _TT,
                                     preferred_element_type=jnp.float32)  # (R, R)
            den_bT = jnp.dot(gram_c.astype(jnp.bfloat16), basesT_bf_b,
                             preferred_element_type=jnp.float32)          # (R, C)
            b = basesT_b * num_bT * pl.reciprocal(den_bT + EPS, approx=True)
            return b, b.astype(jnp.bfloat16)

        # --- peeled first MU step: reuse logits as the numerator and a single
        #     shared gram0 (bases are still the shared initial bases).
        gram0 = lax.dot_general(basesT0_bf, basesT0_bf, _TT,
                                preferred_element_type=jnp.float32)

        basesT = [basesT0] * bb
        basesT_bf = [basesT0_bf] * bb
        for i in range(bb):
            coefT[i], coefT_bf[i] = coef_update(basesT_bf[i], coefT[i],
                                                coefT_bf[i], enjoys[i],
                                                numT=logits[i], gram=gram0)
            basesT[i], basesT_bf[i] = bases_update(basesT[i], basesT_bf[i],
                                                   coefT[i], enjoys[i])

        # --- remaining MU steps (fully unrolled); bb independent chains -----
        def mu_step(_, carry):
            basesT, basesT_bf, coefT, coefT_bf = [list(t) for t in carry]
            for i in range(bb):
                coefT[i], coefT_bf[i] = coef_update(basesT_bf[i], coefT[i],
                                                    coefT_bf[i], enjoys[i])
            for i in range(bb):
                basesT[i], basesT_bf[i] = bases_update(basesT[i], basesT_bf[i],
                                                       coefT[i], enjoys[i])
            return (tuple(basesT), tuple(basesT_bf),
                    tuple(coefT), tuple(coefT_bf))

        carry = (tuple(basesT), tuple(basesT_bf), tuple(coefT), tuple(coefT_bf))
        carry = lax.fori_loop(0, EVAL_STEPS - 1, mu_step, carry, unroll=True)
        basesT, basesT_bf, coefT, coefT_bf = [list(t) for t in carry]

        # --- compute_coef: one final coef-only update with the final bases --
        for i in range(bb):
            coefT[i], coefT_bf[i] = coef_update(basesT_bf[i], coefT[i],
                                                coefT_bf[i], enjoys[i])

        # --- reconstruction + ham_out conv + residual ReLU -------------------
        for i in range(bb):
            # ham = bases @ coef^T -> (C, Np); one-time A^T@B off the MU chain.
            ham = lax.dot_general(basesT_bf[i], coefT_bf[i], _CT,
                                  preferred_element_type=jnp.float32)
            out = jnp.dot(w_out, ham.astype(jnp.bfloat16),
                          preferred_element_type=jnp.float32) + b_out
            o_ref[i] = jnp.maximum(x_ref[i] + out, 0.0)

    return kernel


def hamburger(x_nchw, w_in, b_in, bases, w_out, b_out):
    """Run the fused Hamburger kernel.  x_nchw: (B, C, H, W) float32."""
    B, C, H, W = x_nchw.shape
    N = H * W
    R = bases.shape[-1]
    Np = ((N + 127) // 128) * 128        # lane-dense padding of the pixel axis

    # Batch-block size: 2 independent MU chains per grid step hides MXU
    # latency on all generations (4 risks vreg spills at larger R).
    # Note: with B == 2 this leaves grid length 1 (one idle TC on v7x); the
    # interleaving win applies to all generations, megacore only to v7x.
    BB = 2 if (B % 2 == 0) else 1

    x = x_nchw.reshape(B, C, N).astype(jnp.float32)
    if Np != N:
        x = jnp.pad(x, ((0, 0), (0, 0), (0, Np - N)))

    w_in_bf = w_in.astype(jnp.bfloat16)
    w_out_bf = w_out.astype(jnp.bfloat16)
    b_in2 = b_in.reshape(C, 1).astype(jnp.float32)
    b_out2 = b_out.reshape(C, 1).astype(jnp.float32)
    basesT = jnp.transpose(bases).astype(jnp.float32)      # (R, C), S=1

    # Per-grid-step VMEM estimate (double-buffered blocks + live values).
    est = (BB * (2 * 2 * C * Np * 4              # x & out blocks (f32, 2-buf)
                 + C * Np * 2                    # enjoy (bf16, MU-loop resident)
                 + C * Np * 4                    # ham / conv temporaries (f32)
                 + R * Np * (4 + 2 + 4 + 4))     # coefT f32+bf16, numT, denT
           + 2 * 2 * C * C * 2                   # w_in / w_out blocks (bf16)
           + 8 * R * C * 4)                      # basesT, num_bT, den_bT, grams
    phys_vmem = 64 * 1024 * 1024                 # conservative fallback (v7x)
    try:
        info = pltpu.get_tpu_info()
        phys_vmem = int(getattr(info, "vmem_capacity_bytes", phys_vmem))
    except Exception:
        pass
    cap = int(phys_vmem * 0.8)                   # headroom for Mosaic scratch
    vmem_limit = int(min(max(2 * est, 32 * 1024 * 1024), cap))

    out = pl.pallas_call(
        _make_kernel(BB, N),
        out_shape=jax.ShapeDtypeStruct((B, C, Np), jnp.float32),
        grid_spec=pltpu.PrefetchScalarGridSpec(
            num_scalar_prefetch=0,
            grid=(B // BB,),
            in_specs=[
                pl.BlockSpec((BB, C, Np), lambda g: (g, 0, 0)),   # x
                pl.BlockSpec((C, C), lambda g: (0, 0)),           # w_in (bf16)
                pl.BlockSpec((C, 1), lambda g: (0, 0)),           # b_in
                pl.BlockSpec((R, C), lambda g: (0, 0)),           # bases^T
                pl.BlockSpec((C, C), lambda g: (0, 0)),           # w_out (bf16)
                pl.BlockSpec((C, 1), lambda g: (0, 0)),           # b_out
            ],
            out_specs=pl.BlockSpec((BB, C, Np), lambda g: (g, 0, 0)),
        ),
        compiler_params=pltpu.CompilerParams(
            dimension_semantics=("parallel",),   # megacore-shards batch blocks
            vmem_limit_bytes=vmem_limit),
    )(x, w_in_bf, b_in2, basesT, w_out_bf, b_out2)

    if Np != N:
        # TODO(synk): this unpad re-copies the output in HBM; fuse it into the
        # consumer (or keep the padded layout downstream) in production.
        out = out[:, :, :N]
    return out.reshape(B, C, H, W)


def hamburger_ref(x_nchw, w_in, b_in, bases, w_out, b_out):
    """Pure-JAX f32 reference mirroring the PyTorch forward (eval mode)."""
    B, C, H, W = x_nchw.shape
    N = H * W
    x = x_nchw.reshape(B, C, N)
    enjoy = jnp.maximum(jnp.einsum('oc,bcn->bon', w_in, x) + b_in[None, :, None], 0.0)
    xT = jnp.swapaxes(enjoy, 1, 2)                         # (B, N, C)
    bs = jnp.broadcast_to(bases, (B,) + bases.shape)       # repeat over batch
    coef = jax.nn.softmax(jnp.einsum('bnc,bcr->bnr', xT, bs), axis=-1)

    def step(carry, _):
        bs, coef = carry
        num = jnp.einsum('bnc,bcr->bnr', xT, bs)
        den = jnp.einsum('bnr,brq->bnq', coef, jnp.einsum('bcr,bcq->brq', bs, bs))
        coef = coef * num / (den + EPS)
        num_b = jnp.einsum('bcn,bnr->bcr', enjoy, coef)
        den_b = jnp.einsum('bcr,brq->bcq', bs, jnp.einsum('bnr,bnq->brq', coef, coef))
        bs = bs * num_b / (den_b + EPS)
        return (bs, coef), None

    (bs, coef), _ = lax.scan(step, (bs, coef), None, length=EVAL_STEPS)
    num = jnp.einsum('bnc,bcr->bnr', xT, bs)
    den = jnp.einsum('bnr,brq->bnq', coef, jnp.einsum('bcr,bcq->brq', bs, bs))
    coef = coef * num / (den + EPS)
    ham = jnp.einsum('bcr,bnr->bcn', bs, coef)
    out = jnp.einsum('oc,bcn->bon', w_out, ham) + b_out[None, :, None]
    return jnp.maximum(x + out, 0.0).reshape(B, C, H, W)


def _run_case(key, B, C, H, W, R):
    k_x, k_wi, k_bi, k_b, k_wo, k_bo = jax.random.split(key, 6)
    x = jax.random.normal(k_x, (B, C, H, W), jnp.float32)
    w_in = jax.random.normal(k_wi, (C, C), jnp.float32) * 0.1
    b_in = jax.random.normal(k_bi, (C,), jnp.float32) * 0.1
    w_out = jax.random.normal(k_wo, (C, C), jnp.float32) * 0.1
    b_out = jax.random.normal(k_bo, (C,), jnp.float32) * 0.1
    # NMF2D bases: rand (S=1, C, R), L2-normalized over the channel dim.
    bases = jax.random.uniform(k_b, (1, C, R), jnp.float32)
    bases = bases / (jnp.linalg.norm(bases, axis=1, keepdims=True) + 1e-12)
    bases = bases[0]                                        # (C, R), S=1

    out = jax.block_until_ready(hamburger(x, w_in, b_in, bases, w_out, b_out))
    ref = jax.block_until_ready(hamburger_ref(x, w_in, b_in, bases, w_out, b_out))

    assert out.shape == (B, C, H, W)
    # The kernel runs all matmuls (including the MU denominators) with bf16
    # operands + f32 accumulation and uses EUP approximate reciprocals, so
    # compare with a mixed abs/rel tolerance against the pure-f32 reference.
    err = jnp.max(jnp.abs(out - ref) / (1.0 + jnp.abs(ref)))
    assert err < 4e-2, float(err)


if __name__ == "__main__":
    key = jax.random.PRNGKey(0)
    k1, k2 = jax.random.split(key)
    # Lane-aligned, batch-blocked case: N = 16*16 = 256, BB = 2 interleaved chains.
    _run_case(k1, B=2, C=64, H=16, W=16, R=32)
    # Padded case: N = 7*7 = 49 -> padded to 128, exercises the in-kernel mask.
    _run_case(k2, B=1, C=32, H=7, W=7, R=16)
    print("KERNEL_OK")
</pallas_src>

<mosaic_0001>
module attributes {stable_mosaic.version = 11 : i64} {
  func.func @kernel(%arg0: i32, %arg1: memref<2x64x256xf32, #tpu.memory_space<vmem>>, %arg2: memref<64x64xbf16, #tpu.memory_space<vmem>>, %arg3: memref<64x1xf32, #tpu.memory_space<vmem>>, %arg4: memref<32x64xf32, #tpu.memory_space<vmem>>, %arg5: memref<64x64xbf16, #tpu.memory_space<vmem>>, %arg6: memref<64x1xf32, #tpu.memory_space<vmem>>, %arg7: memref<2x64x256xf32, #tpu.memory_space<vmem>>) attributes {dimension_semantics = [#tpu.dimension_semantics<parallel>], iteration_bounds = array<i64: 1>, scalar_prefetch = 0 : i64, scratch_operands = 0 : i64, tpu.core_type = #tpu.core_type<tc>, window_params = [{transform_indices = @transform_0, window_bounds = array<i64: 2, 64, 256>}, {pipeline_mode = #tpu.pipeline_mode<synchronous>, transform_indices = @transform_1, window_bounds = array<i64: 64, 64>}, {pipeline_mode = #tpu.pipeline_mode<synchronous>, transform_indices = @transform_2, window_bounds = array<i64: 64, 1>}, {pipeline_mode = #tpu.pipeline_mode<synchronous>, transform_indices = @transform_3, window_bounds = array<i64: 32, 64>}, {pipeline_mode = #tpu.pipeline_mode<synchronous>, transform_indices = @transform_4, window_bounds = array<i64: 64, 64>}, {pipeline_mode = #tpu.pipeline_mode<synchronous>, transform_indices = @transform_5, window_bounds = array<i64: 64, 1>}, {transform_indices = @transform_6, window_bounds = array<i64: 2, 64, 256>}]} {
    %c0 = arith.constant 0 : index
    %c0_0 = arith.constant 0 : index
    %0 = vector.load %arg2[%c0, %c0_0] : memref<64x64xbf16, #tpu.memory_space<vmem>>, vector<64x64xbf16>
    %c0_1 = arith.constant 0 : index
    %c0_2 = arith.constant 0 : index
    %1 = vector.load %arg5[%c0_1, %c0_2] : memref<64x64xbf16, #tpu.memory_space<vmem>>, vector<64x64xbf16>
    %c0_3 = arith.constant 0 : index
    %c0_4 = arith.constant 0 : index
    %2 = vector.load %arg3[%c0_3, %c0_4] : memref<64x1xf32, #tpu.memory_space<vmem>>, vector<64x1xf32>
    %c0_5 = arith.constant 0 : index
    %c0_6 = arith.constant 0 : index
    %3 = vector.load %arg6[%c0_5, %c0_6] : memref<64x1xf32, #tpu.memory_space<vmem>>, vector<64x1xf32>
    %c0_7 = arith.constant 0 : index
    %c0_8 = arith.constant 0 : index
    %4 = vector.load %arg4[%c0_7, %c0_8] : memref<32x64xf32, #tpu.memory_space<vmem>>, vector<32x64xf32>
    %5 = arith.truncf %4 : vector<32x64xf32> to vector<32x64xbf16>
    %6 = tpu.iota {dimensions = array<i32: 1>} : vector<1x256xi32>
    %c256_i32 = arith.constant 256 : i32
    %7 = vector.broadcast %c256_i32 : i32 to vector<1x256xi32>
    %8 = arith.cmpi slt, %6, %7 : vector<1x256xi32>
    %9 = arith.extui %8 : vector<1x256xi1> to vector<1x256xi32>
    %10 = arith.sitofp %9 : vector<1x256xi32> to vector<1x256xf32>
    %c0_9 = arith.constant 0 : index
    %c0_10 = arith.constant 0 : index
    %c0_11 = arith.constant 0 : index
    %11 = vector.load %arg1[%c0_9, %c0_10, %c0_11] : memref<2x64x256xf32, #tpu.memory_space<vmem>>, vector<1x64x256xf32>
    %12 = vector.shape_cast %11 : vector<1x64x256xf32> to vector<64x256xf32>
    %13 = arith.truncf %12 : vector<64x256xf32> to vector<64x256xbf16>
    %cst = arith.constant dense<0.000000e+00> : vector<64x256xf32>
    %14 = tpu.matmul %0, %13, %cst {dimension_numbers = #tpu.dot_dimension_numbers<[1], [0], [0], [1], [0, 0, 1, 1], [], []>} : vector<64x64xbf16>, vector<64x256xbf16>, vector<64x256xf32> -> vector<64x256xf32>
    %15 = vector.broadcast %2 : vector<64x1xf32> to vector<64x256xf32>
    %16 = arith.addf %14, %15 : vector<64x256xf32>
    %cst_12 = arith.constant 0.000000e+00 : f32
    %17 = vector.broadcast %cst_12 : f32 to vector<64x256xf32>
    %18 = arith.maximumf %16, %17 : vector<64x256xf32>
    %19 = vector.broadcast %10 : vector<1x256xf32> to vector<64x256xf32>
    %20 = arith.mulf %18, %19 : vector<64x256xf32>
    %21 = arith.truncf %20 : vector<64x256xf32> to vector<64x256xbf16>
    %c1 = arith.constant 1 : index
    %c0_13 = arith.constant 0 : index
    %c0_14 = arith.constant 0 : index
    %22 = vector.load %arg1[%c1, %c0_13, %c0_14] : memref<2x64x256xf32, #tpu.memory_space<vmem>>, vector<1x64x256xf32>
    %23 = vector.shape_cast %22 : vector<1x64x256xf32> to vector<64x256xf32>
    %24 = arith.truncf %23 : vector<64x256xf32> to vector<64x256xbf16>
    %cst_15 = arith.constant dense<0.000000e+00> : vector<64x256xf32>
    %25 = tpu.matmul %0, %24, %cst_15 {dimension_numbers = #tpu.dot_dimension_numbers<[1], [0], [0], [1], [0, 0, 1, 1], [], []>} : vector<64x64xbf16>, vector<64x256xbf16>, vector<64x256xf32> -> vector<64x256xf32>
    %26 = vector.broadcast %2 : vector<64x1xf32> to vector<64x256xf32>
    %27 = arith.addf %25, %26 : vector<64x256xf32>
    %cst_16 = arith.constant 0.000000e+00 : f32
    %28 = vector.broadcast %cst_16 : f32 to vector<64x256xf32>
    %29 = arith.maximumf %27, %28 : vector<64x256xf32>
    %30 = vector.broadcast %10 : vector<1x256xf32> to vector<64x256xf32>
    %31 = arith.mulf %29, %30 : vector<64x256xf32>
    %32 = arith.truncf %31 : vector<64x256xf32> to vector<64x256xbf16>
    %cst_17 = arith.constant dense<0.000000e+00> : vector<32x256xf32>
    %33 = tpu.matmul %5, %21, %cst_17 {dimension_numbers = #tpu.dot_dimension_numbers<[1], [0], [0], [1], [0, 0, 1, 1], [], []>} : vector<32x64xbf16>, vector<64x256xbf16>, vector<32x256xf32> -> vector<32x256xf32>
    %cst_18 = arith.constant dense<0.000000e+00> : vector<32x256xf32>
    %34 = tpu.matmul %5, %32, %cst_18 {dimension_numbers = #tpu.dot_dimension_numbers<[1], [0], [0], [1], [0, 0, 1, 1], [], []>} : vector<32x64xbf16>, vector<64x256xbf16>, vector<32x256xf32> -> vector<32x256xf32>
    %cst_19 = arith.constant dense<0xFF800000> : vector<256xf32>
    %35 = vector.multi_reduction <maximumf>, %33, %cst_19 [0] : vector<32x256xf32> to vector<256xf32>
    %36 = vector.shape_cast %35 : vector<256xf32> to vector<1x256xf32>
    %37 = vector.broadcast %36 : vector<1x256xf32> to vector<32x256xf32>
    %38 = arith.subf %33, %37 : vector<32x256xf32>
    %39 = math.exp %38 : vector<32x256xf32>
    %cst_20 = arith.constant dense<0.000000e+00> : vector<256xf32>
    %40 = vector.multi_reduction <add>, %39, %cst_20 [0] : vector<32x256xf32> to vector<256xf32>
    %41 = vector.shape_cast %40 : vector<256xf32> to vector<1x256xf32>
    %42 = tpu.reciprocal %41 {approx = true} : vector<1x256xf32> -> vector<1x256xf32>
    %43 = vector.broadcast %42 : vector<1x256xf32> to vector<32x256xf32>
    %44 = arith.mulf %39, %43 : vector<32x256xf32>
    %cst_21 = arith.constant dense<0xFF800000> : vector<256xf32>
    %45 = vector.multi_reduction <maximumf>, %34, %cst_21 [0] : vector<32x256xf32> to vector<256xf32>
    %46 = vector.shape_cast %45 : vector<256xf32> to vector<1x256xf32>
    %47 = vector.broadcast %46 : vector<1x256xf32> to vector<32x256xf32>
    %48 = arith.subf %34, %47 : vector<32x256xf32>
    %49 = math.exp %48 : vector<32x256xf32>
    %cst_22 = arith.constant dense<0.000000e+00> : vector<256xf32>
    %50 = vector.multi_reduction <add>, %49, %cst_22 [0] : vector<32x256xf32> to vector<256xf32>
    %51 = vector.shape_cast %50 : vector<256xf32> to vector<1x256xf32>
    %52 = tpu.reciprocal %51 {approx = true} : vector<1x256xf32> -> vector<1x256xf32>
    %53 = vector.broadcast %52 : vector<1x256xf32> to vector<32x256xf32>
    %54 = arith.mulf %49, %53 : vector<32x256xf32>
    %55 = arith.truncf %44 : vector<32x256xf32> to vector<32x256xbf16>
    %56 = arith.truncf %54 : vector<32x256xf32> to vector<32x256xbf16>
    %cst_23 = arith.constant dense<0.000000e+00> : vector<32x32xf32>
    %57 = tpu.matmul %5, %5, %cst_23 {dimension_numbers = #tpu.dot_dimension_numbers<[1], [1], [0], [0], [0, 0, 1, 0], [], []>} : vector<32x64xbf16>, vector<32x64xbf16>, vector<32x32xf32> -> vector<32x32xf32>
    %58 = arith.truncf %57 : vector<32x32xf32> to vector<32x32xbf16>
    %cst_24 = arith.constant dense<0.000000e+00> : vector<32x256xf32>
    %59 = tpu.matmul %58, %55, %cst_24 {dimension_numbers = #tpu.dot_dimension_numbers<[1], [0], [0], [1], [0, 0, 1, 1], [], []>} : vector<32x32xbf16>, vector<32x256xbf16>, vector<32x256xf32> -> vector<32x256xf32>
    %60 = arith.mulf %44, %33 : vector<32x256xf32>
    %cst_25 = arith.constant 9.99999997E-7 : f32
    %61 = vector.broadcast %cst_25 : f32 to vector<32x256xf32>
    %62 = arith.addf %59, %61 : vector<32x256xf32>
    %63 = tpu.reciprocal %62 {approx = true} : vector<32x256xf32> -> vector<32x256xf32>
    %64 = arith.mulf %60, %63 : vector<32x256xf32>
    %65 = arith.truncf %64 : vector<32x256xf32> to vector<32x256xbf16>
    %cst_26 = arith.constant dense<0.000000e+00> : vector<32x64xf32>
    %66 = tpu.matmul %64, %21, %cst_26 {dimension_numbers = #tpu.dot_dimension_numbers<[1], [1], [0], [0], [0, 0, 1, 0], [], []>} : vector<32x256xf32>, vector<64x256xbf16>, vector<32x64xf32> -> vector<32x64xf32>
    %cst_27 = arith.constant dense<0.000000e+00> : vector<32x32xf32>
    %67 = tpu.matmul %64, %64, %cst_27 {dimension_numbers = #tpu.dot_dimension_numbers<[1], [1], [0], [0], [0, 0, 1, 0], [], []>} : vector<32x256xf32>, vector<32x256xf32>, vector<32x32xf32> -> vector<32x32xf32>
    %68 = arith.truncf %67 : vector<32x32xf32> to vector<32x32xbf16>
    %cst_28 = arith.constant dense<0.000000e+00> : vector<32x64xf32>
    %69 = tpu.matmul %68, %5, %cst_28 {dimension_numbers = #tpu.dot_dimension_numbers<[1], [0], [0], [1], [0, 0, 1, 1], [], []>} : vector<32x32xbf16>, vector<32x64xbf16>, vector<32x64xf32> -> vector<32x64xf32>
    %70 = arith.mulf %4, %66 : vector<32x64xf32>
    %cst_29 = arith.constant 9.99999997E-7 : f32
    %71 = vector.broadcast %cst_29 : f32 to vector<32x64xf32>
    %72 = arith.addf %69, %71 : vector<32x64xf32>
    %73 = tpu.reciprocal %72 {approx = true} : vector<32x64xf32> -> vector<32x64xf32>
    %74 = arith.mulf %70, %73 : vector<32x64xf32>
    %75 = arith.truncf %74 : vector<32x64xf32> to vector<32x64xbf16>
    %76 = arith.truncf %57 : vector<32x32xf32> to vector<32x32xbf16>
    %cst_30 = arith.constant dense<0.000000e+00> : vector<32x256xf32>
    %77 = tpu.matmul %76, %56, %cst_30 {dimension_numbers = #tpu.dot_dimension_numbers<[1], [0], [0], [1], [0, 0, 1, 1], [], []>} : vector<32x32xbf16>, vector<32x256xbf16>, vector<32x256xf32> -> vector<32x256xf32>
    %78 = arith.mulf %54, %34 : vector<32x256xf32>
    %cst_31 = arith.constant 9.99999997E-7 : f32
    %79 = vector.broadcast %cst_31 : f32 to vector<32x256xf32>
    %80 = arith.addf %77, %79 : vector<32x256xf32>
    %81 = tpu.reciprocal %80 {approx = true} : vector<32x256xf32> -> vector<32x256xf32>
    %82 = arith.mulf %78, %81 : vector<32x256xf32>
    %83 = arith.truncf %82 : vector<32x256xf32> to vector<32x256xbf16>
    %cst_32 = arith.constant dense<0.000000e+00> : vector<32x64xf32>
    %84 = tpu.matmul %82, %32, %cst_32 {dimension_numbers = #tpu.dot_dimension_numbers<[1], [1], [0], [0], [0, 0, 1, 0], [], []>} : vector<32x256xf32>, vector<64x256xbf16>, vector<32x64xf32> -> vector<32x64xf32>
    %cst_33 = arith.constant dense<0.000000e+00> : vector<32x32xf32>
    %85 = tpu.matmul %82, %82, %cst_33 {dimension_numbers = #tpu.dot_dimension_numbers<[1], [1], [0], [0], [0, 0, 1, 0], [], []>} : vector<32x256xf32>, vector<32x256xf32>, vector<32x32xf32> -> vector<32x32xf32>
    %86 = arith.truncf %85 : vector<32x32xf32> to vector<32x32xbf16>
    %cst_34 = arith.constant dense<0.000000e+00> : vector<32x64xf32>
    %87 = tpu.matmul %86, %5, %cst_34 {dimension_numbers = #tpu.dot_dimension_numbers<[1], [0], [0], [1], [0, 0, 1, 1], [], []>} : vector<32x32xbf16>, vector<32x64xbf16>, vector<32x64xf32> -> vector<32x64xf32>
    %88 = arith.mulf %4, %84 : vector<32x64xf32>
    %cst_35 = arith.constant 9.99999997E-7 : f32
    %89 = vector.broadcast %cst_35 : f32 to vector<32x64xf32>
    %90 = arith.addf %87, %89 : vector<32x64xf32>
    %91 = tpu.reciprocal %90 {approx = true} : vector<32x64xf32> -> vector<32x64xf32>
    %92 = arith.mulf %88, %91 : vector<32x64xf32>
    %93 = arith.truncf %92 : vector<32x64xf32> to vector<32x64xbf16>
    %c0_i32 = arith.constant 0 : i32
    %cst_36 = arith.constant dense<0.000000e+00> : vector<32x256xf32>
    %94 = tpu.matmul %75, %21, %cst_36 {dimension_numbers = #tpu.dot_dimension_numbers<[1], [0], [0], [1], [0, 0, 1, 1], [], []>} : vector<32x64xbf16>, vector<64x256xbf16>, vector<32x256xf32> -> vector<32x256xf32>
    %cst_37 = arith.constant dense<0.000000e+00> : vector<32x32xf32>
    %95 = tpu.matmul %75, %75, %cst_37 {dimension_numbers = #tpu.dot_dimension_numbers<[1], [1], [0], [0], [0, 0, 1, 0], [], []>} : vector<32x64xbf16>, vector<32x64xbf16>, vector<32x32xf32> -> vector<32x32xf32>
    %96 = arith.truncf %95 : vector<32x32xf32> to vector<32x32xbf16>
    %cst_38 = arith.constant dense<0.000000e+00> : vector<32x256xf32>
    %97 = tpu.matmul %96, %65, %cst_38 {dimension_numbers = #tpu.dot_dimension_numbers<[1], [0], [0], [1], [0, 0, 1, 1], [], []>} : vector<32x32xbf16>, vector<32x256xbf16>, vector<32x256xf32> -> vector<32x256xf32>
    %98 = arith.mulf %64, %94 : vector<32x256xf32>
    %cst_39 = arith.constant 9.99999997E-7 : f32
    %99 = vector.broadcast %cst_39 : f32 to vector<32x256xf32>
    %100 = arith.addf %97, %99 : vector<32x256xf32>
    %101 = tpu.reciprocal %100 {approx = true} : vector<32x256xf32> -> vector<32x256xf32>
    %102 = arith.mulf %98, %101 : vector<32x256xf32>
    %103 = arith.truncf %102 : vector<32x256xf32> to vector<32x256xbf16>
    %cst_40 = arith.constant dense<0.000000e+00> : vector<32x256xf32>
    %104 = tpu.matmul %93, %32, %cst_40 {dimension_numbers = #tpu.dot_dimension_numbers<[1], [0], [0], [1], [0, 0, 1, 1], [], []>} : vector<32x64xbf16>, vector<64x256xbf16>, vector<32x256xf32> -> vector<32x256xf32>
    %cst_41 = arith.constant dense<0.000000e+00> : vector<32x32xf32>
    %105 = tpu.matmul %93, %93, %cst_41 {dimension_numbers = #tpu.dot_dimension_numbers<[1], [1], [0], [0], [0, 0, 1, 0], [], []>} : vector<32x64xbf16>, vector<32x64xbf16>, vector<32x32xf32> -> vector<32x32xf32>
    %106 = arith.truncf %105 : vector<32x32xf32> to vector<32x32xbf16>
    %cst_42 = arith.constant dense<0.000000e+00> : vector<32x256xf32>
    %107 = tpu.matmul %106, %83, %cst_42 {dimension_numbers = #tpu.dot_dimension_numbers<[1], [0], [0], [1], [0, 0, 1, 1], [], []>} : vector<32x32xbf16>, vector<32x256xbf16>, vector<32x256xf32> -> vector<32x256xf32>
    %108 = arith.mulf %82, %104 : vector<32x256xf32>
    %cst_43 = arith.constant 9.99999997E-7 : f32
    %109 = vector.broadcast %cst_43 : f32 to vector<32x256xf32>
    %110 = arith.addf %107, %109 : vector<32x256xf32>
    %111 = tpu.reciprocal %110 {approx = true} : vector<32x256xf32> -> vector<32x256xf32>
    %112 = arith.mulf %108, %111 : vector<32x256xf32>
    %113 = arith.truncf %112 : vector<32x256xf32> to vector<32x256xbf16>
    %cst_44 = arith.constant dense<0.000000e+00> : vector<32x64xf32>
    %114 = tpu.matmul %102, %21, %cst_44 {dimension_numbers = #tpu.dot_dimension_numbers<[1], [1], [0], [0], [0, 0, 1, 0], [], []>} : vector<32x256xf32>, vector<64x256xbf16>, vector<32x64xf32> -> vector<32x64xf32>
    %cst_45 = arith.constant dense<0.000000e+00> : vector<32x32xf32>
    %115 = tpu.matmul %102, %102, %cst_45 {dimension_numbers = #tpu.dot_dimension_numbers<[1], [1], [0], [0], [0, 0, 1, 0], [], []>} : vector<32x256xf32>, vector<32x256xf32>, vector<32x32xf32> -> vector<32x32xf32>
    %116 = arith.truncf %115 : vector<32x32xf32> to vector<32x32xbf16>
    %cst_46 = arith.constant dense<0.000000e+00> : vector<32x64xf32>
    %117 = tpu.matmul %116, %75, %cst_46 {dimension_numbers = #tpu.dot_dimension_numbers<[1], [0], [0], [1], [0, 0, 1, 1], [], []>} : vector<32x32xbf16>, vector<32x64xbf16>, vector<32x64xf32> -> vector<32x64xf32>
    %118 = arith.mulf %74, %114 : vector<32x64xf32>
    %cst_47 = arith.constant 9.99999997E-7 : f32
    %119 = vector.broadcast %cst_47 : f32 to vector<32x64xf32>
    %120 = arith.addf %117, %119 : vector<32x64xf32>
    %121 = tpu.reciprocal %120 {approx = true} : vector<32x64xf32> -> vector<32x64xf32>
    %122 = arith.mulf %118, %121 : vector<32x64xf32>
    %123 = arith.truncf %122 : vector<32x64xf32> to vector<32x64xbf16>
    %cst_48 = arith.constant dense<0.000000e+00> : vector<32x64xf32>
    %124 = tpu.matmul %112, %32, %cst_48 {dimension_numbers = #tpu.dot_dimension_numbers<[1], [1], [0], [0], [0, 0, 1, 0], [], []>} : vector<32x256xf32>, vector<64x256xbf16>, vector<32x64xf32> -> vector<32x64xf32>
    %cst_49 = arith.constant dense<0.000000e+00> : vector<32x32xf32>
    %125 = tpu.matmul %112, %112, %cst_49 {dimension_numbers = #tpu.dot_dimension_numbers<[1], [1], [0], [0], [0, 0, 1, 0], [], []>} : vector<32x256xf32>, vector<32x256xf32>, vector<32x32xf32> -> vector<32x32xf32>
    %126 = arith.truncf %125 : vector<32x32xf32> to vector<32x32xbf16>
    %cst_50 = arith.constant dense<0.000000e+00> : vector<32x64xf32>
    %127 = tpu.matmul %126, %93, %cst_50 {dimension_numbers = #tpu.dot_dimension_numbers<[1], [0], [0], [1], [0, 0, 1, 1], [], []>} : vector<32x32xbf16>, vector<32x64xbf16>, vector<32x64xf32> -> vector<32x64xf32>
    %128 = arith.mulf %92, %124 : vector<32x64xf32>
    %cst_51 = arith.constant 9.99999997E-7 : f32
    %129 = vector.broadcast %cst_51 : f32 to vector<32x64xf32>
    %130 = arith.addf %127, %129 : vector<32x64xf32>
    %131 = tpu.reciprocal %130 {approx = true} : vector<32x64xf32> -> vector<32x64xf32>
    %132 = arith.mulf %128, %131 : vector<32x64xf32>
    %133 = arith.truncf %132 : vector<32x64xf32> to vector<32x64xbf16>
    %c1_i32 = arith.constant 1 : i32
    %cst_52 = arith.constant dense<0.000000e+00> : vector<32x256xf32>
    %134 = tpu.matmul %123, %21, %cst_52 {dimension_numbers = #tpu.dot_dimension_numbers<[1], [0], [0], [1], [0, 0, 1, 1], [], []>} : vector<32x64xbf16>, vector<64x256xbf16>, vector<32x256xf32> -> vector<32x256xf32>
    %cst_53 = arith.constant dense<0.000000e+00> : vector<32x32xf32>
    %135 = tpu.matmul %123, %123, %cst_53 {dimension_numbers = #tpu.dot_dimension_numbers<[1], [1], [0], [0], [0, 0, 1, 0], [], []>} : vector<32x64xbf16>, vector<32x64xbf16>, vector<32x32xf32> -> vector<32x32xf32>
    %136 = arith.truncf %135 : vector<32x32xf32> to vector<32x32xbf16>
    %cst_54 = arith.constant dense<0.000000e+00> : vector<32x256xf32>
    %137 = tpu.matmul %136, %103, %cst_54 {dimension_numbers = #tpu.dot_dimension_numbers<[1], [0], [0], [1], [0, 0, 1, 1], [], []>} : vector<32x32xbf16>, vector<32x256xbf16>, vector<32x256xf32> -> vector<32x256xf32>
    %138 = arith.mulf %102, %134 : vector<32x256xf32>
    %cst_55 = arith.constant 9.99999997E-7 : f32
    %139 = vector.broadcast %cst_55 : f32 to vector<32x256xf32>
    %140 = arith.addf %137, %139 : vector<32x256xf32>
    %141 = tpu.reciprocal %140 {approx = true} : vector<32x256xf32> -> vector<32x256xf32>
    %142 = arith.mulf %138, %141 : vector<32x256xf32>
    %143 = arith.truncf %142 : vector<32x256xf32> to vector<32x256xbf16>
    %cst_56 = arith.constant dense<0.000000e+00> : vector<32x256xf32>
    %144 = tpu.matmul %133, %32, %cst_56 {dimension_numbers = #tpu.dot_dimension_numbers<[1], [0], [0], [1], [0, 0, 1, 1], [], []>} : vector<32x64xbf16>, vector<64x256xbf16>, vector<32x256xf32> -> vector<32x256xf32>
    %cst_57 = arith.constant dense<0.000000e+00> : vector<32x32xf32>
    %145 = tpu.matmul %133, %133, %cst_57 {dimension_numbers = #tpu.dot_dimension_numbers<[1], [1], [0], [0], [0, 0, 1, 0], [], []>} : vector<32x64xbf16>, vector<32x64xbf16>, vector<32x32xf32> -> vector<32x32xf32>
    %146 = arith.truncf %145 : vector<32x32xf32> to vector<32x32xbf16>
    %cst_58 = arith.constant dense<0.000000e+00> : vector<32x256xf32>
    %147 = tpu.matmul %146, %113, %cst_58 {dimension_numbers = #tpu.dot_dimension_numbers<[1], [0], [0], [1], [0, 0, 1, 1], [], []>} : vector<32x32xbf16>, vector<32x256xbf16>, vector<32x256xf32> -> vector<32x256xf32>
    %148 = arith.mulf %112, %144 : vector<32x256xf32>
    %cst_59 = arith.constant 9.99999997E-7 : f32
    %149 = vector.broadcast %cst_59 : f32 to vector<32x256xf32>
    %150 = arith.addf %147, %149 : vector<32x256xf32>
    %151 = tpu.reciprocal %150 {approx = true} : vector<32x256xf32> -> vector<32x256xf32>
    %152 = arith.mulf %148, %151 : vector<32x256xf32>
    %153 = arith.truncf %152 : vector<32x256xf32> to vector<32x256xbf16>
    %cst_60 = arith.constant dense<0.000000e+00> : vector<32x64xf32>
    %154 = tpu.matmul %142, %21, %cst_60 {dimension_numbers = #tpu.dot_dimension_numbers<[1], [1], [0], [0], [0, 0, 1, 0], [], []>} : vector<32x256xf32>, vector<64x256xbf16>, vector<32x64xf32> -> vector<32x64xf32>
    %cst_61 = arith.constant dense<0.000000e+00> : vector<32x32xf32>
    %155 = tpu.matmul %142, %142, %cst_61 {dimension_numbers = #tpu.dot_dimension_numbers<[1], [1], [0], [0], [0, 0, 1, 0], [], []>} : vector<32x256xf32>, vector<32x256xf32>, vector<32x32xf32> -> vector<32x32xf32>
    %156 = arith.truncf %155 : vector<32x32xf32> to vector<32x32xbf16>
    %cst_62 = arith.constant dense<0.000000e+00> : vector<32x64xf32>
    %157 = tpu.matmul %156, %123, %cst_62 {dimension_numbers = #tpu.dot_dimension_numbers<[1], [0], [0], [1], [0, 0, 1, 1], [], []>} : vector<32x32xbf16>, vector<32x64xbf16>, vector<32x64xf32> -> vector<32x64xf32>
    %158 = arith.mulf %122, %154 : vector<32x64xf32>
    %cst_63 = arith.constant 9.99999997E-7 : f32
    %159 = vector.broadcast %cst_63 : f32 to vector<32x64xf32>
    %160 = arith.addf %157, %159 : vector<32x64xf32>
    %161 = tpu.reciprocal %160 {approx = true} : vector<32x64xf32> -> vector<32x64xf32>
    %162 = arith.mulf %158, %161 : vector<32x64xf32>
    %163 = arith.truncf %162 : vector<32x64xf32> to vector<32x64xbf16>
    %cst_64 = arith.constant dense<0.000000e+00> : vector<32x64xf32>
    %164 = tpu.matmul %152, %32, %cst_64 {dimension_numbers = #tpu.dot_dimension_numbers<[1], [1], [0], [0], [0, 0, 1, 0], [], []>} : vector<32x256xf32>, vector<64x256xbf16>, vector<32x64xf32> -> vector<32x64xf32>
    %cst_65 = arith.constant dense<0.000000e+00> : vector<32x32xf32>
    %165 = tpu.matmul %152, %152, %cst_65 {dimension_numbers = #tpu.dot_dimension_numbers<[1], [1], [0], [0], [0, 0, 1, 0], [], []>} : vector<32x256xf32>, vector<32x256xf32>, vector<32x32xf32> -> vector<32x32xf32>
    %166 = arith.truncf %165 : vector<32x32xf32> to vector<32x32xbf16>
    %cst_66 = arith.constant dense<0.000000e+00> : vector<32x64xf32>
    %167 = tpu.matmul %166, %133, %cst_66 {dimension_numbers = #tpu.dot_dimension_numbers<[1], [0], [0], [1], [0, 0, 1, 1], [], []>} : vector<32x32xbf16>, vector<32x64xbf16>, vector<32x64xf32> -> vector<32x64xf32>
    %168 = arith.mulf %132, %164 : vector<32x64xf32>
    %cst_67 = arith.constant 9.99999997E-7 : f32
    %169 = vector.broadcast %cst_67 : f32 to vector<32x64xf32>
    %170 = arith.addf %167, %169 : vector<32x64xf32>
    %171 = tpu.reciprocal %170 {approx = true} : vector<32x64xf32> -> vector<32x64xf32>
    %172 = arith.mulf %168, %171 : vector<32x64xf32>
    %173 = arith.truncf %172 : vector<32x64xf32> to vector<32x64xbf16>
    %c2_i32 = arith.constant 2 : i32
    %cst_68 = arith.constant dense<0.000000e+00> : vector<32x256xf32>
    %174 = tpu.matmul %163, %21, %cst_68 {dimension_numbers = #tpu.dot_dimension_numbers<[1], [0], [0], [1], [0, 0, 1, 1], [], []>} : vector<32x64xbf16>, vector<64x256xbf16>, vector<32x256xf32> -> vector<32x256xf32>
    %cst_69 = arith.constant dense<0.000000e+00> : vector<32x32xf32>
    %175 = tpu.matmul %163, %163, %cst_69 {dimension_numbers = #tpu.dot_dimension_numbers<[1], [1], [0], [0], [0, 0, 1, 0], [], []>} : vector<32x64xbf16>, vector<32x64xbf16>, vector<32x32xf32> -> vector<32x32xf32>
    %176 = arith.truncf %175 : vector<32x32xf32> to vector<32x32xbf16>
    %cst_70 = arith.constant dense<0.000000e+00> : vector<32x256xf32>
    %177 = tpu.matmul %176, %143, %cst_70 {dimension_numbers = #tpu.dot_dimension_numbers<[1], [0], [0], [1], [0, 0, 1, 1], [], []>} : vector<32x32xbf16>, vector<32x256xbf16>, vector<32x256xf32> -> vector<32x256xf32>
    %178 = arith.mulf %142, %174 : vector<32x256xf32>
    %cst_71 = arith.constant 9.99999997E-7 : f32
    %179 = vector.broadcast %cst_71 : f32 to vector<32x256xf32>
    %180 = arith.addf %177, %179 : vector<32x256xf32>
    %181 = tpu.reciprocal %180 {approx = true} : vector<32x256xf32> -> vector<32x256xf32>
    %182 = arith.mulf %178, %181 : vector<32x256xf32>
    %183 = arith.truncf %182 : vector<32x256xf32> to vector<32x256xbf16>
    %cst_72 = arith.constant dense<0.000000e+00> : vector<32x256xf32>
    %184 = tpu.matmul %173, %32, %cst_72 {dimension_numbers = #tpu.dot_dimension_numbers<[1], [0], [0], [1], [0, 0, 1, 1], [], []>} : vector<32x64xbf16>, vector<64x256xbf16>, vector<32x256xf32> -> vector<32x256xf32>
    %cst_73 = arith.constant dense<0.000000e+00> : vector<32x32xf32>
    %185 = tpu.matmul %173, %173, %cst_73 {dimension_numbers = #tpu.dot_dimension_numbers<[1], [1], [0], [0], [0, 0, 1, 0], [], []>} : vector<32x64xbf16>, vector<32x64xbf16>, vector<32x32xf32> -> vector<32x32xf32>
    %186 = arith.truncf %185 : vector<32x32xf32> to vector<32x32xbf16>
    %cst_74 = arith.constant dense<0.000000e+00> : vector<32x256xf32>
    %187 = tpu.matmul %186, %153, %cst_74 {dimension_numbers = #tpu.dot_dimension_numbers<[1], [0], [0], [1], [0, 0, 1, 1], [], []>} : vector<32x32xbf16>, vector<32x256xbf16>, vector<32x256xf32> -> vector<32x256xf32>
    %188 = arith.mulf %152, %184 : vector<32x256xf32>
    %cst_75 = arith.constant 9.99999997E-7 : f32
    %189 = vector.broadcast %cst_75 : f32 to vector<32x256xf32>
    %190 = arith.addf %187, %189 : vector<32x256xf32>
    %191 = tpu.reciprocal %190 {approx = true} : vector<32x256xf32> -> vector<32x256xf32>
    %192 = arith.mulf %188, %191 : vector<32x256xf32>
    %193 = arith.truncf %192 : vector<32x256xf32> to vector<32x256xbf16>
    %cst_76 = arith.constant dense<0.000000e+00> : vector<32x64xf32>
    %194 = tpu.matmul %182, %21, %cst_76 {dimension_numbers = #tpu.dot_dimension_numbers<[1], [1], [0], [0], [0, 0, 1, 0], [], []>} : vector<32x256xf32>, vector<64x256xbf16>, vector<32x64xf32> -> vector<32x64xf32>
    %cst_77 = arith.constant dense<0.000000e+00> : vector<32x32xf32>
    %195 = tpu.matmul %182, %182, %cst_77 {dimension_numbers = #tpu.dot_dimension_numbers<[1], [1], [0], [0], [0, 0, 1, 0], [], []>} : vector<32x256xf32>, vector<32x256xf32>, vector<32x32xf32> -> vector<32x32xf32>
    %196 = arith.truncf %195 : vector<32x32xf32> to vector<32x32xbf16>
    %cst_78 = arith.constant dense<0.000000e+00> : vector<32x64xf32>
    %197 = tpu.matmul %196, %163, %cst_78 {dimension_numbers = #tpu.dot_dimension_numbers<[1], [0], [0], [1], [0, 0, 1, 1], [], []>} : vector<32x32xbf16>, vector<32x64xbf16>, vector<32x64xf32> -> vector<32x64xf32>
    %198 = arith.mulf %162, %194 : vector<32x64xf32>
    %cst_79 = arith.constant 9.99999997E-7 : f32
    %199 = vector.broadcast %cst_79 : f32 to vector<32x64xf32>
    %200 = arith.addf %197, %199 : vector<32x64xf32>
    %201 = tpu.reciprocal %200 {approx = true} : vector<32x64xf32> -> vector<32x64xf32>
    %202 = arith.mulf %198, %201 : vector<32x64xf32>
    %203 = arith.truncf %202 : vector<32x64xf32> to vector<32x64xbf16>
    %cst_80 = arith.constant dense<0.000000e+00> : vector<32x64xf32>
    %204 = tpu.matmul %192, %32, %cst_80 {dimension_numbers = #tpu.dot_dimension_numbers<[1], [1], [0], [0], [0, 0, 1, 0], [], []>} : vector<32x256xf32>, vector<64x256xbf16>, vector<32x64xf32> -> vector<32x64xf32>
    %cst_81 = arith.constant dense<0.000000e+00> : vector<32x32xf32>
    %205 = tpu.matmul %192, %192, %cst_81 {dimension_numbers = #tpu.dot_dimension_numbers<[1], [1], [0], [0], [0, 0, 1, 0], [], []>} : vector<32x256xf32>, vector<32x256xf32>, vector<32x32xf32> -> vector<32x32xf32>
    %206 = arith.truncf %205 : vector<32x32xf32> to vector<32x32xbf16>
    %cst_82 = arith.constant dense<0.000000e+00> : vector<32x64xf32>
    %207 = tpu.matmul %206, %173, %cst_82 {dimension_numbers = #tpu.dot_dimension_numbers<[1], [0], [0], [1], [0, 0, 1, 1], [], []>} : vector<32x32xbf16>, vector<32x64xbf16>, vector<32x64xf32> -> vector<32x64xf32>
    %208 = arith.mulf %172, %204 : vector<32x64xf32>
    %cst_83 = arith.constant 9.99999997E-7 : f32
    %209 = vector.broadcast %cst_83 : f32 to vector<32x64xf32>
    %210 = arith.addf %207, %209 : vector<32x64xf32>
    %211 = tpu.reciprocal %210 {approx = true} : vector<32x64xf32> -> vector<32x64xf32>
    %212 = arith.mulf %208, %211 : vector<32x64xf32>
    %213 = arith.truncf %212 : vector<32x64xf32> to vector<32x64xbf16>
    %c3_i32 = arith.constant 3 : i32
    %cst_84 = arith.constant dense<0.000000e+00> : vector<32x256xf32>
    %214 = tpu.matmul %203, %21, %cst_84 {dimension_numbers = #tpu.dot_dimension_numbers<[1], [0], [0], [1], [0, 0, 1, 1], [], []>} : vector<32x64xbf16>, vector<64x256xbf16>, vector<32x256xf32> -> vector<32x256xf32>
    %cst_85 = arith.constant dense<0.000000e+00> : vector<32x32xf32>
    %215 = tpu.matmul %203, %203, %cst_85 {dimension_numbers = #tpu.dot_dimension_numbers<[1], [1], [0], [0], [0, 0, 1, 0], [], []>} : vector<32x64xbf16>, vector<32x64xbf16>, vector<32x32xf32> -> vector<32x32xf32>
    %216 = arith.truncf %215 : vector<32x32xf32> to vector<32x32xbf16>
    %cst_86 = arith.constant dense<0.000000e+00> : vector<32x256xf32>
    %217 = tpu.matmul %216, %183, %cst_86 {dimension_numbers = #tpu.dot_dimension_numbers<[1], [0], [0], [1], [0, 0, 1, 1], [], []>} : vector<32x32xbf16>, vector<32x256xbf16>, vector<32x256xf32> -> vector<32x256xf32>
    %218 = arith.mulf %182, %214 : vector<32x256xf32>
    %cst_87 = arith.constant 9.99999997E-7 : f32
    %219 = vector.broadcast %cst_87 : f32 to vector<32x256xf32>
    %220 = arith.addf %217, %219 : vector<32x256xf32>
    %221 = tpu.reciprocal %220 {approx = true} : vector<32x256xf32> -> vector<32x256xf32>
    %222 = arith.mulf %218, %221 : vector<32x256xf32>
    %223 = arith.truncf %222 : vector<32x256xf32> to vector<32x256xbf16>
    %cst_88 = arith.constant dense<0.000000e+00> : vector<32x256xf32>
    %224 = tpu.matmul %213, %32, %cst_88 {dimension_numbers = #tpu.dot_dimension_numbers<[1], [0], [0], [1], [0, 0, 1, 1], [], []>} : vector<32x64xbf16>, vector<64x256xbf16>, vector<32x256xf32> -> vector<32x256xf32>
    %cst_89 = arith.constant dense<0.000000e+00> : vector<32x32xf32>
    %225 = tpu.matmul %213, %213, %cst_89 {dimension_numbers = #tpu.dot_dimension_numbers<[1], [1], [0], [0], [0, 0, 1, 0], [], []>} : vector<32x64xbf16>, vector<32x64xbf16>, vector<32x32xf32> -> vector<32x32xf32>
    %226 = arith.truncf %225 : vector<32x32xf32> to vector<32x32xbf16>
    %cst_90 = arith.constant dense<0.000000e+00> : vector<32x256xf32>
    %227 = tpu.matmul %226, %193, %cst_90 {dimension_numbers = #tpu.dot_dimension_numbers<[1], [0], [0], [1], [0, 0, 1, 1], [], []>} : vector<32x32xbf16>, vector<32x256xbf16>, vector<32x256xf32> -> vector<32x256xf32>
    %228 = arith.mulf %192, %224 : vector<32x256xf32>
    %cst_91 = arith.constant 9.99999997E-7 : f32
    %229 = vector.broadcast %cst_91 : f32 to vector<32x256xf32>
    %230 = arith.addf %227, %229 : vector<32x256xf32>
    %231 = tpu.reciprocal %230 {approx = true} : vector<32x256xf32> -> vector<32x256xf32>
    %232 = arith.mulf %228, %231 : vector<32x256xf32>
    %233 = arith.truncf %232 : vector<32x256xf32> to vector<32x256xbf16>
    %cst_92 = arith.constant dense<0.000000e+00> : vector<32x64xf32>
    %234 = tpu.matmul %222, %21, %cst_92 {dimension_numbers = #tpu.dot_dimension_numbers<[1], [1], [0], [0], [0, 0, 1, 0], [], []>} : vector<32x256xf32>, vector<64x256xbf16>, vector<32x64xf32> -> vector<32x64xf32>
    %cst_93 = arith.constant dense<0.000000e+00> : vector<32x32xf32>
    %235 = tpu.matmul %222, %222, %cst_93 {dimension_numbers = #tpu.dot_dimension_numbers<[1], [1], [0], [0], [0, 0, 1, 0], [], []>} : vector<32x256xf32>, vector<32x256xf32>, vector<32x32xf32> -> vector<32x32xf32>
    %236 = arith.truncf %235 : vector<32x32xf32> to vector<32x32xbf16>
    %cst_94 = arith.constant dense<0.000000e+00> : vector<32x64xf32>
    %237 = tpu.matmul %236, %203, %cst_94 {dimension_numbers = #tpu.dot_dimension_numbers<[1], [0], [0], [1], [0, 0, 1, 1], [], []>} : vector<32x32xbf16>, vector<32x64xbf16>, vector<32x64xf32> -> vector<32x64xf32>
    %238 = arith.mulf %202, %234 : vector<32x64xf32>
    %cst_95 = arith.constant 9.99999997E-7 : f32
    %239 = vector.broadcast %cst_95 : f32 to vector<32x64xf32>
    %240 = arith.addf %237, %239 : vector<32x64xf32>
    %241 = tpu.reciprocal %240 {approx = true} : vector<32x64xf32> -> vector<32x64xf32>
    %242 = arith.mulf %238, %241 : vector<32x64xf32>
    %243 = arith.truncf %242 : vector<32x64xf32> to vector<32x64xbf16>
    %cst_96 = arith.constant dense<0.000000e+00> : vector<32x64xf32>
    %244 = tpu.matmul %232, %32, %cst_96 {dimension_numbers = #tpu.dot_dimension_numbers<[1], [1], [0], [0], [0, 0, 1, 0], [], []>} : vector<32x256xf32>, vector<64x256xbf16>, vector<32x64xf32> -> vector<32x64xf32>
    %cst_97 = arith.constant dense<0.000000e+00> : vector<32x32xf32>
    %245 = tpu.matmul %232, %232, %cst_97 {dimension_numbers = #tpu.dot_dimension_numbers<[1], [1], [0], [0], [0, 0, 1, 0], [], []>} : vector<32x256xf32>, vector<32x256xf32>, vector<32x32xf32> -> vector<32x32xf32>
    %246 = arith.truncf %245 : vector<32x32xf32> to vector<32x32xbf16>
    %cst_98 = arith.constant dense<0.000000e+00> : vector<32x64xf32>
    %247 = tpu.matmul %246, %213, %cst_98 {dimension_numbers = #tpu.dot_dimension_numbers<[1], [0], [0], [1], [0, 0, 1, 1], [], []>} : vector<32x32xbf16>, vector<32x64xbf16>, vector<32x64xf32> -> vector<32x64xf32>
    %248 = arith.mulf %212, %244 : vector<32x64xf32>
    %cst_99 = arith.constant 9.99999997E-7 : f32
    %249 = vector.broadcast %cst_99 : f32 to vector<32x64xf32>
    %250 = arith.addf %247, %249 : vector<32x64xf32>
    %251 = tpu.reciprocal %250 {approx = true} : vector<32x64xf32> -> vector<32x64xf32>
    %252 = arith.mulf %248, %251 : vector<32x64xf32>
    %253 = arith.truncf %252 : vector<32x64xf32> to vector<32x64xbf16>
    %c4_i32 = arith.constant 4 : i32
    %cst_100 = arith.constant dense<0.000000e+00> : vector<32x256xf32>
    %254 = tpu.matmul %243, %21, %cst_100 {dimension_numbers = #tpu.dot_dimension_numbers<[1], [0], [0], [1], [0, 0, 1, 1], [], []>} : vector<32x64xbf16>, vector<64x256xbf16>, vector<32x256xf32> -> vector<32x256xf32>
    %cst_101 = arith.constant dense<0.000000e+00> : vector<32x32xf32>
    %255 = tpu.matmul %243, %243, %cst_101 {dimension_numbers = #tpu.dot_dimension_numbers<[1], [1], [0], [0], [0, 0, 1, 0], [], []>} : vector<32x64xbf16>, vector<32x64xbf16>, vector<32x32xf32> -> vector<32x32xf32>
    %256 = arith.truncf %255 : vector<32x32xf32> to vector<32x32xbf16>
    %cst_102 = arith.constant dense<0.000000e+00> : vector<32x256xf32>
    %257 = tpu.matmul %256, %223, %cst_102 {dimension_numbers = #tpu.dot_dimension_numbers<[1], [0], [0], [1], [0, 0, 1, 1], [], []>} : vector<32x32xbf16>, vector<32x256xbf16>, vector<32x256xf32> -> vector<32x256xf32>
    %258 = arith.mulf %222, %254 : vector<32x256xf32>
    %cst_103 = arith.constant 9.99999997E-7 : f32
    %259 = vector.broadcast %cst_103 : f32 to vector<32x256xf32>
    %260 = arith.addf %257, %259 : vector<32x256xf32>
    %261 = tpu.reciprocal %260 {approx = true} : vector<32x256xf32> -> vector<32x256xf32>
    %262 = arith.mulf %258, %261 : vector<32x256xf32>
    %263 = arith.truncf %262 : vector<32x256xf32> to vector<32x256xbf16>
    %cst_104 = arith.constant dense<0.000000e+00> : vector<32x256xf32>
    %264 = tpu.matmul %253, %32, %cst_104 {dimension_numbers = #tpu.dot_dimension_numbers<[1], [0], [0], [1], [0, 0, 1, 1], [], []>} : vector<32x64xbf16>, vector<64x256xbf16>, vector<32x256xf32> -> vector<32x256xf32>
    %cst_105 = arith.constant dense<0.000000e+00> : vector<32x32xf32>
    %265 = tpu.matmul %253, %253, %cst_105 {dimension_numbers = #tpu.dot_dimension_numbers<[1], [1], [0], [0], [0, 0, 1, 0], [], []>} : vector<32x64xbf16>, vector<32x64xbf16>, vector<32x32xf32> -> vector<32x32xf32>
    %266 = arith.truncf %265 : vector<32x32xf32> to vector<32x32xbf16>
    %cst_106 = arith.constant dense<0.000000e+00> : vector<32x256xf32>
    %267 = tpu.matmul %266, %233, %cst_106 {dimension_numbers = #tpu.dot_dimension_numbers<[1], [0], [0], [1], [0, 0, 1, 1], [], []>} : vector<32x32xbf16>, vector<32x256xbf16>, vector<32x256xf32> -> vector<32x256xf32>
    %268 = arith.mulf %232, %264 : vector<32x256xf32>
    %cst_107 = arith.constant 9.99999997E-7 : f32
    %269 = vector.broadcast %cst_107 : f32 to vector<32x256xf32>
    %270 = arith.addf %267, %269 : vector<32x256xf32>
    %271 = tpu.reciprocal %270 {approx = true} : vector<32x256xf32> -> vector<32x256xf32>
    %272 = arith.mulf %268, %271 : vector<32x256xf32>
    %273 = arith.truncf %272 : vector<32x256xf32> to vector<32x256xbf16>
    %cst_108 = arith.constant dense<0.000000e+00> : vector<32x64xf32>
    %274 = tpu.matmul %262, %21, %cst_108 {dimension_numbers = #tpu.dot_dimension_numbers<[1], [1], [0], [0], [0, 0, 1, 0], [], []>} : vector<32x256xf32>, vector<64x256xbf16>, vector<32x64xf32> -> vector<32x64xf32>
    %cst_109 = arith.constant dense<0.000000e+00> : vector<32x32xf32>
    %275 = tpu.matmul %262, %262, %cst_109 {dimension_numbers = #tpu.dot_dimension_numbers<[1], [1], [0], [0], [0, 0, 1, 0], [], []>} : vector<32x256xf32>, vector<32x256xf32>, vector<32x32xf32> -> vector<32x32xf32>
    %276 = arith.truncf %275 : vector<32x32xf32> to vector<32x32xbf16>
    %cst_110 = arith.constant dense<0.000000e+00> : vector<32x64xf32>
    %277 = tpu.matmul %276, %243, %cst_110 {dimension_numbers = #tpu.dot_dimension_numbers<[1], [0], [0], [1], [0, 0, 1, 1], [], []>} : vector<32x32xbf16>, vector<32x64xbf16>, vector<32x64xf32> -> vector<32x64xf32>
    %278 = arith.mulf %242, %274 : vector<32x64xf32>
    %cst_111 = arith.constant 9.99999997E-7 : f32
    %279 = vector.broadcast %cst_111 : f32 to vector<32x64xf32>
    %280 = arith.addf %277, %279 : vector<32x64xf32>
    %281 = tpu.reciprocal %280 {approx = true} : vector<32x64xf32> -> vector<32x64xf32>
    %282 = arith.mulf %278, %281 : vector<32x64xf32>
    %283 = arith.truncf %282 : vector<32x64xf32> to vector<32x64xbf16>
    %cst_112 = arith.constant dense<0.000000e+00> : vector<32x64xf32>
    %284 = tpu.matmul %272, %32, %cst_112 {dimension_numbers = #tpu.dot_dimension_numbers<[1], [1], [0], [0], [0, 0, 1, 0], [], []>} : vector<32x256xf32>, vector<64x256xbf16>, vector<32x64xf32> -> vector<32x64xf32>
    %cst_113 = arith.constant dense<0.000000e+00> : vector<32x32xf32>
    %285 = tpu.matmul %272, %272, %cst_113 {dimension_numbers = #tpu.dot_dimension_numbers<[1], [1], [0], [0], [0, 0, 1, 0], [], []>} : vector<32x256xf32>, vector<32x256xf32>, vector<32x32xf32> -> vector<32x32xf32>
    %286 = arith.truncf %285 : vector<32x32xf32> to vector<32x32xbf16>
    %cst_114 = arith.constant dense<0.000000e+00> : vector<32x64xf32>
    %287 = tpu.matmul %286, %253, %cst_114 {dimension_numbers = #tpu.dot_dimension_numbers<[1], [0], [0], [1], [0, 0, 1, 1], [], []>} : vector<32x32xbf16>, vector<32x64xbf16>, vector<32x64xf32> -> vector<32x64xf32>
    %288 = arith.mulf %252, %284 : vector<32x64xf32>
    %cst_115 = arith.constant 9.99999997E-7 : f32
    %289 = vector.broadcast %cst_115 : f32 to vector<32x64xf32>
    %290 = arith.addf %287, %289 : vector<32x64xf32>
    %291 = tpu.reciprocal %290 {approx = true} : vector<32x64xf32> -> vector<32x64xf32>
    %292 = arith.mulf %288, %291 : vector<32x64xf32>
    %293 = arith.truncf %292 : vector<32x64xf32> to vector<32x64xbf16>
    %c5_i32 = arith.constant 5 : i32
    %cst_116 = arith.constant dense<0.000000e+00> : vector<32x256xf32>
    %294 = tpu.matmul %283, %21, %cst_116 {dimension_numbers = #tpu.dot_dimension_numbers<[1], [0], [0], [1], [0, 0, 1, 1], [], []>} : vector<32x64xbf16>, vector<64x256xbf16>, vector<32x256xf32> -> vector<32x256xf32>
    %cst_117 = arith.constant dense<0.000000e+00> : vector<32x32xf32>
    %295 = tpu.matmul %283, %283, %cst_117 {dimension_numbers = #tpu.dot_dimension_numbers<[1], [1], [0], [0], [0, 0, 1, 0], [], []>} : vector<32x64xbf16>, vector<32x64xbf16>, vector<32x32xf32> -> vector<32x32xf32>
    %296 = arith.truncf %295 : vector<32x32xf32> to vector<32x32xbf16>
    %cst_118 = arith.constant dense<0.000000e+00> : vector<32x256xf32>
    %297 = tpu.matmul %296, %263, %cst_118 {dimension_numbers = #tpu.dot_dimension_numbers<[1], [0], [0], [1], [0, 0, 1, 1], [], []>} : vector<32x32xbf16>, vector<32x256xbf16>, vector<32x256xf32> -> vector<32x256xf32>
    %298 = arith.mulf %262, %294 : vector<32x256xf32>
    %cst_119 = arith.constant 9.99999997E-7 : f32
    %299 = vector.broadcast %cst_119 : f32 to vector<32x256xf32>
    %300 = arith.addf %297, %299 : vector<32x256xf32>
    %301 = tpu.reciprocal %300 {approx = true} : vector<32x256xf32> -> vector<32x256xf32>
    %302 = arith.mulf %298, %301 : vector<32x256xf32>
    %303 = arith.truncf %302 : vector<32x256xf32> to vector<32x256xbf16>
    %cst_120 = arith.constant dense<0.000000e+00> : vector<32x256xf32>
    %304 = tpu.matmul %293, %32, %cst_120 {dimension_numbers = #tpu.dot_dimension_numbers<[1], [0], [0], [1], [0, 0, 1, 1], [], []>} : vector<32x64xbf16>, vector<64x256xbf16>, vector<32x256xf32> -> vector<32x256xf32>
    %cst_121 = arith.constant dense<0.000000e+00> : vector<32x32xf32>
    %305 = tpu.matmul %293, %293, %cst_121 {dimension_numbers = #tpu.dot_dimension_numbers<[1], [1], [0], [0], [0, 0, 1, 0], [], []>} : vector<32x64xbf16>, vector<32x64xbf16>, vector<32x32xf32> -> vector<32x32xf32>
    %306 = arith.truncf %305 : vector<32x32xf32> to vector<32x32xbf16>
    %cst_122 = arith.constant dense<0.000000e+00> : vector<32x256xf32>
    %307 = tpu.matmul %306, %273, %cst_122 {dimension_numbers = #tpu.dot_dimension_numbers<[1], [0], [0], [1], [0, 0, 1, 1], [], []>} : vector<32x32xbf16>, vector<32x256xbf16>, vector<32x256xf32> -> vector<32x256xf32>
    %308 = arith.mulf %272, %304 : vector<32x256xf32>
    %cst_123 = arith.constant 9.99999997E-7 : f32
    %309 = vector.broadcast %cst_123 : f32 to vector<32x256xf32>
    %310 = arith.addf %307, %309 : vector<32x256xf32>
    %311 = tpu.reciprocal %310 {approx = true} : vector<32x256xf32> -> vector<32x256xf32>
    %312 = arith.mulf %308, %311 : vector<32x256xf32>
    %313 = arith.truncf %312 : vector<32x256xf32> to vector<32x256xbf16>
    %cst_124 = arith.constant dense<0.000000e+00> : vector<32x64xf32>
    %314 = tpu.matmul %302, %21, %cst_124 {dimension_numbers = #tpu.dot_dimension_numbers<[1], [1], [0], [0], [0, 0, 1, 0], [], []>} : vector<32x256xf32>, vector<64x256xbf16>, vector<32x64xf32> -> vector<32x64xf32>
    %cst_125 = arith.constant dense<0.000000e+00> : vector<32x32xf32>
    %315 = tpu.matmul %302, %302, %cst_125 {dimension_numbers = #tpu.dot_dimension_numbers<[1], [1], [0], [0], [0, 0, 1, 0], [], []>} : vector<32x256xf32>, vector<32x256xf32>, vector<32x32xf32> -> vector<32x32xf32>
    %316 = arith.truncf %315 : vector<32x32xf32> to vector<32x32xbf16>
    %cst_126 = arith.constant dense<0.000000e+00> : vector<32x64xf32>
    %317 = tpu.matmul %316, %283, %cst_126 {dimension_numbers = #tpu.dot_dimension_numbers<[1], [0], [0], [1], [0, 0, 1, 1], [], []>} : vector<32x32xbf16>, vector<32x64xbf16>, vector<32x64xf32> -> vector<32x64xf32>
    %318 = arith.mulf %282, %314 : vector<32x64xf32>
    %cst_127 = arith.constant 9.99999997E-7 : f32
    %319 = vector.broadcast %cst_127 : f32 to vector<32x64xf32>
    %320 = arith.addf %317, %319 : vector<32x64xf32>
    %321 = tpu.reciprocal %320 {approx = true} : vector<32x64xf32> -> vector<32x64xf32>
    %322 = arith.mulf %318, %321 : vector<32x64xf32>
    %323 = arith.truncf %322 : vector<32x64xf32> to vector<32x64xbf16>
    %cst_128 = arith.constant dense<0.000000e+00> : vector<32x64xf32>
    %324 = tpu.matmul %312, %32, %cst_128 {dimension_numbers = #tpu.dot_dimension_numbers<[1], [1], [0], [0], [0, 0, 1, 0], [], []>} : vector<32x256xf32>, vector<64x256xbf16>, vector<32x64xf32> -> vector<32x64xf32>
    %cst_129 = arith.constant dense<0.000000e+00> : vector<32x32xf32>
    %325 = tpu.matmul %312, %312, %cst_129 {dimension_numbers = #tpu.dot_dimension_numbers<[1], [1], [0], [0], [0, 0, 1, 0], [], []>} : vector<32x256xf32>, vector<32x256xf32>, vector<32x32xf32> -> vector<32x32xf32>
    %326 = arith.truncf %325 : vector<32x32xf32> to vector<32x32xbf16>
    %cst_130 = arith.constant dense<0.000000e+00> : vector<32x64xf32>
    %327 = tpu.matmul %326, %293, %cst_130 {dimension_numbers = #tpu.dot_dimension_numbers<[1], [0], [0], [1], [0, 0, 1, 1], [], []>} : vector<32x32xbf16>, vector<32x64xbf16>, vector<32x64xf32> -> vector<32x64xf32>
    %328 = arith.mulf %292, %324 : vector<32x64xf32>
    %cst_131 = arith.constant 9.99999997E-7 : f32
    %329 = vector.broadcast %cst_131 : f32 to vector<32x64xf32>
    %330 = arith.addf %327, %329 : vector<32x64xf32>
    %331 = tpu.reciprocal %330 {approx = true} : vector<32x64xf32> -> vector<32x64xf32>
    %332 = arith.mulf %328, %331 : vector<32x64xf32>
    %333 = arith.truncf %332 : vector<32x64xf32> to vector<32x64xbf16>
    %cst_132 = arith.constant dense<0.000000e+00> : vector<32x256xf32>
    %334 = tpu.matmul %323, %21, %cst_132 {dimension_numbers = #tpu.dot_dimension_numbers<[1], [0], [0], [1], [0, 0, 1, 1], [], []>} : vector<32x64xbf16>, vector<64x256xbf16>, vector<32x256xf32> -> vector<32x256xf32>
    %cst_133 = arith.constant dense<0.000000e+00> : vector<32x32xf32>
    %335 = tpu.matmul %323, %323, %cst_133 {dimension_numbers = #tpu.dot_dimension_numbers<[1], [1], [0], [0], [0, 0, 1, 0], [], []>} : vector<32x64xbf16>, vector<32x64xbf16>, vector<32x32xf32> -> vector<32x32xf32>
    %336 = arith.truncf %335 : vector<32x32xf32> to vector<32x32xbf16>
    %cst_134 = arith.constant dense<0.000000e+00> : vector<32x256xf32>
    %337 = tpu.matmul %336, %303, %cst_134 {dimension_numbers = #tpu.dot_dimension_numbers<[1], [0], [0], [1], [0, 0, 1, 1], [], []>} : vector<32x32xbf16>, vector<32x256xbf16>, vector<32x256xf32> -> vector<32x256xf32>
    %338 = arith.mulf %302, %334 : vector<32x256xf32>
    %cst_135 = arith.constant 9.99999997E-7 : f32
    %339 = vector.broadcast %cst_135 : f32 to vector<32x256xf32>
    %340 = arith.addf %337, %339 : vector<32x256xf32>
    %341 = tpu.reciprocal %340 {approx = true} : vector<32x256xf32> -> vector<32x256xf32>
    %342 = arith.mulf %338, %341 : vector<32x256xf32>
    %343 = arith.truncf %342 : vector<32x256xf32> to vector<32x256xbf16>
    %cst_136 = arith.constant dense<0.000000e+00> : vector<32x256xf32>
    %344 = tpu.matmul %333, %32, %cst_136 {dimension_numbers = #tpu.dot_dimension_numbers<[1], [0], [0], [1], [0, 0, 1, 1], [], []>} : vector<32x64xbf16>, vector<64x256xbf16>, vector<32x256xf32> -> vector<32x256xf32>
    %cst_137 = arith.constant dense<0.000000e+00> : vector<32x32xf32>
    %345 = tpu.matmul %333, %333, %cst_137 {dimension_numbers = #tpu.dot_dimension_numbers<[1], [1], [0], [0], [0, 0, 1, 0], [], []>} : vector<32x64xbf16>, vector<32x64xbf16>, vector<32x32xf32> -> vector<32x32xf32>
    %346 = arith.truncf %345 : vector<32x32xf32> to vector<32x32xbf16>
    %cst_138 = arith.constant dense<0.000000e+00> : vector<32x256xf32>
    %347 = tpu.matmul %346, %313, %cst_138 {dimension_numbers = #tpu.dot_dimension_numbers<[1], [0], [0], [1], [0, 0, 1, 1], [], []>} : vector<32x32xbf16>, vector<32x256xbf16>, vector<32x256xf32> -> vector<32x256xf32>
    %348 = arith.mulf %312, %344 : vector<32x256xf32>
    %cst_139 = arith.constant 9.99999997E-7 : f32
    %349 = vector.broadcast %cst_139 : f32 to vector<32x256xf32>
    %350 = arith.addf %347, %349 : vector<32x256xf32>
    %351 = tpu.reciprocal %350 {approx = true} : vector<32x256xf32> -> vector<32x256xf32>
    %352 = arith.mulf %348, %351 : vector<32x256xf32>
    %353 = arith.truncf %352 : vector<32x256xf32> to vector<32x256xbf16>
    %cst_140 = arith.constant dense<0.000000e+00> : vector<64x256xf32>
    %354 = tpu.matmul %323, %343, %cst_140 {dimension_numbers = #tpu.dot_dimension_numbers<[0], [0], [1], [1], [0, 1, 1, 1], [], []>} : vector<32x64xbf16>, vector<32x256xbf16>, vector<64x256xf32> -> vector<64x256xf32>
    %355 = arith.truncf %354 : vector<64x256xf32> to vector<64x256xbf16>
    %cst_141 = arith.constant dense<0.000000e+00> : vector<64x256xf32>
    %356 = tpu.matmul %1, %355, %cst_141 {dimension_numbers = #tpu.dot_dimension_numbers<[1], [0], [0], [1], [0, 0, 1, 1], [], []>} : vector<64x64xbf16>, vector<64x256xbf16>, vector<64x256xf32> -> vector<64x256xf32>
    %357 = vector.broadcast %3 : vector<64x1xf32> to vector<64x256xf32>
    %358 = arith.addf %356, %357 : vector<64x256xf32>
    %c0_142 = arith.constant 0 : index
    %c0_143 = arith.constant 0 : index
    %c0_144 = arith.constant 0 : index
    %359 = vector.load %arg1[%c0_142, %c0_143, %c0_144] : memref<2x64x256xf32, #tpu.memory_space<vmem>>, vector<1x64x256xf32>
    %360 = vector.shape_cast %359 : vector<1x64x256xf32> to vector<64x256xf32>
    %361 = arith.addf %360, %358 : vector<64x256xf32>
    %cst_145 = arith.constant 0.000000e+00 : f32
    %362 = vector.broadcast %cst_145 : f32 to vector<64x256xf32>
    %363 = arith.maximumf %361, %362 : vector<64x256xf32>
    %c0_146 = arith.constant 0 : index
    %c0_147 = arith.constant 0 : index
    %c0_148 = arith.constant 0 : index
    %364 = vector.load %arg7[%c0_146, %c0_147, %c0_148] : memref<2x64x256xf32, #tpu.memory_space<vmem>>, vector<1x64x256xf32>
    %365 = vector.shape_cast %364 : vector<1x64x256xf32> to vector<64x256xf32>
    %366 = vector.shape_cast %363 : vector<64x256xf32> to vector<1x64x256xf32>
    tpu.vector_store %arg7[%c0_146, %c0_147, %c0_148], %366 {strides = array<i32>} : memref<2x64x256xf32, #tpu.memory_space<vmem>>, vector<1x64x256xf32>,
    %cst_149 = arith.constant dense<0.000000e+00> : vector<64x256xf32>
    %367 = tpu.matmul %333, %353, %cst_149 {dimension_numbers = #tpu.dot_dimension_numbers<[0], [0], [1], [1], [0, 1, 1, 1], [], []>} : vector<32x64xbf16>, vector<32x256xbf16>, vector<64x256xf32> -> vector<64x256xf32>
    %368 = arith.truncf %367 : vector<64x256xf32> to vector<64x256xbf16>
    %cst_150 = arith.constant dense<0.000000e+00> : vector<64x256xf32>
    %369 = tpu.matmul %1, %368, %cst_150 {dimension_numbers = #tpu.dot_dimension_numbers<[1], [0], [0], [1], [0, 0, 1, 1], [], []>} : vector<64x64xbf16>, vector<64x256xbf16>, vector<64x256xf32> -> vector<64x256xf32>
    %370 = vector.broadcast %3 : vector<64x1xf32> to vector<64x256xf32>
    %371 = arith.addf %369, %370 : vector<64x256xf32>
    %c1_151 = arith.constant 1 : index
    %c0_152 = arith.constant 0 : index
    %c0_153 = arith.constant 0 : index
    %372 = vector.load %arg1[%c1_151, %c0_152, %c0_153] : memref<2x64x256xf32, #tpu.memory_space<vmem>>, vector<1x64x256xf32>
    %373 = vector.shape_cast %372 : vector<1x64x256xf32> to vector<64x256xf32>
    %374 = arith.addf %373, %371 : vector<64x256xf32>
    %cst_154 = arith.constant 0.000000e+00 : f32
    %375 = vector.broadcast %cst_154 : f32 to vector<64x256xf32>
    %376 = arith.maximumf %374, %375 : vector<64x256xf32>
    %c1_155 = arith.constant 1 : index
    %c0_156 = arith.constant 0 : index
    %c0_157 = arith.constant 0 : index
    %377 = vector.load %arg7[%c1_155, %c0_156, %c0_157] : memref<2x64x256xf32, #tpu.memory_space<vmem>>, vector<1x64x256xf32>
    %378 = vector.shape_cast %377 : vector<1x64x256xf32> to vector<64x256xf32>
    %379 = vector.shape_cast %376 : vector<64x256xf32> to vector<1x64x256xf32>
    tpu.vector_store %arg7[%c1_155, %c0_156, %c0_157], %379 {strides = array<i32>} : memref<2x64x256xf32, #tpu.memory_space<vmem>>, vector<1x64x256xf32>,
    return
  }
  func.func @transform_0(%arg0: i32) -> (i32, i32, i32) {
    %c0_i32 = arith.constant 0 : i32
    %c0_i32_0 = arith.constant 0 : i32
    %c0_i32_1 = arith.constant 0 : i32
    return %arg0, %c0_i32, %c0_i32_0 : i32, i32, i32
  }
  func.func @transform_1(%arg0: i32) -> (i32, i32) {
    %c0_i32 = arith.constant 0 : i32
    %c0_i32_0 = arith.constant 0 : i32
    %c0_i32_1 = arith.constant 0 : i32
    return %c0_i32, %c0_i32_0 : i32, i32
  }
  func.func @transform_2(%arg0: i32) -> (i32, i32) {
    %c0_i32 = arith.constant 0 : i32
    %c0_i32_0 = arith.constant 0 : i32
    %c0_i32_1 = arith.constant 0 : i32
    return %c0_i32, %c0_i32_0 : i32, i32
  }
  func.func @transform_3(%arg0: i32) -> (i32, i32) {
    %c0_i32 = arith.constant 0 : i32
    %c0_i32_0 = arith.constant 0 : i32
    %c0_i32_1 = arith.constant 0 : i32
    return %c0_i32, %c0_i32_0 : i32, i32
  }
  func.func @transform_4(%arg0: i32) -> (i32, i32) {
    %c0_i32 = arith.constant 0 : i32
    %c0_i32_0 = arith.constant 0 : i32
    %c0_i32_1 = arith.constant 0 : i32
    return %c0_i32, %c0_i32_0 : i32, i32
  }
  func.func @transform_5(%arg0: i32) -> (i32, i32) {
    %c0_i32 = arith.constant 0 : i32
    %c0_i32_0 = arith.constant 0 : i32
    %c0_i32_1 = arith.constant 0 : i32
    return %c0_i32, %c0_i32_0 : i32, i32
  }
  func.func @transform_6(%arg0: i32) -> (i32, i32, i32) {
    %c0_i32 = arith.constant 0 : i32
    %c0_i32_0 = arith.constant 0 : i32
    %c0_i32_1 = arith.constant 0 : i32
    return %arg0, %c0_i32, %c0_i32_0 : i32, i32, i32
  }
}

</mosaic_0001>

<bundles_post_ra>
// kernel: tpu_custom_call.1
= control target key start
LH: loop header
LB: loop body
LE: loop exit
PB: predicated region body
PF: predicated region fallthrough
CT: control target
= control target key end

     0   :  { %11 = vsyncpa [#allocation3], 0  ;;  %s10605_s0 = inlined_call_operand.hbm [shape: f32[2,64,256], index: 0, kind: input, shape index: {}]   ;;  %s10606_s1 = inlined_call_operand.vmem [shape: bf16[64,64], index: 1, kind: input, shape index: {}]   ;;  %s10607_s2 = inlined_call_operand.vmem [shape: f32[64,1], index: 2, kind: input, shape index: {}]   ;;  %s10608_s3 = inlined_call_operand.vmem [shape: f32[32,64], index: 3, kind: input, shape index: {}]   ;;  %s10609_s4 = inlined_call_operand.vmem [shape: bf16[64,64], index: 4, kind: input, shape index: {}]   ;;  %s10610_s5 = inlined_call_operand.vmem [shape: f32[64,1], index: 5, kind: input, shape index: {}]   ;;  %s10611_s6 = inlined_call_operand.hbm [shape: f32[2,64,256], index: 6, kind: output, shape index: {}]  }
   0x1   :  { %12 = vsyncpa [#allocation4], 0  ;;  %s8183_s21 = smov [#allocation2]  }
   0x2   :  { %s18_s22 = sshll.u32 %s8183_s21, 4  ;;  %s19_s22 = int_to_ptr.vmem [resolvable:$true] %s18_s22 }
   0x3   :  { %s8147_s23 = scalar_lea.vmem %s19_s22, 4096  ;;  %p8152_p1 = scmp.lt.s32.totalorder %s19_s22, %s19_s22 }
   0x4   :  { %p8148_p0 = scmp.ne.s32.totalorder %s19_s22, %s8147_s23  ;;  %p8153_p2 = scmp.lt.s32.totalorder %s8147_s23, %s8147_s23 }
   0x6   :  { %p8154_p3 = por %p8153_p2, %p8152_p1 }
   0x8   :  { %p8155_p4 = pnand %p8154_p3, %p8148_p0 }
   0xa   :  { %8158 = shalt.err (!%p8155_p4)
}
   0xb   :  { %s8184_s24 = smov 256   ;;  %s8185_s25 = smov 16  }
   0xc   :  { %24 = dma.hbm_to_vmem [thread:$0]  %s10605_s0, 4096, %s19_s22, [#allocation3], %s8184_s24, %s8184_s24, %s8185_s25  }
   0xd   :  { %8179 = dma.done.wait [#allocation3], 4096  }
   0xe   :  { %8180 = vsyncadd [#allocation3], 4294963200  ;;  %v10612_v0 = vmov 0   ;;  %v99_v1 = vld [vmem:[#allocation2 + $0x68] sm:$0xff]  ;;  %v101_v2 = vld [vmem:[#allocation2 + $0x78] sm:$0xff]  ;;  %vm170_vm0 = vcmask 523264  }
   0xf   :  { %215 = vmatprep.mubr.bf16.mxu0 %v10612_v0  ;;  %353 = vmatprep.mubr.bf16.mxu1 %v10612_v0  ;;  %v310_v3 = vld [vmem:[#allocation2 + $0xe8] sm:$0xff]  ;;  %v109_v4 = vpack.c.bf16 %v101_v2, %v99_v1  ;;  %v312_v5 = vld [vmem:[#allocation2 + $0xf8] sm:$0xff]  ;;  %v98_v6 = vld [vmem:[#allocation2 + $0x60] sm:$0xff]  ;;  %vm753_vm1 = vcmask 261120  }
  0x10   :  { %7701 = vset.pattern.permute.xlu0 %v10612_v0  ;;  %7702 = vset.pattern.permute.xlu1 %v10612_v0  ;;  %v100_v7 = vld [vmem:[#allocation2 + $0x70] sm:$0xff]  ;;  %v320_v8 = vpack.c.bf16 %v312_v5, %v310_v3  ;;  %v309_v10 = vld [vmem:[#allocation2 + $0xe0] sm:$0xff]  ;;  %v95_v12 = vld [vmem:[#allocation2 + $0x48] sm:$0xff] }
  0x11   :  { %v108_v9 = vpack.c.bf16 %v100_v7, %v98_v6  ;;  %v311_v11 = vld [vmem:[#allocation2 + $0xf0] sm:$0xff]  ;;  %191 = vmatprep.subr.bf16.mxu0 %v109_v4  ;;  %v97_v14 = vld [vmem:[#allocation2 + $0x58] sm:$0xff]  ;;  %v306_v15 = vld [vmem:[#allocation2 + $0xc8] sm:$0xff] }
  0x12   :  { %v319_v13 = vpack.c.bf16 %v311_v11, %v309_v10  ;;  %v308_v16 = vld [vmem:[#allocation2 + $0xd8] sm:$0xff]  ;;  %329 = vmatprep.subr.bf16.mxu1 %v320_v8  ;;  %v107_v17 = vpack.c.bf16 %v97_v14, %v95_v12  ;;  %v94_v19 = vld [vmem:[#allocation2 + $0x40] sm:$0xff]  ;;  %v96_v20 = vld [vmem:[#allocation2 + $0x50] sm:$0xff] }
  0x13   :  { %192 = vmatpush1.bf16.msra.mxu0 %v108_v9  ;;  %v318_v18 = vpack.c.bf16 %v308_v16, %v306_v15  ;;  %v305_v21 = vld [vmem:[#allocation2 + $0xc0] sm:$0xff]  ;;  %v106_v22 = vpack.c.bf16 %v96_v20, %v94_v19  ;;  %v307_v23 = vld [vmem:[#allocation2 + $0xd0] sm:$0xff]  ;;  %v91_v24 = vld [vmem:[#allocation2 + $0x28] sm:$0xff] }
  0x14   :  { %330 = vmatpush1.bf16.msra.mxu1 %v319_v13  ;;  %v93_v25 = vld [vmem:[#allocation2 + $0x38] sm:$0xff]  ;;  %193 = vmatprep.subr.bf16.mxu0 %v107_v17  ;;  %v317_v26 = vpack.c.bf16 %v307_v23, %v305_v21  ;;  %v302_v28 = vld [vmem:[#allocation2 + $0xa8] sm:$0xff]  ;;  %v90_v30 = vld [vmem:[#allocation2 + $0x20] sm:$0xff] }
  0x15   :  { %331 = vmatprep.subr.bf16.mxu1 %v318_v18  ;;  %v105_v27 = vpack.c.bf16 %v93_v25, %v91_v24  ;;  %v304_v29 = vld [vmem:[#allocation2 + $0xb8] sm:$0xff]  ;;  %v92_v32 = vld [vmem:[#allocation2 + $0x30] sm:$0xff]  ;;  %v301_v33 = vld [vmem:[#allocation2 + $0xa0] sm:$0xff] }
  0x16   :  { %v316_v31 = vpack.c.bf16 %v304_v29, %v302_v28  ;;  %v303_v34 = vld [vmem:[#allocation2 + $0xb0] sm:$0xff]  ;;  %v104_v35 = vpack.c.bf16 %v92_v32, %v90_v30  ;;  %v87_v36 = vld [vmem:[#allocation2 + $0x8] sm:$0xff]  ;;  %v89_v37 = vld [vmem:[#allocation2 + $0x18] sm:$0xff] }
  0x17   :  { %194 = vmatpush1.bf16.msra.mxu0 %v106_v22  ;;  %v298_v38 = vld [vmem:[#allocation2 + $0x88] sm:$0xff]  ;;  %v315_v39 = vpack.c.bf16 %v303_v34, %v301_v33  ;;  %v103_v40 = vpack.c.bf16 %v89_v37, %v87_v36  ;;  %v300_v41 = vld [vmem:[#allocation2 + $0x98] sm:$0xff]  ;;  %v86_v42 = vld [vmem:[#allocation2] sm:$0xff] }
  0x18   :  { %332 = vmatpush1.bf16.msra.mxu1 %v317_v26  ;;  %195 = vmatprep.subr.bf16.mxu0 %v105_v27  ;;  %v88_v43 = vld [vmem:[#allocation2 + $0x10] sm:$0xff]  ;;  %v314_v44 = vpack.c.bf16 %v300_v41, %v298_v38  ;;  %v297_v45 = vld [vmem:[#allocation2 + $0x80] sm:$0xff]  ;;  %v62_v52 = vld [vmem:[%s10607_s2 + $0x38] sm:$0xff] }
  0x19   :  { %333 = vmatprep.subr.bf16.mxu1 %v316_v31  ;;  %v299_v46 = vld [vmem:[#allocation2 + $0x90] sm:$0xff]  ;;  %v102_v47 = vpack.c.bf16 %v88_v43, %v86_v42  ;;  %v7703_v50 = vld [vmem:[%s10606_s1] sm:$0xff]   ;;  %v60_v53 = vld [vmem:[%s10607_s2 + $0x28] sm:$0xff] }
  0x1a   :  { %v313_v48 = vpack.c.bf16 %v299_v46, %v297_v45  ;;  %v61_v49 = vld [vmem:[%s10607_s2 + $0x30] sm:$0xff]  ;;  %v59_v51 = vld [vmem:[%s10607_s2 + $0x20] sm:$0xff]  ;;  %v58_v55 = vld [vmem:[%s10607_s2 + $0x18] sm:$0xff] }
  0x1b   :  { %196 = vmatpush1.bf16.msra.mxu0 %v104_v35  ;;  %142 = vperm.xlu0 %7701, %v61_v49   ;;  %v57_v54 = vld [vmem:[%s10607_s2 + $0x10] sm:$0xff]  ;;  %v7704_v56 = vld [vmem:[%s10606_s1 + $0x8] sm:$0xff]   ;;  %v55_v57 = vld [vmem:[%s10607_s2] sm:$0xff] }
  0x1c   :  { %334 = vmatpush1.bf16.msra.mxu1 %v315_v39  ;;  %197 = vmatprep.subr.bf16.mxu0 %v103_v40  ;;  %v56_v58 = vld [vmem:[%s10607_s2 + $0x8] sm:$0xff]  ;;  %v7705_v59 = vld [vmem:[%s10606_s1 + $0x10] sm:$0xff]   ;;  %v7706_v60 = vld [vmem:[%s10606_s1 + $0x18] sm:$0xff]  }
  0x1d   :  { %335 = vmatprep.subr.bf16.mxu1 %v314_v44  ;;  %132 = vperm.xlu1 %7702, %v59_v51  }
  0x1f   :  { %198 = vmatpush1.bf16.msra.mxu0 %v102_v47  ;;  %147 = vperm.xlu0 %7701, %v62_v52  }
  0x20   :  { %336 = vmatpush1.bf16.msra.mxu1 %v313_v48 }
  0x21   :  { %137 = vperm.xlu1 %7702, %v60_v53  }
  0x22   :  { %7168 = vmatmul.mubr.msk.bf16.vlgmr.msra.gmra.mxu0 %vm170_vm0, %v7703_v50 }
  0x23   :  { %7172 = vmatmul.mubr.msk.bf16.vlgmr.msra.gmra.mxu1 %vm170_vm0, %v7703_v50  ;;  %225 = vmatprep.mubr.bf16.mxu0 %v10612_v0 }
  0x24   :  { %363 = vmatprep.mubr.bf16.mxu1 %v10612_v0  ;;  %122 = vperm.xlu0 %7701, %v57_v54  }
  0x25   :  { %127 = vperm.xlu1 %7702, %v58_v55  }
  0x28   :  { %112 = vperm.xlu0 %7701, %v55_v57  }
  0x29   :  { %117 = vperm.xlu1 %7702, %v56_v58  }
  0x2a   :  { %7169 = vmatmul.mubr.msk.bf16.gmra.mxu0 %vm170_vm0, %v7704_v56 }
  0x2b   :  { %7173 = vmatmul.mubr.msk.bf16.gmra.mxu1 %vm170_vm0, %v7704_v56  ;;  %235 = vmatprep.mubr.bf16.mxu0 %v10612_v0 }
  0x2c   :  { %373 = vmatprep.mubr.bf16.mxu1 %v10612_v0 }
  0x32   :  { %7170 = vmatmul.mubr.msk.bf16.gmra.mxu0 %vm170_vm0, %v7705_v59 }
  0x33   :  { %7174 = vmatmul.mubr.msk.bf16.gmra.mxu1 %vm170_vm0, %v7705_v59  ;;  %245 = vmatprep.mubr.bf16.mxu0 %v10612_v0 }
  0x34   :  { %383 = vmatprep.mubr.bf16.mxu1 %v10612_v0 }
  0x3a   :  { %7171 = vmatmul.mubr.msk.bf16.gmra.mxu0 %vm170_vm0, %v7706_v60 }
  0x3b   :  { %7175 = vmatmul.mubr.msk.bf16.gmra.mxu1 %vm170_vm0, %v7706_v60  ;;  %472 = vmatprep.mubr.bf16.mxu0 %v10612_v0 }
  0x3c   :  { %525 = vmatprep.mubr.bf16.mxu1 %v10612_v0 }
  0x96   :  { %v143_v2 = vpop.permute.xlu0 %142 }
  0x98   :  { %v133_v6 = vpop.permute.xlu1 %132 }
  0x9a   :  { %v148_v10 = vpop.permute.xlu0 %147 }
  0x9c   :  { %v138_v14 = vpop.permute.xlu1 %137 }
  0x9f   :  { %v123_v18 = vpop.permute.xlu0 %122 }
  0xa0   :  { %v128_v22 = vpop.permute.xlu1 %127 }
  0xa3   :  { %v8293_v26 = vpop.permute.xlu0 %112 }
  0xa4   :  { %v8298_v31 = vpop.permute.xlu1 %117 }
  0xe2   :  { %v217_v61 = vpop.f32.mrf.mxu0 }
  0xe3   :  { %v8285_v62 = vpop.f32.mrf.mxu1  ;;  %v8296_v30 = vadd.f32 %v217_v61, %v8293_v26 }
  0xe4   :  { %v8287_v63 = vpop.f32.mrf.mxu0 }
  0xe5   :  { %v357_v1 = vpop.f32.mrf.mxu1 }
  0xe6   :  { %v8289_v3 = vpop.f32.mrf.mxu0  ;;  %v8301_v33 = vadd.f32 %v357_v1, %v8293_v26 }
  0xe7   :  { %v8291_v4 = vpop.f32.mrf.mxu1 }
  0xe8   :  { %v223_v5 = vpop.f32.mrf.mxu0 }
  0xe9   :  { %v361_v7 = vpop.f32.mrf.mxu1  ;;  %v8304_v34 = vadd.f32 %v223_v5, %v8298_v31 }
  0xea   :  { %v227_v8 = vpop.f32.mrf.mxu0  ;;  %v8307_v35 = vadd.f32 %v361_v7, %v8298_v31 }
  0xeb   :  { %v365_v9 = vpop.f32.mrf.mxu1  ;;  %v8309_v36 = vadd.f32 %v227_v8, %v123_v18 }
  0xec   :  { %v229_v11 = vpop.f32.mrf.mxu0  ;;  %v8311_v38 = vadd.f32 %v365_v9, %v123_v18 }
  0xed   :  { %v367_v12 = vpop.f32.mrf.mxu1  ;;  %v8313_v39 = vadd.f32 %v229_v11, %v123_v18 }
  0xee   :  { %v231_v13 = vpop.f32.mrf.mxu0  ;;  %v8315_v40 = vadd.f32 %v367_v12, %v123_v18 }
  0xef   :  { %v369_v15 = vpop.f32.mrf.mxu1  ;;  %v8317_v41 = vadd.f32 %v231_v13, %v128_v22 }
  0xf0   :  { %v233_v16 = vpop.f32.mrf.mxu0 }
  0xf1   :  { %v371_v17 = vpop.f32.mrf.mxu1  ;;  %v8319_v43 = vadd.f32 %v233_v16, %v128_v22 }
  0xf2   :  { %v237_v19 = vpop.f32.mrf.mxu0  ;;  %v8321_v44 = vadd.f32 %v371_v17, %v128_v22 }
  0xf3   :  { %v375_v20 = vpop.f32.mrf.mxu1  ;;  %v238_v45 = vadd.f32 %v237_v19, %v133_v6 }
  0xf4   :  { %v239_v21 = vpop.f32.mrf.mxu0  ;;  %v376_v48 = vadd.f32 %v375_v20, %v133_v6 }
  0xf5   :  { %v377_v23 = vpop.f32.mrf.mxu1  ;;  %v240_v58 = vadd.f32 %v239_v21, %v133_v6 }
  0xf6   :  { %v241_v24 = vpop.f32.mrf.mxu0  ;;  %v378_v46 = vadd.f32 %v377_v23, %v133_v6  ;;  %v370_v23 = vadd.f32 %v369_v15, %v128_v22  ;;  %v399_v15 = vmax.f32 %v8315_v40, 0.0  ;;  %v401_v22 = vmax.f32 %v8321_v44, 0.0 }
  0xf7   :  { %v379_v25 = vpop.f32.mrf.mxu1  ;;  %v242_v59 = vadd.f32 %v241_v24, %v138_v14  ;;  %v261_v40 = vmax.f32 %v8313_v39, 0.0  ;;  %v360_v44 = vadd.f32 %v8291_v4, %v8298_v31  ;;  %v260_v4 = vmax.f32 %v8309_v36, 0.0 }
  0xf8   :  { %v243_v27 = vpop.f32.mrf.mxu0  ;;  %v403_v5 = vmax.f32 %v378_v46, 0.0  ;;  %v380_v7 = vadd.f32 %v379_v25, %v138_v14  ;;  %v220_v46 = vadd.f32 %v8287_v63, %v8293_v26  ;;  %v398_v63 = vmax.f32 %v8311_v38, 0.0 }
  0xf9   :  { %v381_v28 = vpop.f32.mrf.mxu1  ;;  %v244_v49 = vadd.f32 %v243_v27, %v138_v14  ;;  %v265_v27 = vmax.f32 %v240_v58, 0.0  ;;  %v266_v21 = vmax.f32 %v242_v59, 0.0  ;;  %v256_v36 = vmax.f32 %v8296_v30, 0.0  ;;  %v8396_v30 = vld [vmem:[%s10608_s3 + $0x10] sm:$0xff] }
  0xfa   :  { %v247_v29 = vpop.f32.mrf.mxu0  ;;  %v382_v53 = vadd.f32 %v381_v28, %v138_v14  ;;  %v404_v25 = vmax.f32 %v380_v7, 0.0  ;;  %10667 = vst [vmem:[#allocation13_spill] sm:$0xff] %v8396_v30 }
  0xfb   :  { %v385_v32 = vpop.f32.mrf.mxu1  ;;  %v248_v54 = vadd.f32 %v247_v29, %v143_v2  ;;  %v267_v11 = vmax.f32 %v244_v49, 0.0  ;;  %v395_v49 = vmax.f32 %v8301_v33, 0.0  ;;  %v396_v33 = vmax.f32 %v360_v44, 0.0 }
  0xfc   :  { %v249_v37 = vpop.f32.mrf.mxu0  ;;  %v386_v60 = vadd.f32 %v385_v32, %v143_v2  ;;  %v405_v17 = vmax.f32 %v382_v53, 0.0 }
  0xfd   :  { %v387_v42 = vpop.f32.mrf.mxu1  ;;  %v250_v50 = vadd.f32 %v249_v37, %v143_v2  ;;  %v268_v18 = vmax.f32 %v248_v54, 0.0  ;;  %v8330_v29 = vpack.c.bf16 %v267_v11, %v265_v27  ;;  %v264_v37 = vmax.f32 %v238_v45, 0.0  ;;  %v8384_v54 = vld [vmem:[%s10608_s3] sm:$0xff] }
  0xfe   :  { %v251_v47 = vpop.f32.mrf.mxu0  ;;  %v388_v55 = vadd.f32 %v387_v42, %v143_v2  ;;  %v406_v28 = vmax.f32 %v386_v60, 0.0  ;;  %v263_v2 = vmax.f32 %v8319_v43, 0.0  ;;  %v8337_v42 = vpack.c.bf16 %v405_v17, %v403_v5  ;;  %10666 = vst [vmem:[#allocation12_spill] sm:$0xff] %v8384_v54 }
  0xff   :  { %v252_v51 = vadd.f32 %v251_v47, %v148_v10  ;;  %v389_v52 = vpop.f32.mrf.mxu1  ;;  %v269_v12 = vmax.f32 %v250_v50, 0.0  ;;  %v356_v43 = vadd.f32 %v8285_v62, %v8293_v26  ;;  %v222_v47 = vadd.f32 %v8289_v3, %v8298_v31 }
 0x100   :  { %v390_v56 = vadd.f32 %v389_v52, %v148_v10  ;;  %v253_v57 = vpop.f32.mrf.mxu0  ;;  %v407_v19 = vmax.f32 %v388_v55, 0.0  ;;  %v259_v45 = vmax.f32 %v8304_v34, 0.0  ;;  %v8354_v62 = vpack.c.bf16 %v266_v21, %v264_v37  ;;  %v8389_v55 = vld [vmem:[%s10608_s3 + $0x8] sm:$0xff] }
 0x101   :  { %v254_v61 = vadd.f32 %v253_v57, %v148_v10  ;;  %v391_v1 = vpop.f32.mrf.mxu1  ;;  %v270_v8 = vmax.f32 %v252_v51, 0.0  ;;  %v400_v3 = vmax.f32 %v370_v23, 0.0  ;;  %v8358_v26 = vpack.c.bf16 %v263_v2, %v261_v40 }
 0x102   :  { %v392_v9 = vadd.f32 %v391_v1, %v148_v10  ;;  %v408_v13 = vmax.f32 %v390_v56, 0.0  ;;  %v402_v10 = vmax.f32 %v376_v48, 0.0  ;;  %v262_v48 = vmax.f32 %v8317_v41, 0.0  ;;  %v8401_v56 = vld [vmem:[%s10608_s3 + $0x18] sm:$0xff] }
 0x103   :  { %v271_v16 = vmax.f32 %v254_v61, 0.0  ;;  %v8326_v24 = vpack.c.bf16 %v270_v8, %v268_v18  ;;  %v397_v50 = vmax.f32 %v8307_v35, 0.0  ;;  %v8365_v31 = vpack.c.bf16 %v401_v22, %v399_v15  ;;  %10668 = vst [vmem:[#allocation14_spill] sm:$0xff] %v8401_v56 }
 0x104   :  { %v409_v20 = vmax.f32 %v392_v9, 0.0  ;;  %v8332_v32 = vpack.c.bf16 %v408_v13, %v406_v28  ;;  %v8360_v39 = vpack.c.bf16 %v404_v25, %v402_v10  ;;  %v257_v34 = vmax.f32 %v220_v46, 0.0 }
 0x105   :  { %v8323_v6 = vpack.c.bf16 %v271_v16, %v269_v12  ;;  %v258_v38 = vmax.f32 %v222_v47, 0.0  ;;  %v8370_v41 = vpack.c.bf16 %v262_v48, %v260_v4  ;;  %v394_v51 = vmax.f32 %v356_v43, 0.0 }
 0x106   :  { %v8328_v14 = vpack.c.bf16 %v409_v20, %v407_v19  ;;  %v8373_v52 = vpack.c.bf16 %v259_v45, %v257_v34  ;;  %v8375_v35 = vpack.c.bf16 %v400_v3, %v398_v63  ;;  %v8378_v53 = vpack.c.bf16 %v397_v50, %v395_v49 }
 0x107   :  { %10662 = vst [vmem:[#allocation8_spill] sm:$0xff] %v8323_v6  ;;  %448 = vmatprep.subr.bf16.mxu0 %v8323_v6  ;;  %10664 = vst [vmem:[#allocation10_spill] sm:$0xff] %v8370_v41  ;;  %v8403_v57 = vpack.c.bf16 %v258_v38, %v256_v36  ;;  %v8406_v58 = vpack.c.bf16 %v396_v33, %v394_v51  ;;  %v8410_v59 = vpack.c.bf16 %v8389_v55, %v8384_v54 }
 0x108   :  { %10663 = vst [vmem:[#allocation9_spill] sm:$0xff] %v8328_v14  ;;  %501 = vmatprep.subr.bf16.mxu1 %v8328_v14  ;;  %449 = vmatpush1.bf16.msra.mxu0 %v8326_v24  ;;  %10665 = vst [vmem:[#allocation11_spill] sm:$0xff] %v8373_v52  ;;  %v8415_v60 = vpack.c.bf16 %v8401_v56, %v8396_v30 }
 0x109   :  { %502 = vmatpush1.bf16.msra.mxu1 %v8332_v32  ;;  %450 = vmatprep.subr.bf16.mxu0 %v8330_v29  ;;  %10669 = vst [vmem:[#allocation15_spill] sm:$0xff] %v8403_v57  ;;  %10670 = vst [vmem:[#allocation16_spill] sm:$0xff] %v8406_v58  ;;  %v435_v1 = vsel %vm170_vm0, %v8410_v59, 0 }
 0x10a   :  { %503 = vmatprep.subr.bf16.mxu1 %v8337_v42  ;;  %v438_v61 = vsel %vm170_vm0, %v8415_v60, 0 }
 0x10c   :  { %451 = vmatpush1.bf16.msra.mxu0 %v8354_v62 }
 0x10d   :  { %504 = vmatpush1.bf16.msra.mxu1 %v8360_v39  ;;  %452 = vmatprep.subr.bf16.mxu0 %v8358_v26 }
 0x10e   :  { %505 = vmatprep.subr.bf16.mxu1 %v8365_v31 }
 0x110   :  { %453 = vmatpush1.bf16.msra.mxu0 %v8370_v41 }
 0x111   :  { %506 = vmatpush1.bf16.msra.mxu1 %v8375_v35  ;;  %454 = vmatprep.subr.bf16.mxu0 %v8373_v52 }
 0x112   :  { %507 = vmatprep.subr.bf16.mxu1 %v8378_v53 }
 0x114   :  { %455 = vmatpush1.bf16.msra.mxu0 %v8403_v57 }
 0x115   :  { %508 = vmatpush1.bf16.msra.mxu1 %v8406_v58  ;;  %841 = vmatprep.subr.bf16.mxu0 %v8323_v6 }
 0x116   :  { %7666 = vmatprep.subr.msk.bf16.mxu1 %vm170_vm0, %v8415_v60 }
 0x117   :  { %7176 = vmatmul.mubr.msk.bf16.vlgmr.msra.gmra.mxu0 %vm170_vm0, %v8410_v59 }
 0x118   :  { %7178 = vmatmul.mubr.msk.bf16.vlgmr.msra.gmra.mxu1 %vm170_vm0, %v8410_v59  ;;  %842 = vmatpush1.bf16.xpose.msra.mxu0 %v8326_v24 }
 0x119   :  { %843 = vmatprep.subr.bf16.mxu0 %v8330_v29  ;;  %482 = vmatprep.mubr.bf16.mxu0 %v10612_v0 }
 0x11a   :  { %535 = vmatprep.mubr.bf16.mxu1 %v10612_v0  ;;  %7435 = vmatpush3.bf16.xpose.msra.mxu1 %v438_v61 }
 0x11b   :  { %7667 = vmatprep.subr.msk.bf16.mxu1 %vm170_vm0, %v8410_v59 }
 0x11f   :  { %7177 = vmatmul.mubr.msk.bf16.gmra.mxu0 %vm170_vm0, %v8415_v60 }
 0x120   :  { %7179 = vmatmul.mubr.msk.bf16.gmra.mxu1 %vm170_vm0, %v8415_v60  ;;  %844 = vmatpush1.bf16.xpose.msra.mxu0 %v8354_v62 }
 0x121   :  { %845 = vmatprep.subr.bf16.mxu0 %v8358_v26  ;;  %7438 = vmatprep.mubr.msk.bf16.mxu1 %vm170_vm0, %v8410_v59 }
 0x122   :  { %7437 = vmatpush3.bf16.xpose.msra.mxu1 %v435_v1 }
 0x128   :  { %846 = vmatpush1.bf16.xpose.msra.mxu0 %v8370_v41 }
 0x129   :  { %847 = vmatprep.subr.bf16.mxu0 %v8373_v52  ;;  %7439 = vmatmul.mubr.msk.bf16.vlgmr.msra.gmra.mxu1 %vm170_vm0, %v8415_v60 }
 0x12a   :  { %792 = vmatprep.mubr.bf16.mxu1 %v10612_v0 }
 0x130   :  { %848 = vmatpush1.bf16.xpose.msra.mxu0 %v8403_v57 }
 0x131   :  { %1131 = vmatprep.subr.bf16.mxu0 %v8328_v14 }
 0x1d7   :  { %v8450_v5 = vpop.f32.mrf.mxu0 }
 0x1d8   :  { %v8452_v7 = vpop.f32.mrf.mxu1 }
 0x1d9   :  { %v8454_v8 = vpop.f32.mrf.mxu0 }
 0x1da   :  { %v8456_v9 = vpop.f32.mrf.mxu1 }
 0x1db   :  { %v8458_v11 = vpop.f32.mrf.mxu0 }
 0x1dc   :  { %v8460_v12 = vpop.f32.mrf.mxu1 }
 0x1dd   :  { %v8462_v13 = vpop.f32.mrf.mxu0 }
 0x1de   :  { %v8464_v16 = vpop.f32.mrf.mxu1 }
 0x1df   :  { %v8466_v17 = vpop.f32.mrf.mxu0 }
 0x1e0   :  { %v8468_v18 = vpop.f32.mrf.mxu1  ;;  %v546_v27 = vmax.f32 %v8450_v5, %v8466_v17 }
 0x1e1   :  { %v8470_v19 = vpop.f32.mrf.mxu0 }
 0x1e2   :  { %v8472_v20 = vpop.f32.mrf.mxu1  ;;  %v555_v25 = vmax.f32 %v8454_v8, %v8470_v19 }
 0x1e3   :  { %v8474_v23 = vpop.f32.mrf.mxu0  ;;  %v625_v21 = vmax.f32 %v8456_v9, %v8472_v20 }
 0x1e4   :  { %v547_v28 = vmax.f32 %v8458_v11, %v8474_v23  ;;  %v8480_v2 = vpop.f32.mrf.mxu1 }
 0x1e5   :  { %v8484_v10 = vpop.f32.mrf.mxu0 }
 0x1e6   :  { %v548_v15 = vmax.f32 %v546_v27, %v547_v28  ;;  %v556_v22 = vmax.f32 %v8462_v13, %v8484_v10  ;;  %v8490_v37 = vpop.f32.mrf.mxu1 }
 0x1e7   :  { %v626_v43 = vmax.f32 %v8464_v16, %v8490_v37 }
 0x1e8   :  { %v549_v46 = vrot.slane %v548_v15, 4  ;;  %v557_v47 = vmax.f32 %v555_v25, %v556_v22 }
 0x1e9   :  { %v627_v40 = vmax.f32 %v625_v21, %v626_v43  ;;  %v7440_v54 = vpop.f32.mrf.mxu1 }
 0x1ea   :  { %v550_v44 = vmax.f32 %v548_v15, %v549_v46  ;;  %v558_v45 = vrot.slane %v557_v47, 4 }
 0x1eb   :  { %v628_v48 = vrot.slane %v627_v40, 4 }
 0x1ec   :  { %v551_v63 = vrot.slane %v550_v44, 2  ;;  %v559_v3 = vmax.f32 %v557_v47, %v558_v45 }
 0x1ed   :  { %v629_v49 = vmax.f32 %v627_v40, %v628_v48 }
 0x1ee   :  { %v552_v50 = vmax.f32 %v550_v44, %v551_v63  ;;  %v560_v4 = vrot.slane %v559_v3, 2 }
 0x1ef   :  { %v630_v34 = vrot.slane %v629_v49, 2 }
 0x1f0   :  { %v553_v38 = vrot.slane %v552_v50, 1  ;;  %v561_v51 = vmax.f32 %v559_v3, %v560_v4 }
 0x1f1   :  { %v631_v33 = vmax.f32 %v629_v49, %v630_v34 }
 0x1f2   :  { %v554_v36 = vmax.f32 %v552_v50, %v553_v38  ;;  %v562_v61 = vrot.slane %v561_v51, 1 }
 0x1f3   :  { %v632_v21 = vrot.slane %v631_v33, 1 }
 0x1f4   :  { %v564_v1 = vsub.f32 %v8450_v5, %v554_v36  ;;  %v566_v27 = vsub.f32 %v8458_v11, %v554_v36  ;;  %v568_v28 = vsub.f32 %v8466_v17, %v554_v36  ;;  %v570_v25 = vsub.f32 %v8474_v23, %v554_v36 }
 0x1f5   :  { %v563_v43 = vmax.f32 %v561_v51, %v562_v61  ;;  %v633_v40 = vmax.f32 %v631_v33, %v632_v21 }
 0x1f6   :  { %v572_v15 = vmul.f32 1.442695, %v564_v1  ;;  %v576_v22 = vmul.f32 1.442695, %v566_v27  ;;  %v580_v46 = vmul.f32 1.442695, %v568_v28 }
 0x1f7   :  { %v565_v47 = vsub.f32 %v8454_v8, %v563_v43  ;;  %v584_v44 = vmul.f32 1.442695, %v570_v25  ;;  %v567_v45 = vsub.f32 %v8462_v13, %v563_v43  ;;  %v569_v48 = vsub.f32 %v8470_v19, %v563_v43 }
 0x1f8   :  { %7711 = vpow2.f32 %v572_v15  ;;  %v571_v63 = vsub.f32 %v8484_v10, %v563_v43  ;;  %v635_v49 = vsub.f32 %v8456_v9, %v633_v40  ;;  %v637_v4 = vsub.f32 %v8464_v16, %v633_v40 }
 0x1f9   :  { %7713 = vpow2.f32 %v576_v22  ;;  %v574_v3 = vmul.f32 1.442695, %v565_v47  ;;  %v578_v50 = vmul.f32 1.442695, %v567_v45  ;;  %v582_v34 = vmul.f32 1.442695, %v569_v48 }
 0x1fa   :  { %7715 = vpow2.f32 %v580_v46  ;;  %v639_v38 = vsub.f32 %v8472_v20, %v633_v40  ;;  %v586_v51 = vmul.f32 1.442695, %v571_v63  ;;  %v641_v33 = vsub.f32 %v8490_v37, %v633_v40 }
 0x1fb   :  { %7717 = vpow2.f32 %v584_v44  ;;  %v644_v36 = vmul.f32 1.442695, %v635_v49  ;;  %v648_v61 = vmul.f32 1.442695, %v637_v4 }
 0x1fc   :  { %7719 = vpow2.f32 %v574_v3  ;;  %v652_v1 = vmul.f32 1.442695, %v639_v38  ;;  %v656_v27 = vmul.f32 1.442695, %v641_v33 }
 0x1fd   :  { %7721 = vpow2.f32 %v578_v50 }
 0x1fe   :  { %7723 = vpow2.f32 %v582_v34 }
 0x1ff   :  { %7725 = vpow2.f32 %v586_v51 }
 0x200   :  { %7727 = vpow2.f32 %v644_v36 }
 0x201   :  { %7729 = vpow2.f32 %v648_v61 }
 0x202   :  { %7731 = vpow2.f32 %v652_v1 }
 0x203   :  { %7733 = vpow2.f32 %v656_v27 }
 0x205   :  { %v7712_v28 = vpop.eup %7711 }
 0x206   :  { %v7714_v21 = vpop.eup %7713 }
 0x207   :  { %v588_v25 = vadd.f32 %v7714_v21, %v7712_v28  ;;  %v7716_v15 = vpop.eup %7715 }
 0x208   :  { %v7718_v43 = vpop.eup %7717 }
 0x209   :  { %v589_v22 = vadd.f32 %v7716_v15, %v588_v25  ;;  %v7720_v47 = vpop.eup %7719 }
 0x20a   :  { %v7722_v44 = vpop.eup %7721 }
 0x20b   :  { %v590_v46 = vadd.f32 %v7718_v43, %v589_v22  ;;  %v7724_v45 = vpop.eup %7723  ;;  %v597_v63 = vadd.f32 %v7722_v44, %v7720_v47 }
 0x20c   :  { %v7726_v3 = vpop.eup %7725 }
 0x20d   :  { %v591_v40 = vrot.slane %v590_v46, 4  ;;  %v7728_v49 = vpop.eup %7727  ;;  %v598_v4 = vadd.f32 %v7724_v45, %v597_v63 }
 0x20e   :  { %v7730_v34 = vpop.eup %7729 }
 0x20f   :  { %v592_v48 = vadd.f32 %v591_v40, %v590_v46  ;;  %v8506_v38 = vpop.eup %7731  ;;  %v599_v33 = vadd.f32 %v7726_v3, %v598_v4  ;;  %v667_v36 = vadd.f32 %v7730_v34, %v7728_v49 }
 0x210   :  { %v8508_v61 = vpop.eup %7733 }
 0x211   :  { %v593_v50 = vrot.slane %v592_v48, 2  ;;  %v600_v1 = vrot.slane %v599_v33, 4  ;;  %v668_v27 = vadd.f32 %v8506_v38, %v667_v36 }
 0x213   :  { %v594_v51 = vadd.f32 %v593_v50, %v592_v48  ;;  %v601_v22 = vadd.f32 %v600_v1, %v599_v33  ;;  %v669_v46 = vadd.f32 %v8508_v61, %v668_v27  ;;  %v728_v1 = vpop.f32.mrf.mxu1 }
 0x215   :  { %v595_v25 = vrot.slane %v594_v51, 1  ;;  %v602_v40 = vrot.slane %v601_v22, 2  ;;  %v670_v0 = vrot.slane %v669_v46, 4 }
 0x217   :  { %v596_v14 = vadd.f32 %v595_v25, %v594_v51  ;;  %v603_v30 = vadd.f32 %v602_v40, %v601_v22  ;;  %v671_v63 = vadd.f32 %v670_v0, %v669_v46 }
 0x219   :  { %v604_v56 = vrot.slane %v603_v30, 1  ;;  %v672_v57 = vrot.slane %v671_v63, 2  ;;  %7735 = vrcp.f32 %v596_v14 }
 0x21b   :  { %v605_v48 = vadd.f32 %v604_v56, %v603_v30  ;;  %v673_v50 = vadd.f32 %v672_v57, %v671_v63 }
 0x21d   :  { %7737 = vrcp.f32 %v605_v48  ;;  %v674_v4 = vrot.slane %v673_v50, 1 }
 0x21f   :  { %v675_v52 = vadd.f32 %v674_v4, %v673_v50 }
 0x221   :  { %7739 = vrcp.f32 %v675_v52  ;;  %v7441_v52 = vpop.f32.mrf.mxu1 }
 0x226   :  { %v7736_v36 = vpop.eup %7735 }
 0x227   :  { %v8512_v33 = vmul.f32 %v7736_v36, %v7718_v43  ;;  %v8514_v27 = vmul.f32 %v7736_v36, %v7716_v15  ;;  %v608_v43 = vmul.f32 %v7736_v36, %v7712_v28  ;;  %v610_v22 = vmul.f32 %v7736_v36, %v7714_v21 }
 0x228   :  { %v10671_v28 = vmov 0   ;;  %v8539_v21 = vpack.c.bf16 %v7441_v52, %v7440_v54 }
 0x229   :  { %v688_v57 = vpack.c.bf16 %v8512_v33, %v8514_v27 }
 0x22a   :  { %v7738_v41 = vpop.eup %7737 }
 0x22b   :  { %v8516_v51 = vmul.f32 %v7738_v41, %v7726_v3  ;;  %v8518_v0 = vmul.f32 %v7738_v41, %v7724_v45  ;;  %v609_v25 = vmul.f32 %v7738_v41, %v7720_v47  ;;  %v611_v14 = vmul.f32 %v7738_v41, %v7722_v44  ;;  %v731_v47 = vpop.f32.mrf.mxu1 }
 0x22c   :  { %v686_v44 = vpack.c.bf16 %v610_v22, %v608_v43  ;;  %v8534_v46 = vpack.c.bf16 %v731_v47, %v728_v1 }
 0x22d   :  { %v689_v30 = vpack.c.bf16 %v8516_v51, %v8518_v0  ;;  %v687_v15 = vpack.c.bf16 %v611_v14, %v609_v25 }
 0x22e   :  { %v8522_v56 = vpop.eup %7739 }
 0x22f   :  { %772 = vmatprep.subr.bf16.mxu1 %v689_v30  ;;  %v8527_v3 = vmul.f32 %v8522_v56, %v7728_v49  ;;  %v8530_v45 = vmul.f32 %v8522_v56, %v7730_v34 }
 0x230   :  { %773 = vmatpush1.bf16.msra.mxu1 %v688_v57 }
 0x231   :  { %774 = vmatprep.subr.bf16.mxu1 %v687_v15  ;;  %v691_v41 = vpack.c.bf16 %v8530_v45, %v8527_v3 }
 0x234   :  { %775 = vmatpush1.bf16.msra.mxu1 %v686_v44 }
 0x237   :  { %7182 = vmatmul.mubr.msk.bf16.vlgmr.msra.gmra.mxu1 %vm753_vm1, %v8534_v46 }
 0x238   :  { %802 = vmatprep.mubr.bf16.mxu1 %v10671_v28 }
 0x23f   :  { %7183 = vmatmul.mubr.msk.bf16.gmra.mxu1 %vm753_vm1, %v8539_v21 }
 0x2f7   :  { %v794_v49 = vpop.f32.mrf.mxu1 }
 0x2f8   :  { %v795_v34 = vadd.f32 1e-06, %v794_v49 }
 0x2f9   :  { %v796_v40 = vpop.f32.mrf.mxu1 }
 0x2fa   :  { %v797_v63 = vadd.f32 1e-06, %v796_v40  ;;  %7741 = vrcp.f32 %v795_v34  ;;  %v746_v34 = vmul.f32 %v609_v25, %v8454_v8 }
 0x2fb   :  { %v798_v48 = vpop.f32.mrf.mxu1 }
 0x2fc   :  { %7743 = vrcp.f32 %v797_v63  ;;  %v799_v50 = vadd.f32 1e-06, %v798_v48  ;;  %v745_v63 = vmul.f32 %v608_v43, %v8450_v5 }
 0x2fd   :  { %v800_v4 = vpop.f32.mrf.mxu1 }
 0x2fe   :  { %v801_v36 = vadd.f32 1e-06, %v800_v4  ;;  %7745 = vrcp.f32 %v799_v50 }
 0x2ff   :  { %v804_v1 = vpop.f32.mrf.mxu1 }
 0x300   :  { %7747 = vrcp.f32 %v801_v36  ;;  %v805_v30 = vadd.f32 1e-06, %v804_v1  ;;  %v748_v36 = vmul.f32 %v611_v14, %v8462_v13  ;;  %v750_v13 = vmul.f32 %v8518_v0, %v8470_v19 }
 0x301   :  { %v806_v57 = vpop.f32.mrf.mxu1  ;;  %v751_v19 = vmul.f32 %v8512_v33, %v8474_v23  ;;  %v8602_v23 = vmul.f32 %v8522_v56, %v8508_v61  ;;  %v617_v61 = vmax.f32 %v8460_v12, %v8480_v2 }
 0x302   :  { %v807_v54 = vadd.f32 1e-06, %v806_v57  ;;  %7749 = vrcp.f32 %v805_v30  ;;  %v747_v30 = vmul.f32 %v610_v22, %v8458_v11  ;;  %v749_v11 = vmul.f32 %v8514_v27, %v8466_v17 }
 0x303   :  { %v808_v52 = vpop.f32.mrf.mxu1 }
 0x304   :  { %7751 = vrcp.f32 %v807_v54  ;;  %v809_v15 = vadd.f32 1e-06, %v808_v52  ;;  %v752_v54 = vmul.f32 %v8516_v51, %v8484_v10  ;;  %v8607_v10 = vmul.f32 %v8522_v56, %v8506_v38 }
 0x305   :  { %v810_v47 = vpop.f32.mrf.mxu1  ;;  %v616_v38 = vmax.f32 %v8452_v7, %v8468_v18 }
 0x306   :  { %v811_v44 = vadd.f32 1e-06, %v810_v47  ;;  %7753 = vrcp.f32 %v809_v15  ;;  %v693_v33 = vpack.c.bf16 %v8602_v23, %v8607_v10 }
 0x307   :  { %v7742_v49 = vpop.eup %7741  ;;  %v618_v51 = vmax.f32 %v616_v38, %v617_v61 }
 0x308   :  { %7755 = vrcp.f32 %v811_v44  ;;  %v8547_v50 = vmul.f32 %v7742_v49, %v745_v63 }
 0x309   :  { %v7744_v40 = vpop.eup %7743  ;;  %v619_v0 = vrot.slane %v618_v51, 4 }
 0x30a   :  { %v8545_v48 = vmul.f32 %v7744_v40, %v746_v34 }
 0x30b   :  { %v7746_v4 = vpop.eup %7745  ;;  %v620_v56 = vmax.f32 %v618_v51, %v619_v0 }
 0x30c   :  { %865 = vmatprep.mubr.f32.mxu0 %v8545_v48  ;;  %950 = vmatprep.mubr.f32.mxu1 %v8545_v48  ;;  %v8558_v5 = vmul.f32 %v7746_v4, %v747_v30 }
 0x30d   :  { %v7748_v1 = vpop.eup %7747  ;;  %866 = vmatmul.mubr.f32.vlgmr.msra.gmra.mxu0 %v8547_v50  ;;  %v621_v15 = vrot.slane %v620_v56, 2 }
 0x30e   :  { %1132 = vmatpush1.bf16.xpose.msra.mxu0 %v8332_v32  ;;  %v8555_v8 = vmul.f32 %v7748_v1, %v748_v36 }
 0x30f   :  { %1133 = vmatprep.subr.bf16.mxu0 %v8337_v42  ;;  %v7750_v25 = vpop.eup %7749  ;;  %v622_v47 = vmax.f32 %v620_v56, %v621_v15 }
 0x310   :  { %870 = vmatprep.mubr.f32.mxu0 %v8555_v8  ;;  %v8568_v22 = vmul.f32 %v7750_v25, %v749_v11 }
 0x311   :  { %v7752_v14 = vpop.eup %7751  ;;  %871 = vmatmul.mubr.f32.gmra.mxu0 %v8558_v5  ;;  %v623_v44 = vrot.slane %v622_v47, 1 }
 0x312   :  { %v8566_v43 = vmul.f32 %v7752_v14, %v750_v13 }
 0x313   :  { %v7754_v57 = vpop.eup %7753  ;;  %v624_v49 = vmax.f32 %v622_v47, %v623_v44 }
 0x314   :  { %875 = vmatprep.mubr.f32.mxu0 %v8566_v43  ;;  %v8580_v27 = vmul.f32 %v7754_v57, %v751_v19 }
 0x315   :  { %v7756_v52 = vpop.eup %7755  ;;  %876 = vmatmul.mubr.f32.gmra.mxu0 %v8568_v22  ;;  %v634_v34 = vsub.f32 %v8452_v7, %v624_v49  ;;  %v636_v40 = vsub.f32 %v8460_v12, %v624_v49  ;;  %v638_v4 = vsub.f32 %v8468_v18, %v624_v49  ;;  %v640_v1 = vsub.f32 %v8480_v2, %v624_v49 }
 0x316   :  { %1134 = vmatpush1.bf16.xpose.msra.mxu0 %v8360_v39  ;;  %v8577_v17 = vmul.f32 %v7756_v52, %v752_v54 }
 0x317   :  { %1135 = vmatprep.subr.bf16.mxu0 %v8365_v31  ;;  %v642_v63 = vmul.f32 1.442695, %v634_v34  ;;  %v646_v36 = vmul.f32 1.442695, %v636_v40  ;;  %v650_v30 = vmul.f32 1.442695, %v638_v4 }
 0x318   :  { %880 = vmatprep.mubr.f32.mxu0 %v8577_v17  ;;  %910 = vmatprep.subr.mxu1 %v8577_v17  ;;  %v654_v25 = vmul.f32 1.442695, %v640_v1 }
 0x319   :  { %881 = vmatmul.mubr.f32.gmra.mxu0 %v8580_v27  ;;  %911 = vmatpush1.xpose.msra.mxu1 %v8580_v27  ;;  %7757 = vpow2.f32 %v642_v63 }
 0x31a   :  { %912 = vmatprep.subr.mxu1 %v8566_v43  ;;  %7759 = vpow2.f32 %v646_v36 }
 0x31b   :  { %7761 = vpow2.f32 %v650_v30 }
 0x31c   :  { %7763 = vpow2.f32 %v654_v25 }
 0x31d   :  { %913 = vmatpush1.xpose.msra.mxu1 %v8568_v22 }
 0x31e   :  { %1136 = vmatpush1.bf16.xpose.msra.mxu0 %v8375_v35  ;;  %914 = vmatprep.subr.mxu1 %v8555_v8 }
 0x31f   :  { %1137 = vmatprep.subr.bf16.mxu0 %v8378_v53 }
 0x321   :  { %915 = vmatpush1.xpose.msra.mxu1 %v8558_v5 }
 0x322   :  { %916 = vmatprep.subr.mxu1 %v8545_v48 }
 0x325   :  { %917 = vmatpush1.xpose.msra.mxu1 %v8547_v50 }
 0x326   :  { %1138 = vmatpush1.bf16.xpose.msra.mxu0 %v8406_v58  ;;  %7442 = vmatprep.subr.bf16.mxu1 %v8415_v60  ;;  %v7758_v13 = vpop.eup %7757 }
 0x327   :  { %1346 = vmatprep.subr.bf16.mxu0 %v8323_v6  ;;  %v7760_v14 = vpop.eup %7759 }
 0x328   :  { %951 = vmatmul.mubr.f32.vlgmr.msra.gmra.mxu1 %v8547_v50  ;;  %v658_v11 = vadd.f32 %v7760_v14, %v7758_v13  ;;  %v7762_v57 = vpop.eup %7761 }
 0x329   :  { %955 = vmatprep.mubr.f32.mxu1 %v8555_v8  ;;  %7443 = vmatpush3.bf16.msra.mxu1 %v8415_v60  ;;  %v7764_v52 = vpop.eup %7763 }
 0x32a   :  { %7444 = vmatprep.subr.bf16.mxu1 %v8410_v59  ;;  %v659_v54 = vadd.f32 %v7762_v57, %v658_v11 }
 0x32c   :  { %956 = vmatmul.mubr.f32.gmra.mxu1 %v8558_v5  ;;  %v660_v19 = vadd.f32 %v7764_v52, %v659_v54 }
 0x32d   :  { %960 = vmatprep.mubr.f32.mxu1 %v8566_v43  ;;  %7445 = vmatpush3.bf16.msra.mxu1 %v8410_v59 }
 0x32e   :  { %1062 = vmatprep.subr.bf16.mxu1 %v693_v33  ;;  %v661_v33 = vrot.slane %v660_v19, 4 }
 0x330   :  { %961 = vmatmul.mubr.f32.gmra.mxu1 %v8568_v22  ;;  %v662_v51 = vadd.f32 %v661_v33, %v660_v19 }
 0x331   :  { %965 = vmatprep.mubr.f32.mxu1 %v8577_v17 }
 0x332   :  { %v663_v15 = vrot.slane %v662_v51, 2 }
 0x334   :  { %966 = vmatmul.mubr.f32.gmra.mxu1 %v8580_v27  ;;  %v664_v49 = vadd.f32 %v663_v15, %v662_v51 }
 0x336   :  { %v665_v63 = vrot.slane %v664_v49, 1 }
 0x338   :  { %v666_v4 = vadd.f32 %v665_v63, %v664_v49 }
 0x33a   :  { %7765 = vrcp.f32 %v666_v4 }
 0x347   :  { %v7766_v19 = vpop.eup %7765 }
 0x348   :  { %v8636_v51 = vmul.f32 %v7766_v19, %v7762_v57  ;;  %v680_v63 = vmul.f32 %v7766_v19, %v7760_v14 }
 0x3cd   :  { %v8625_v38 = vpop.f32.mrf.mxu0 }
 0x3cf   :  { %v869_v61 = vpop.f32.mrf.mxu0 }
 0x3d0   :  { %v8634_v61 = vmul.f32 %v7766_v19, %v7764_v52 }
 0x3d1   :  { %v8627_v0 = vpop.f32.mrf.mxu0 }
 0x3d2   :  { %v692_v49 = vpack.c.bf16 %v8634_v61, %v8636_v51 }
 0x3d3   :  { %v874_v56 = vpop.f32.mrf.mxu0 }
 0x3d5   :  { %v8629_v47 = vpop.f32.mrf.mxu0 }
 0x3d7   :  { %v879_v44 = vpop.f32.mrf.mxu0 }
 0x3d9   :  { %v8631_v34 = vpop.f32.mrf.mxu0 }
 0x3db   :  { %v884_v40 = vpop.f32.mrf.mxu0 }
 0x3dc   :  { %v678_v40 = vmul.f32 %v7766_v19, %v7758_v13 }
 0x3de   :  { %v690_v52 = vpack.c.bf16 %v680_v63, %v678_v40 }
 0x3e8   :  { %v952_v36 = vpop.f32.mrf.mxu1 }
 0x3ea   :  { %v954_v1 = vpop.f32.mrf.mxu1 }
 0x3ec   :  { %v957_v30 = vpop.f32.mrf.mxu1 }
 0x3ed   :  { %v971_v25 = vpack.c.bf16 %v957_v30, %v952_v36 }
 0x3ee   :  { %v959_v11 = vpop.f32.mrf.mxu1 }
 0x3ef   :  { %7446 = vmatprep.mubr.msk.bf16.mxu1 %vm753_vm1, %v971_v25 }
 0x3f0   :  { %v962_v54 = vpop.f32.mrf.mxu1 }
 0x3f2   :  { %v964_v33 = vpop.f32.mrf.mxu1 }
 0x3f4   :  { %v967_v56 = vpop.f32.mrf.mxu1 }
 0x3f5   :  { %v972_v15 = vpack.c.bf16 %v967_v56, %v962_v54 }
 0x3f6   :  { %v969_v44 = vpop.f32.mrf.mxu1 }
 0x3f7   :  { %7447 = vmatmul.mubr.msk.bf16.vlgmr.msra.gmra.mxu1 %vm753_vm1, %v972_v15 }
 0x3f8   :  { %1063 = vmatpush1.bf16.msra.mxu1 %v692_v49  ;;  %1082 = vmatprep.mubr.bf16.mxu1 %v10671_v28 }
 0x3f9   :  { %1064 = vmatprep.subr.bf16.mxu1 %v691_v41 }
 0x3fc   :  { %1065 = vmatpush1.bf16.msra.mxu1 %v690_v52 }
 0x3ff   :  { %7186 = vmatmul.mubr.msk.bf16.vlgmr.msra.gmra.mxu1 %vm753_vm1, %v8534_v46 }
 0x400   :  { %1092 = vmatprep.mubr.bf16.mxu1 %v10671_v28 }
 0x407   :  { %7187 = vmatmul.mubr.msk.bf16.gmra.mxu1 %vm753_vm1, %v8539_v21 }
 0x4b7   :  { %v7448_v57 = vpop.f32.mrf.mxu1 }
 0x4b9   :  { %v1017_v4 = vpop.f32.mrf.mxu1 }
 0x4ba   :  { %v1018_v52 = vadd.f32 1e-06, %v1017_v4  ;;  %v1045_v4 = vmul.f32 %v8530_v45, %v8464_v16  ;;  %v1047_v45 = vmul.f32 %v8607_v10, %v8472_v20  ;;  %v1049_v20 = vmul.f32 %v8602_v23, %v8490_v37  ;;  %v10674_v23 = vld [vmem:[#allocation11_spill] sm:$0xff] }
 0x4bb   :  { %v7449_v13 = vpop.f32.mrf.mxu1 }
 0x4bd   :  { %v1020_v14 = vpop.f32.mrf.mxu1 }
 0x4be   :  { %v1021_v21 = vadd.f32 1e-06, %v1020_v14 }
 0x4bf   :  { %v1084_v36 = vpop.f32.mrf.mxu1 }
 0x4c0   :  { %v1085_v1 = vadd.f32 1e-06, %v1084_v36 }
 0x4c1   :  { %v1086_v30 = vpop.f32.mrf.mxu1 }
 0x4c2   :  { %v1087_v25 = vadd.f32 1e-06, %v1086_v30  ;;  %7767 = vrcp.f32 %v1085_v1 }
 0x4c3   :  { %v1088_v41 = vpop.f32.mrf.mxu1 }
 0x4c4   :  { %7769 = vrcp.f32 %v1087_v25  ;;  %v1089_v11 = vadd.f32 1e-06, %v1088_v41  ;;  %v1043_v25 = vmul.f32 %v8527_v3, %v8456_v9  ;;  %v1044_v9 = vmul.f32 %v680_v63, %v8460_v12 }
 0x4c5   :  { %v1090_v54 = vpop.f32.mrf.mxu1  ;;  %v1026_v3 = vadd.f32 1e-06, %v7448_v57  ;;  %v1046_v12 = vmul.f32 %v8636_v51, %v8468_v18  ;;  %v1048_v18 = vmul.f32 %v8634_v61, %v8480_v2  ;;  %v974_v51 = vmul.f32 %v8627_v0, %v8389_v55 }
 0x4c6   :  { %v1091_v19 = vadd.f32 1e-06, %v1090_v54  ;;  %7771 = vrcp.f32 %v1089_v11  ;;  %v1042_v11 = vmul.f32 %v678_v40, %v8452_v7  ;;  %v1029_v54 = vadd.f32 1e-06, %v7449_v13 }
 0x4c7   :  { %v1094_v46 = vpop.f32.mrf.mxu1  ;;  %v832_v2 = vpack.c.bf16 %v8577_v17, %v8566_v43 }
 0x4c8   :  { %7773 = vrcp.f32 %v1091_v19  ;;  %v1095_v33 = vadd.f32 1e-06, %v1094_v46 }
 0x4c9   :  { %v1096_v56 = vpop.f32.mrf.mxu1 }
 0x4ca   :  { %v1097_v15 = vadd.f32 1e-06, %v1096_v56  ;;  %7775 = vrcp.f32 %v1095_v33 }
 0x4cb   :  { %v1098_v44 = vpop.f32.mrf.mxu1 }
 0x4cc   :  { %7777 = vrcp.f32 %v1097_v15  ;;  %v1099_v49 = vadd.f32 1e-06, %v1098_v44  ;;  %v10672_v44 = vld [vmem:[#allocation10_spill] sm:$0xff] }
 0x4cd   :  { %v1100_v36 = vpop.f32.mrf.mxu1  ;;  %7779 = vrcp.f32 %v1021_v21 }
 0x4ce   :  { %v1101_v1 = vadd.f32 1e-06, %v1100_v36  ;;  %7781 = vrcp.f32 %v1099_v49 }
 0x4cf   :  { %v7768_v30 = vpop.eup %7767 }
 0x4d0   :  { %7783 = vrcp.f32 %v1101_v1  ;;  %v8655_v19 = vmul.f32 %v7768_v30, %v1042_v11  ;;  %v831_v30 = vpack.c.bf16 %v8580_v27, %v8568_v22  ;;  %v830_v11 = vpack.c.bf16 %v8555_v8, %v8545_v48 }
 0x4d1   :  { %v7770_v41 = vpop.eup %7769  ;;  %7785 = vrcp.f32 %v1018_v52  ;;  %v10673_v52 = vld [vmem:[#allocation12_spill] sm:$0xff] }
 0x4d2   :  { %v8653_v14 = vmul.f32 %v7770_v41, %v1043_v25  ;;  %7787 = vrcp.f32 %v1029_v54  ;;  %v973_v36 = vmul.f32 %v8625_v38, %v10673_v52  ;;  %v10675_v38 = vld [vmem:[#allocation15_spill] sm:$0xff]  ;;  %v10676_v25 = vld [vmem:[#allocation14_spill] sm:$0xff] }
 0x4d3   :  { %v7772_v46 = vpop.eup %7771  ;;  %7789 = vrcp.f32 %v1026_v3  ;;  %v976_v41 = vmul.f32 %v8631_v34, %v10676_v25  ;;  %v829_v34 = vpack.c.bf16 %v8558_v5, %v8547_v50 }
 0x4d4   :  { %1155 = vmatprep.mubr.f32.mxu0 %v8653_v14  ;;  %1240 = vmatprep.mubr.f32.mxu1 %v8653_v14  ;;  %v8667_v40 = vmul.f32 %v7772_v46, %v1044_v9  ;;  %v10677_v46 = vld [vmem:[#allocation13_spill] sm:$0xff] }
 0x4d5   :  { %v7774_v33 = vpop.eup %7773  ;;  %1156 = vmatmul.mubr.f32.vlgmr.msra.gmra.mxu0 %v8655_v19 }
 0x4d6   :  { %1347 = vmatpush1.bf16.msra.mxu0 %v8326_v24  ;;  %v8664_v7 = vmul.f32 %v7774_v33, %v1045_v4  ;;  %v975_v4 = vmul.f32 %v8629_v47, %v10677_v46 }
 0x4d7   :  { %1348 = vmatprep.subr.bf16.mxu0 %v8330_v29  ;;  %v7776_v16 = vpop.eup %7775 }
 0x4d8   :  { %1160 = vmatprep.mubr.f32.mxu0 %v8664_v7  ;;  %v8679_v56 = vmul.f32 %v7776_v16, %v1046_v12 }
 0x4d9   :  { %v7778_v13 = vpop.eup %7777  ;;  %1161 = vmatmul.mubr.f32.gmra.mxu0 %v8667_v40 }
 0x4da   :  { %1349 = vmatpush1.bf16.msra.mxu0 %v8354_v62  ;;  %v8676_v63 = vmul.f32 %v7778_v13, %v1047_v45  ;;  %v7780_v57 = vpop.eup %7779 }
 0x4db   :  { %1350 = vmatprep.subr.bf16.mxu0 %v8358_v26  ;;  %v7782_v21 = vpop.eup %7781  ;;  %v8694_v37 = vmul.f32 %v7780_v57, %v974_v51 }
 0x4dc   :  { %1165 = vmatprep.mubr.f32.mxu0 %v8676_v63  ;;  %v8697_v1 = vmul.f32 %v7782_v21, %v1048_v18 }
 0x4dd   :  { %v7784_v10 = vpop.eup %7783  ;;  %1166 = vmatmul.mubr.f32.gmra.mxu0 %v8679_v56 }
 0x4de   :  { %v7786_v15 = vpop.eup %7785  ;;  %1351 = vmatpush1.bf16.msra.mxu0 %v10672_v44  ;;  %v8690_v49 = vmul.f32 %v7784_v10, %v1049_v20 }
 0x4df   :  { %1352 = vmatprep.subr.bf16.mxu0 %v10674_v23  ;;  %v8701_v55 = vmul.f32 %v7786_v15, %v973_v36  ;;  %v7788_v61 = vpop.eup %7787 }
 0x4e0   :  { %1170 = vmatprep.mubr.f32.mxu0 %v8690_v49  ;;  %1200 = vmatprep.subr.mxu1 %v8690_v49  ;;  %v7790_v54 = vpop.eup %7789  ;;  %v8726_v33 = vmul.f32 %v7788_v61, %v976_v41  ;;  %v10678_v41 = vld [vmem:[#allocation9_spill] sm:$0xff] }
 0x4e1   :  { %1171 = vmatmul.mubr.f32.gmra.mxu0 %v8697_v1  ;;  %1201 = vmatpush1.xpose.msra.mxu1 %v8697_v1  ;;  %v8712_v0 = vpack.c.bf16 %v8694_v37, %v8701_v55  ;;  %v8731_v9 = vmul.f32 %v7790_v54, %v975_v4 }
 0x4e2   :  { %1353 = vmatpush1.bf16.msra.mxu0 %v10675_v38  ;;  %1202 = vmatprep.subr.mxu1 %v8676_v63 }
 0x4e3   :  { %1468 = vmatprep.subr.bf16.mxu0 %v832_v2  ;;  %1370 = vmatprep.mubr.bf16.mxu0 %v10671_v28  ;;  %v8737_v3 = vpack.c.bf16 %v8726_v33, %v8731_v9  ;;  %v1333_v25 = vsel %vm170_vm0, %v8712_v0, 0 }
 0x4e5   :  { %1203 = vmatpush1.xpose.msra.mxu1 %v8679_v56  ;;  %7190 = vmatmul.mubr.msk.bf16.vlgmr.msra.gmra.mxu0 %vm170_vm0, %v8712_v0 }
 0x4e6   :  { %1469 = vmatpush1.bf16.msra.mxu0 %v831_v30  ;;  %1204 = vmatprep.subr.mxu1 %v8664_v7  ;;  %v1336_v30 = vsel %vm170_vm0, %v8737_v3, 0 }
 0x4e7   :  { %1470 = vmatprep.subr.bf16.mxu0 %v830_v11  ;;  %1380 = vmatprep.mubr.bf16.mxu0 %v10671_v28 }
 0x4e9   :  { %1205 = vmatpush1.xpose.msra.mxu1 %v8667_v40 }
 0x4ea   :  { %1471 = vmatpush1.bf16.msra.mxu0 %v829_v34  ;;  %1206 = vmatprep.subr.mxu1 %v8653_v14 }
 0x4ed   :  { %1207 = vmatpush1.xpose.msra.mxu1 %v8655_v19  ;;  %7191 = vmatmul.mubr.msk.bf16.gmra.mxu0 %vm170_vm0, %v8737_v3 }
 0x4ee   :  { %7450 = vmatprep.subr.bf16.mxu1 %v8415_v60  ;;  %1488 = vmatprep.mubr.bf16.mxu0 %v10671_v28 }
 0x4f0   :  { %1241 = vmatmul.mubr.f32.vlgmr.msra.gmra.mxu1 %v8655_v19 }
 0x4f1   :  { %1245 = vmatprep.mubr.f32.mxu1 %v8664_v7  ;;  %7451 = vmatpush3.bf16.msra.mxu1 %v8415_v60 }
 0x4f2   :  { %7452 = vmatprep.subr.bf16.mxu1 %v8410_v59 }
 0x4f4   :  { %1246 = vmatmul.mubr.f32.gmra.mxu1 %v8667_v40 }
 0x4f5   :  { %1250 = vmatprep.mubr.f32.mxu1 %v8676_v63  ;;  %7453 = vmatpush3.bf16.msra.mxu1 %v8410_v59 }
 0x4f6   :  { %7668 = vmatprep.subr.msk.bf16.mxu1 %vm170_vm0, %v8737_v3 }
 0x4f8   :  { %1251 = vmatmul.mubr.f32.gmra.mxu1 %v8679_v56 }
 0x4f9   :  { %1255 = vmatprep.mubr.f32.mxu1 %v8690_v49 }
 0x4fc   :  { %1256 = vmatmul.mubr.f32.gmra.mxu1 %v8697_v1 }
 0x595   :  { %v1157_v47 = vpop.f32.mrf.mxu0 }
 0x597   :  { %v1159_v16 = vpop.f32.mrf.mxu0 }
 0x599   :  { %v1162_v60 = vpop.f32.mrf.mxu0 }
 0x59b   :  { %v1164_v45 = vpop.f32.mrf.mxu0 }
 0x59d   :  { %v1167_v13 = vpop.f32.mrf.mxu0 }
 0x59f   :  { %v1169_v12 = vpop.f32.mrf.mxu0 }
 0x5a1   :  { %v1172_v57 = vpop.f32.mrf.mxu0 }
 0x5a3   :  { %v1174_v21 = vpop.f32.mrf.mxu0 }
 0x5b0   :  { %v1242_v20 = vpop.f32.mrf.mxu1 }
 0x5b2   :  { %v1244_v10 = vpop.f32.mrf.mxu1 }
 0x5b4   :  { %v1247_v59 = vpop.f32.mrf.mxu1 }
 0x5b5   :  { %v1261_v18 = vpack.c.bf16 %v1247_v59, %v1242_v20 }
 0x5b6   :  { %v1249_v51 = vpop.f32.mrf.mxu1 }
 0x5b7   :  { %7454 = vmatprep.mubr.msk.bf16.mxu1 %vm753_vm1, %v1261_v18  ;;  %v8119_v18 = vld [vmem:[%s10608_s3 + $0x10] sm:$0xff] }
 0x5b8   :  { %v1252_v15 = vpop.f32.mrf.mxu1  ;;  %v1265_v51 = vmul.f32 %v8119_v18, %v1167_v13  ;;  %v1119_v18 = vpack.c.bf16 %v8667_v40, %v8655_v19 }
 0x5ba   :  { %v1254_v52 = vpop.f32.mrf.mxu1 }
 0x5bc   :  { %v1257_v36 = vpop.f32.mrf.mxu1 }
 0x5bd   :  { %v1262_v2 = vpack.c.bf16 %v1257_v36, %v1252_v15  ;;  %v8120_v15 = vld [vmem:[%s10608_s3 + $0x18] sm:$0xff] }
 0x5be   :  { %v1259_v61 = vpop.f32.mrf.mxu1  ;;  %v1266_v52 = vmul.f32 %v8120_v15, %v1172_v57 }
 0x5bf   :  { %7455 = vmatmul.mubr.msk.bf16.vlgmr.msra.gmra.mxu1 %vm753_vm1, %v1262_v2  ;;  %v8121_v61 = vld [vmem:[%s10608_s3] sm:$0xff] }
 0x5c0   :  { %7459 = vmatpush3.bf16.xpose.msra.mxu1 %v1336_v30  ;;  %7462 = vmatprep.mubr.msk.bf16.mxu1 %vm170_vm0, %v8712_v0  ;;  %v1263_v30 = vmul.f32 %v8121_v61, %v1157_v47 }
 0x5c1   :  { %7669 = vmatprep.subr.msk.bf16.mxu1 %vm170_vm0, %v8712_v0 }
 0x5c8   :  { %7461 = vmatpush3.bf16.xpose.msra.mxu1 %v1333_v25  ;;  %v8122_v25 = vld [vmem:[%s10608_s3 + $0x8] sm:$0xff] }
 0x5c9   :  { %1543 = vmatprep.subr.bf16.mxu1 %v10678_v41 }
 0x5cf   :  { %7463 = vmatmul.mubr.msk.bf16.vlgmr.msra.gmra.mxu1 %vm170_vm0, %v8737_v3 }
 0x5d0   :  { %1544 = vmatpush1.bf16.msra.mxu1 %v8332_v32  ;;  %1567 = vmatprep.mubr.bf16.mxu1 %v10671_v28 }
 0x5d1   :  { %1545 = vmatprep.subr.bf16.mxu1 %v8337_v42 }
 0x5d4   :  { %1546 = vmatpush1.bf16.msra.mxu1 %v8360_v39 }
 0x5d5   :  { %1547 = vmatprep.subr.bf16.mxu1 %v8365_v31 }
 0x5d8   :  { %1548 = vmatpush1.bf16.msra.mxu1 %v8375_v35 }
 0x5d9   :  { %1549 = vmatprep.subr.bf16.mxu1 %v8378_v53 }
 0x5dc   :  { %1550 = vmatpush1.bf16.msra.mxu1 %v8406_v58 }
 0x5dd   :  { %1734 = vmatprep.subr.bf16.mxu1 %v8323_v6 }
 0x67f   :  { %v7456_v11 = vpop.f32.mrf.mxu1 }
 0x680   :  { %v1316_v54 = vadd.f32 1e-06, %v7456_v11  ;;  %v1264_v11 = vmul.f32 %v8122_v25, %v1162_v60 }
 0x681   :  { %v1307_v46 = vpop.f32.mrf.mxu1 }
 0x682   :  { %v1308_v4 = vadd.f32 1e-06, %v1307_v46  ;;  %7791 = vrcp.f32 %v1316_v54 }
 0x683   :  { %v7457_v34 = vpop.f32.mrf.mxu1 }
 0x684   :  { %v1319_v16 = vadd.f32 1e-06, %v7457_v34  ;;  %7793 = vrcp.f32 %v1308_v4 }
 0x685   :  { %v1310_v45 = vpop.f32.mrf.mxu1 }
 0x686   :  { %7795 = vrcp.f32 %v1319_v16  ;;  %v1311_v12 = vadd.f32 1e-06, %v1310_v45 }
 0x688   :  { %7797 = vrcp.f32 %v1311_v12 }
 0x68f   :  { %v7464_v21 = vpop.f32.mrf.mxu1  ;;  %v7792_v20 = vpop.eup %7791 }
 0x690   :  { %v8790_v54 = vmul.f32 %v7792_v20, %v1265_v51  ;;  %v1372_v51 = vpop.f32.mrf.mxu0 }
 0x691   :  { %v1425_v10 = vpop.f32.mrf.mxu1  ;;  %v7794_v59 = vpop.eup %7793 }
 0x692   :  { %10679 = vst [vmem:[#allocation10_spill] sm:$0xff] %v8790_v54  ;;  %v8794_v34 = vmul.f32 %v7794_v59, %v1263_v30  ;;  %v1120_v59 = vpack.c.bf16 %v8664_v7, %v8653_v14  ;;  %v1374_v15 = vpop.f32.mrf.mxu0 }
 0x693   :  { %v7796_v36 = vpop.eup %7795  ;;  %v7465_v2 = vpop.f32.mrf.mxu1 }
 0x694   :  { %v8792_v13 = vmul.f32 %v7796_v36, %v1266_v52  ;;  %10681 = vst [vmem:[#allocation11_spill] sm:$0xff] %v8794_v34  ;;  %v1441_v12 = vpack.c.bf16 %v7465_v2, %v7464_v21  ;;  %v1121_v21 = vpack.c.bf16 %v8697_v1, %v8679_v56  ;;  %v1376_v52 = vpop.f32.mrf.mxu0 }
 0x695   :  { %v7798_v46 = vpop.eup %7797  ;;  %v1428_v4 = vpop.f32.mrf.mxu1 }
 0x696   :  { %10680 = vst [vmem:[#allocation12_spill] sm:$0xff] %v8792_v13  ;;  %v8798_v57 = vpack.c.bf16 %v8792_v13, %v8790_v54  ;;  %v8800_v16 = vmul.f32 %v7798_v46, %v1264_v11  ;;  %v1440_v47 = vpack.c.bf16 %v1428_v4, %v1425_v10  ;;  %v1122_v10 = vpack.c.bf16 %v8690_v49, %v8676_v63  ;;  %v1378_v36 = vpop.f32.mrf.mxu0 }
 0x698   :  { %10682 = vst [vmem:[#allocation15_spill] sm:$0xff] %v8800_v16  ;;  %7194 = vmatmul.mubr.msk.bf16.vlgmr.msra.gmra.mxu0 %vm753_vm1, %v1440_v47  ;;  %7670 = vmatprep.subr.msk.bf16.mxu0 %vm170_vm0, %v8798_v57  ;;  %v1533_v60 = vsel %vm170_vm0, %v8798_v57, 0  ;;  %v8809_v45 = vpack.c.bf16 %v8800_v16, %v8794_v34  ;;  %v1382_v2 = vpop.f32.mrf.mxu0 }
 0x699   :  { %7467 = vmatpush3.bf16.xpose.msra.mxu0 %v1533_v60  ;;  %1498 = vmatprep.mubr.bf16.mxu0 %v10671_v28 }
 0x69a   :  { %7196 = vmatmul.mubr.msk.bf16.vlgmr.msra.gmra.mxu1 %vm170_vm0, %v8809_v45  ;;  %7671 = vmatprep.subr.msk.bf16.mxu0 %vm170_vm0, %v8809_v45  ;;  %v1530_v20 = vsel %vm170_vm0, %v8809_v45, 0  ;;  %v1384_v61 = vpop.f32.mrf.mxu0 }
 0x69b   :  { %1735 = vmatpush1.bf16.xpose.msra.mxu1 %v8326_v24  ;;  %1577 = vmatprep.mubr.bf16.mxu1 %v10671_v28 }
 0x69c   :  { %1736 = vmatprep.subr.bf16.mxu1 %v8330_v29  ;;  %v1386_v30 = vpop.f32.mrf.mxu0 }
 0x69e   :  { %v1388_v25 = vpop.f32.mrf.mxu0 }
 0x6a0   :  { %7195 = vmatmul.mubr.msk.bf16.gmra.mxu0 %vm753_vm1, %v1441_v12 }
 0x6a1   :  { %7470 = vmatprep.mubr.msk.bf16.mxu0 %vm170_vm0, %v8809_v45  ;;  %7469 = vmatpush3.bf16.xpose.msra.mxu0 %v1530_v20 }
 0x6a2   :  { %7197 = vmatmul.mubr.msk.bf16.gmra.mxu1 %vm170_vm0, %v8798_v57  ;;  %1665 = vmatprep.subr.bf16.mxu0 %v1122_v10 }
 0x6a3   :  { %1737 = vmatpush1.bf16.xpose.msra.mxu1 %v8354_v62 }
 0x6a4   :  { %1738 = vmatprep.subr.bf16.mxu1 %v8358_v26 }
 0x6a8   :  { %7471 = vmatmul.mubr.msk.bf16.vlgmr.msra.gmra.mxu0 %vm170_vm0, %v8798_v57 }
 0x6a9   :  { %1666 = vmatpush1.bf16.msra.mxu0 %v1121_v21  ;;  %1685 = vmatprep.mubr.bf16.mxu0 %v10671_v28 }
 0x6aa   :  { %1667 = vmatprep.subr.bf16.mxu0 %v1120_v59 }
 0x6ab   :  { %1739 = vmatpush1.bf16.xpose.msra.mxu1 %v10672_v44 }
 0x6ac   :  { %1740 = vmatprep.subr.bf16.mxu1 %v10674_v23 }
 0x6ad   :  { %1668 = vmatpush1.bf16.msra.mxu0 %v1119_v18 }
 0x6b3   :  { %1741 = vmatpush1.bf16.xpose.msra.mxu1 %v10675_v38 }
 0x6b4   :  { %1943 = vmatprep.subr.bf16.mxu1 %v10678_v41 }
 0x758   :  { %v1490_v11 = vpop.f32.mrf.mxu0 }
 0x759   :  { %v1491_v46 = vadd.f32 1e-06, %v1490_v11 }
 0x75a   :  { %v1492_v4 = vpop.f32.mrf.mxu0 }
 0x75b   :  { %v1493_v47 = vadd.f32 1e-06, %v1492_v4  ;;  %7799 = vrcp.f32 %v1491_v46 }
 0x75c   :  { %v1494_v60 = vpop.f32.mrf.mxu0 }
 0x75d   :  { %7801 = vrcp.f32 %v1493_v47  ;;  %v1495_v12 = vadd.f32 1e-06, %v1494_v60  ;;  %v1443_v47 = vmul.f32 %v1374_v15, %v8545_v48 }
 0x75e   :  { %v1496_v20 = vpop.f32.mrf.mxu0 }
 0x75f   :  { %v1497_v10 = vadd.f32 1e-06, %v1496_v20  ;;  %7803 = vrcp.f32 %v1495_v12  ;;  %v1442_v12 = vmul.f32 %v1372_v51, %v8547_v50 }
 0x760   :  { %v1500_v21 = vpop.f32.mrf.mxu0 }
 0x761   :  { %7805 = vrcp.f32 %v1497_v10  ;;  %v1501_v59 = vadd.f32 1e-06, %v1500_v21 }
 0x762   :  { %v1502_v18 = vpop.f32.mrf.mxu0 }
 0x763   :  { %v1503_v16 = vadd.f32 1e-06, %v1502_v18  ;;  %7807 = vrcp.f32 %v1501_v59 }
 0x764   :  { %v1504_v34 = vpop.f32.mrf.mxu0 }
 0x765   :  { %7809 = vrcp.f32 %v1503_v16  ;;  %v1505_v13 = vadd.f32 1e-06, %v1504_v34  ;;  %v1445_v34 = vmul.f32 %v1378_v36, %v8555_v8  ;;  %v1447_v8 = vmul.f32 %v1384_v61, %v8566_v43 }
 0x766   :  { %v1506_v54 = vpop.f32.mrf.mxu0  ;;  %v1448_v61 = vmul.f32 %v1386_v30, %v8580_v27 }
 0x767   :  { %v1507_v11 = vadd.f32 1e-06, %v1506_v54  ;;  %7811 = vrcp.f32 %v1505_v13  ;;  %v1444_v13 = vmul.f32 %v1376_v52, %v8558_v5  ;;  %v1446_v52 = vmul.f32 %v1382_v2, %v8568_v22 }
 0x768   :  { %v7472_v4 = vpop.f32.mrf.mxu0  ;;  %v7800_v46 = vpop.eup %7799 }
 0x769   :  { %7813 = vrcp.f32 %v1507_v11  ;;  %v8847_v18 = vmul.f32 %v7800_v46, %v1442_v12 }
 0x76a   :  { %v7802_v60 = vpop.eup %7801  ;;  %v1622_v20 = vpop.f32.mrf.mxu0 }
 0x76b   :  { %v8845_v10 = vmul.f32 %v7802_v60, %v1443_v47  ;;  %v1449_v47 = vmul.f32 %v1388_v25, %v8577_v17  ;;  %v1569_v17 = vpop.f32.mrf.mxu1 }
 0x76c   :  { %v7473_v21 = vpop.f32.mrf.mxu0  ;;  %v7804_v59 = vpop.eup %7803 }
 0x76d   :  { %1758 = vmatprep.mubr.f32.mxu1 %v8845_v10  ;;  %v8857_v51 = vmul.f32 %v7804_v59, %v1444_v13  ;;  %v1638_v2 = vpack.c.bf16 %v7473_v21, %v7472_v4  ;;  %v1571_v27 = vpop.f32.mrf.mxu1 }
 0x76e   :  { %v7806_v54 = vpop.eup %7805  ;;  %1759 = vmatmul.mubr.f32.vlgmr.msra.gmra.mxu1 %v8847_v18  ;;  %v1625_v48 = vpop.f32.mrf.mxu0 }
 0x76f   :  { %1944 = vmatpush1.bf16.xpose.msra.mxu1 %v8332_v32  ;;  %v1637_v50 = vpack.c.bf16 %v1625_v48, %v1622_v20  ;;  %v8854_v16 = vmul.f32 %v7806_v54, %v1445_v34  ;;  %v1573_v30 = vpop.f32.mrf.mxu1 }
 0x770   :  { %1945 = vmatprep.subr.bf16.mxu1 %v8337_v42  ;;  %v7808_v15 = vpop.eup %7807 }
 0x771   :  { %1763 = vmatprep.mubr.f32.mxu1 %v8854_v16  ;;  %7200 = vmatmul.mubr.msk.bf16.vlgmr.msra.gmra.mxu0 %vm753_vm1, %v1637_v50  ;;  %v8867_v11 = vmul.f32 %v7808_v15, %v1446_v52  ;;  %v1575_v25 = vpop.f32.mrf.mxu1 }
 0x772   :  { %v7810_v5 = vpop.eup %7809  ;;  %1764 = vmatmul.mubr.f32.gmra.mxu1 %v8857_v51  ;;  %1695 = vmatprep.mubr.bf16.mxu0 %v10671_v28 }
 0x773   :  { %v8865_v36 = vmul.f32 %v7810_v5, %v1447_v8  ;;  %v1579_v4 = vpop.f32.mrf.mxu1 }
 0x774   :  { %v7812_v46 = vpop.eup %7811 }
 0x775   :  { %1768 = vmatprep.mubr.f32.mxu1 %v8865_v36  ;;  %v8877_v60 = vmul.f32 %v7812_v46, %v1448_v61 }
 0x776   :  { %v7814_v43 = vpop.eup %7813  ;;  %1769 = vmatmul.mubr.f32.gmra.mxu1 %v8867_v11 }
 0x777   :  { %1946 = vmatpush1.bf16.xpose.msra.mxu1 %v8360_v39  ;;  %v8874_v22 = vmul.f32 %v7814_v43, %v1449_v47 }
 0x778   :  { %1947 = vmatprep.subr.bf16.mxu1 %v8365_v31 }
 0x779   :  { %1773 = vmatprep.mubr.f32.mxu1 %v8874_v22  ;;  %1803 = vmatprep.subr.mxu0 %v8874_v22 }
 0x77a   :  { %7201 = vmatmul.mubr.msk.bf16.gmra.mxu0 %vm753_vm1, %v1638_v2  ;;  %1774 = vmatmul.mubr.f32.gmra.mxu1 %v8877_v60 }
 0x77b   :  { %1804 = vmatpush1.xpose.msra.mxu0 %v8877_v60  ;;  %1843 = vmatprep.mubr.f32.mxu0 %v8845_v10 }
 0x77c   :  { %1805 = vmatprep.subr.mxu0 %v8865_v36 }
 0x77f   :  { %1806 = vmatpush1.xpose.msra.mxu0 %v8867_v11  ;;  %1948 = vmatpush1.bf16.xpose.msra.mxu1 %v8375_v35 }
 0x780   :  { %1807 = vmatprep.subr.mxu0 %v8854_v16  ;;  %1949 = vmatprep.subr.bf16.mxu1 %v8378_v53 }
 0x783   :  { %1808 = vmatpush1.xpose.msra.mxu0 %v8857_v51 }
 0x784   :  { %1809 = vmatprep.subr.mxu0 %v8845_v10 }
 0x787   :  { %1810 = vmatpush1.xpose.msra.mxu0 %v8847_v18  ;;  %1950 = vmatpush1.bf16.xpose.msra.mxu1 %v8406_v58  ;;  %v1640_v58 = vmul.f32 %v1571_v27, %v8653_v14 }
 0x788   :  { %7474 = vmatprep.subr.bf16.mxu0 %v8737_v3  ;;  %2158 = vmatprep.subr.bf16.mxu1 %v8323_v6 }
 0x78a   :  { %1844 = vmatmul.mubr.f32.vlgmr.msra.gmra.mxu0 %v8847_v18 }
 0x78b   :  { %1848 = vmatprep.mubr.f32.mxu0 %v8854_v16  ;;  %7475 = vmatpush3.bf16.msra.mxu0 %v8737_v3  ;;  %v1581_v3 = vpop.f32.mrf.mxu1 }
 0x78c   :  { %7476 = vmatprep.subr.bf16.mxu0 %v8712_v0 }
 0x78d   :  { %v8906_v12 = vpop.f32.mrf.mxu1 }
 0x78e   :  { %1849 = vmatmul.mubr.f32.gmra.mxu0 %v8857_v51 }
 0x78f   :  { %1853 = vmatprep.mubr.f32.mxu0 %v8865_v36  ;;  %7477 = vmatpush3.bf16.msra.mxu0 %v8712_v0  ;;  %v8908_v20 = vpop.f32.mrf.mxu1 }
 0x792   :  { %1854 = vmatmul.mubr.f32.gmra.mxu0 %v8867_v11 }
 0x793   :  { %1858 = vmatprep.mubr.f32.mxu0 %v8874_v22 }
 0x796   :  { %1859 = vmatmul.mubr.f32.gmra.mxu0 %v8877_v60 }
 0x82e   :  { %v8910_v21 = vpop.f32.mrf.mxu1 }
 0x830   :  { %v1762_v59 = vpop.f32.mrf.mxu1 }
 0x831   :  { %v1687_v0 = vpop.f32.mrf.mxu0 }
 0x832   :  { %v1688_v34 = vadd.f32 1e-06, %v1687_v0  ;;  %v8912_v54 = vpop.f32.mrf.mxu1 }
 0x833   :  { %v1689_v13 = vpop.f32.mrf.mxu0 }
 0x834   :  { %v1690_v48 = vadd.f32 1e-06, %v1689_v13  ;;  %v1767_v50 = vpop.f32.mrf.mxu1  ;;  %7815 = vrcp.f32 %v1688_v34 }
 0x835   :  { %v1691_v15 = vpop.f32.mrf.mxu0 }
 0x836   :  { %7817 = vrcp.f32 %v1690_v48  ;;  %v1692_v8 = vadd.f32 1e-06, %v1691_v15  ;;  %v8914_v5 = vpop.f32.mrf.mxu1 }
 0x837   :  { %v1693_v52 = vpop.f32.mrf.mxu0 }
 0x838   :  { %v1694_v46 = vadd.f32 1e-06, %v1693_v52  ;;  %v1772_v47 = vpop.f32.mrf.mxu1  ;;  %7819 = vrcp.f32 %v1692_v8  ;;  %v1639_v8 = vmul.f32 %v1569_v17, %v8655_v19 }
 0x83a   :  { %7821 = vrcp.f32 %v1694_v46  ;;  %v1697_v43 = vpop.f32.mrf.mxu0  ;;  %v8916_v61 = vpop.f32.mrf.mxu1 }
 0x83b   :  { %v1698_v2 = vadd.f32 1e-06, %v1697_v43 }
 0x83c   :  { %v1699_v59 = vpop.f32.mrf.mxu0  ;;  %v1777_v0 = vpop.f32.mrf.mxu1 }
 0x83d   :  { %v1700_v6 = vadd.f32 1e-06, %v1699_v59  ;;  %7823 = vrcp.f32 %v1698_v2  ;;  %v1642_v2 = vmul.f32 %v1575_v25, %v8664_v7  ;;  %v1641_v59 = vmul.f32 %v1573_v30, %v8667_v40 }
 0x83e   :  { %v1701_v13 = vpop.f32.mrf.mxu0  ;;  %v1644_v7 = vmul.f32 %v1581_v3, %v8676_v63  ;;  %v1643_v40 = vmul.f32 %v1579_v4, %v8679_v56  ;;  %v1645_v56 = vmul.f32 %v8906_v12, %v8697_v1  ;;  %v1528_v1 = vpack.c.bf16 %v8874_v22, %v8865_v36 }
 0x83f   :  { %7825 = vrcp.f32 %v1700_v6  ;;  %v1702_v34 = vadd.f32 1e-06, %v1701_v13 }
 0x840   :  { %v1703_v48 = vpop.f32.mrf.mxu0 }
 0x841   :  { %v1704_v50 = vadd.f32 1e-06, %v1703_v48  ;;  %v7816_v15 = vpop.eup %7815  ;;  %7827 = vrcp.f32 %v1702_v34  ;;  %v1646_v48 = vmul.f32 %v8908_v20, %v8690_v49 }
 0x842   :  { %v8922_v47 = vmul.f32 %v7816_v15, %v1639_v8 }
 0x843   :  { %v7818_v52 = vpop.eup %7817  ;;  %7829 = vrcp.f32 %v1704_v50 }
 0x844   :  { %v8920_v46 = vmul.f32 %v7818_v52, %v1640_v58 }
 0x845   :  { %v7820_v43 = vpop.eup %7819 }
 0x846   :  { %1967 = vmatprep.mubr.f32.mxu1 %v8920_v46  ;;  %v8932_v58 = vmul.f32 %v7820_v43, %v1641_v59 }
 0x847   :  { %v7822_v6 = vpop.eup %7821  ;;  %1968 = vmatmul.mubr.f32.vlgmr.msra.gmra.mxu1 %v8922_v47 }
 0x848   :  { %2159 = vmatpush1.bf16.msra.mxu1 %v8326_v24  ;;  %v8929_v14 = vmul.f32 %v7822_v6, %v1642_v2 }
 0x849   :  { %2160 = vmatprep.subr.bf16.mxu1 %v8330_v29 }
 0x84a   :  { %v1845_v19 = vpop.f32.mrf.mxu0  ;;  %1972 = vmatprep.mubr.f32.mxu1 %v8929_v14  ;;  %v7824_v17 = vpop.eup %7823 }
 0x84b   :  { %1973 = vmatmul.mubr.f32.gmra.mxu1 %v8932_v58  ;;  %v8942_v13 = vmul.f32 %v7824_v17, %v1643_v40 }
 0x84c   :  { %v7826_v27 = vpop.eup %7825  ;;  %v1847_v30 = vpop.f32.mrf.mxu0  ;;  %2161 = vmatpush1.bf16.msra.mxu1 %v8354_v62 }
 0x84d   :  { %2162 = vmatprep.subr.bf16.mxu1 %v8358_v26  ;;  %v8940_v25 = vmul.f32 %v7826_v27, %v1644_v7 }
 0x84e   :  { %v1850_v0 = vpop.f32.mrf.mxu0  ;;  %v7828_v34 = vpop.eup %7827 }
 0x84f   :  { %v1864_v63 = vpack.c.bf16 %v1850_v0, %v1845_v19  ;;  %1977 = vmatprep.mubr.f32.mxu1 %v8940_v25  ;;  %v8955_v49 = vmul.f32 %v7828_v34, %v1645_v56 }
 0x850   :  { %v7830_v3 = vpop.eup %7829  ;;  %v1852_v4 = vpop.f32.mrf.mxu0  ;;  %1978 = vmatmul.mubr.f32.gmra.mxu1 %v8942_v13 }
 0x851   :  { %7478 = vmatprep.mubr.msk.bf16.mxu0 %vm753_vm1, %v1864_v63  ;;  %2163 = vmatpush1.bf16.msra.mxu1 %v10672_v44  ;;  %v8952_v50 = vmul.f32 %v7830_v3, %v1646_v48 }
 0x852   :  { %v1855_v15 = vpop.f32.mrf.mxu0  ;;  %2164 = vmatprep.subr.bf16.mxu1 %v10674_v23 }
 0x853   :  { %1982 = vmatprep.mubr.f32.mxu1 %v8952_v50  ;;  %2012 = vmatprep.subr.mxu0 %v8952_v50 }
 0x854   :  { %v1857_v20 = vpop.f32.mrf.mxu0  ;;  %1983 = vmatmul.mubr.f32.gmra.mxu1 %v8955_v49 }
 0x855   :  { %2165 = vmatpush1.bf16.msra.mxu1 %v10675_v38  ;;  %2182 = vmatprep.mubr.bf16.mxu1 %v10671_v28  ;;  %v1868_v20 = vmul.f32 %v8914_v5, %v8731_v9  ;;  %v1526_v5 = vpack.c.bf16 %v8854_v16, %v8845_v10 }
 0x856   :  { %v1860_v12 = vpop.f32.mrf.mxu0  ;;  %2280 = vmatprep.subr.bf16.mxu1 %v1528_v1  ;;  %v1869_v1 = vmul.f32 %v8916_v61, %v8726_v33 }
 0x857   :  { %v1865_v52 = vpack.c.bf16 %v1860_v12, %v1855_v15 }
 0x858   :  { %v1862_v8 = vpop.f32.mrf.mxu0 }
 0x859   :  { %7479 = vmatmul.mubr.msk.bf16.vlgmr.msra.gmra.mxu0 %vm753_vm1, %v1865_v52  ;;  %v1866_v52 = vmul.f32 %v8910_v21, %v8701_v55 }
 0x85a   :  { %2013 = vmatpush1.xpose.msra.mxu0 %v8955_v49  ;;  %2052 = vmatprep.mubr.f32.mxu0 %v8920_v46 }
 0x85b   :  { %2014 = vmatprep.subr.mxu0 %v8940_v25 }
 0x85e   :  { %2015 = vmatpush1.xpose.msra.mxu0 %v8942_v13 }
 0x85f   :  { %2016 = vmatprep.subr.mxu0 %v8929_v14 }
 0x862   :  { %2017 = vmatpush1.xpose.msra.mxu0 %v8932_v58 }
 0x863   :  { %2018 = vmatprep.subr.mxu0 %v8920_v46 }
 0x866   :  { %2019 = vmatpush1.xpose.msra.mxu0 %v8922_v47 }
 0x867   :  { %7482 = vmatprep.subr.bf16.mxu0 %v8798_v57 }
 0x869   :  { %2053 = vmatmul.mubr.f32.vlgmr.msra.gmra.mxu0 %v8922_v47 }
 0x86a   :  { %2057 = vmatprep.mubr.f32.mxu0 %v8929_v14  ;;  %7483 = vmatpush3.bf16.msra.mxu0 %v8798_v57 }
 0x86b   :  { %7484 = vmatprep.subr.bf16.mxu0 %v8809_v45 }
 0x86d   :  { %2058 = vmatmul.mubr.f32.gmra.mxu0 %v8932_v58 }
 0x86e   :  { %2062 = vmatprep.mubr.f32.mxu0 %v8940_v25  ;;  %7485 = vmatpush3.bf16.msra.mxu0 %v8809_v45 }
 0x871   :  { %2063 = vmatmul.mubr.f32.gmra.mxu0 %v8942_v13 }
 0x872   :  { %2067 = vmatprep.mubr.f32.mxu0 %v8952_v50 }
 0x875   :  { %2068 = vmatmul.mubr.f32.gmra.mxu0 %v8955_v49 }
 0x907   :  { %v8984_v43 = vpop.f32.mrf.mxu1 }
 0x909   :  { %v1971_v2 = vpop.f32.mrf.mxu1 }
 0x90a   :  { %v1867_v2 = vmul.f32 %v8912_v54, %v8694_v37  ;;  %v1527_v54 = vpack.c.bf16 %v8877_v60, %v8867_v11 }
 0x90b   :  { %v8986_v6 = vpop.f32.mrf.mxu1 }
 0x90d   :  { %v1976_v57 = vpop.f32.mrf.mxu1 }
 0x910   :  { %v8988_v59 = vpop.f32.mrf.mxu1 }
 0x912   :  { %v1981_v19 = vpop.f32.mrf.mxu1 }
 0x914   :  { %v8990_v17 = vpop.f32.mrf.mxu1 }
 0x916   :  { %v1986_v7 = vpop.f32.mrf.mxu1 }
 0x919   :  { %v7480_v27 = vpop.f32.mrf.mxu0 }
 0x91a   :  { %v1919_v45 = vadd.f32 1e-06, %v7480_v27 }
 0x91b   :  { %v1910_v40 = vpop.f32.mrf.mxu0 }
 0x91c   :  { %v1911_v30 = vadd.f32 1e-06, %v1910_v40  ;;  %7831 = vrcp.f32 %v1919_v45 }
 0x91d   :  { %v7481_v0 = vpop.f32.mrf.mxu0 }
 0x91e   :  { %v1922_v34 = vadd.f32 1e-06, %v7481_v0  ;;  %7833 = vrcp.f32 %v1911_v30 }
 0x91f   :  { %v1913_v48 = vpop.f32.mrf.mxu0 }
 0x920   :  { %7835 = vrcp.f32 %v1922_v34  ;;  %v1914_v63 = vadd.f32 1e-06, %v1913_v48  ;;  %v1525_v48 = vpack.c.bf16 %v8857_v51, %v8847_v18 }
 0x922   :  { %7837 = vrcp.f32 %v1914_v63 }
 0x929   :  { %v2054_v3 = vpop.f32.mrf.mxu0  ;;  %v7832_v56 = vpop.eup %7831 }
 0x92a   :  { %v9000_v57 = vmul.f32 %v7832_v56, %v1868_v20  ;;  %v10684_v56 = vld [vmem:[#allocation8_spill] sm:$0xff] }
 0x92b   :  { %v2056_v4 = vpop.f32.mrf.mxu0  ;;  %v7834_v15 = vpop.eup %7833 }
 0x92c   :  { %v9004_v40 = vmul.f32 %v7834_v15, %v1866_v52 }
 0x92d   :  { %v7836_v12 = vpop.eup %7835  ;;  %v2059_v8 = vpop.f32.mrf.mxu0 }
 0x92e   :  { %v9002_v19 = vmul.f32 %v7836_v12, %v1869_v1  ;;  %v2073_v7 = vpack.c.bf16 %v2059_v8, %v2054_v3  ;;  %v10683_v3 = vld [vmem:[#allocation16_spill] sm:$0xff] }
 0x92f   :  { %v7838_v27 = vpop.eup %7837  ;;  %v2061_v45 = vpop.f32.mrf.mxu0 }
 0x930   :  { %v9008_v33 = vpack.c.bf16 %v9002_v19, %v9000_v57  ;;  %v9010_v9 = vmul.f32 %v7838_v27, %v1867_v2  ;;  %7486 = vmatprep.mubr.msk.bf16.mxu0 %vm753_vm1, %v2073_v7 }
 0x931   :  { %v2064_v55 = vpop.f32.mrf.mxu0 }
 0x932   :  { %7672 = vmatprep.subr.msk.bf16.mxu0 %vm170_vm0, %v9008_v33  ;;  %v9017_v37 = vpack.c.bf16 %v9010_v9, %v9004_v40  ;;  %v2148_v34 = vsel %vm170_vm0, %v9008_v33, 0 }
 0x933   :  { %v2066_v21 = vpop.f32.mrf.mxu0 }
 0x934   :  { %7206 = vmatmul.mubr.msk.bf16.vlgmr.msra.gmra.mxu1 %vm170_vm0, %v9017_v37  ;;  %v2145_v63 = vsel %vm170_vm0, %v9017_v37, 0  ;;  %v10685_v21 = vld [vmem:[#allocation10_spill] sm:$0xff] }
 0x935   :  { %v2069_v61 = vpop.f32.mrf.mxu0  ;;  %2281 = vmatpush1.bf16.msra.mxu1 %v1527_v54  ;;  %2192 = vmatprep.mubr.bf16.mxu1 %v10671_v28  ;;  %v2077_v54 = vmul.f32 %v8988_v59, %v10685_v21  ;;  %v1722_v21 = vpack.c.bf16 %v8932_v58, %v8922_v47 }
 0x936   :  { %v2074_v30 = vpack.c.bf16 %v2069_v61, %v2064_v55  ;;  %2282 = vmatprep.subr.bf16.mxu1 %v1526_v5  ;;  %v10686_v5 = vld [vmem:[#allocation12_spill] sm:$0xff] }
 0x937   :  { %v2071_v0 = vpop.f32.mrf.mxu0  ;;  %v2078_v61 = vmul.f32 %v8990_v17, %v10686_v5 }
 0x938   :  { %7487 = vmatmul.mubr.msk.bf16.vlgmr.msra.gmra.mxu0 %vm753_vm1, %v2074_v30 }
 0x939   :  { %7491 = vmatpush3.bf16.xpose.msra.mxu0 %v2148_v34  ;;  %7494 = vmatprep.mubr.msk.bf16.mxu0 %vm170_vm0, %v9017_v37  ;;  %v10687_v34 = vld [vmem:[#allocation11_spill] sm:$0xff] }
 0x93a   :  { %7673 = vmatprep.subr.msk.bf16.mxu0 %vm170_vm0, %v9017_v37  ;;  %2283 = vmatpush1.bf16.msra.mxu1 %v1525_v48  ;;  %v2075_v48 = vmul.f32 %v8984_v43, %v10687_v34 }
 0x93c   :  { %7207 = vmatmul.mubr.msk.bf16.gmra.mxu1 %vm170_vm0, %v9008_v33 }
 0x93d   :  { %2300 = vmatprep.mubr.bf16.mxu1 %v10671_v28 }
 0x941   :  { %7493 = vmatpush3.bf16.xpose.msra.mxu0 %v2145_v63  ;;  %v10688_v63 = vld [vmem:[#allocation15_spill] sm:$0xff] }
 0x942   :  { %2355 = vmatprep.subr.bf16.mxu0 %v10678_v41 }
 0x948   :  { %7495 = vmatmul.mubr.msk.bf16.vlgmr.msra.gmra.mxu0 %vm170_vm0, %v9008_v33 }
 0x949   :  { %2356 = vmatpush1.bf16.msra.mxu0 %v8332_v32  ;;  %2379 = vmatprep.mubr.bf16.mxu0 %v10671_v28 }
 0x94a   :  { %2357 = vmatprep.subr.bf16.mxu0 %v8337_v42 }
 0x94d   :  { %2358 = vmatpush1.bf16.msra.mxu0 %v8360_v39 }
 0x94e   :  { %2359 = vmatprep.subr.bf16.mxu0 %v8365_v31 }
 0x951   :  { %2360 = vmatpush1.bf16.msra.mxu0 %v8375_v35 }
 0x952   :  { %2361 = vmatprep.subr.bf16.mxu0 %v8378_v53 }
 0x955   :  { %2362 = vmatpush1.bf16.msra.mxu0 %v10683_v3 }
 0x956   :  { %2546 = vmatprep.subr.bf16.mxu0 %v10684_v56 }
 0x9f8   :  { %v7488_v4 = vpop.f32.mrf.mxu0 }
 0x9f9   :  { %v2128_v15 = vadd.f32 1e-06, %v7488_v4  ;;  %v2076_v4 = vmul.f32 %v8986_v6, %v10688_v63 }
 0x9fa   :  { %v2119_v20 = vpop.f32.mrf.mxu0 }
 0x9fb   :  { %v2120_v1 = vadd.f32 1e-06, %v2119_v20  ;;  %7839 = vrcp.f32 %v2128_v15 }
 0x9fc   :  { %v7489_v12 = vpop.f32.mrf.mxu0 }
 0x9fd   :  { %v2131_v52 = vadd.f32 1e-06, %v7489_v12  ;;  %7841 = vrcp.f32 %v2120_v1 }
 0x9fe   :  { %v2122_v8 = vpop.f32.mrf.mxu0 }
 0x9ff   :  { %7843 = vrcp.f32 %v2131_v52  ;;  %v2123_v2 = vadd.f32 1e-06, %v2122_v8 }
 0xa01   :  { %7845 = vrcp.f32 %v2123_v2 }
 0xa08   :  { %v7496_v7 = vpop.f32.mrf.mxu0  ;;  %v7840_v27 = vpop.eup %7839 }
 0xa09   :  { %v9060_v15 = vmul.f32 %v7840_v27, %v2077_v54  ;;  %v2184_v54 = vpop.f32.mrf.mxu1 }
 0xa0a   :  { %v2237_v45 = vpop.f32.mrf.mxu0  ;;  %v7842_v55 = vpop.eup %7841 }
 0xa0b   :  { %10689 = vst [vmem:[#allocation14_spill] sm:$0xff] %v9060_v15  ;;  %v9064_v52 = vmul.f32 %v7842_v55, %v2075_v48  ;;  %v1723_v55 = vpack.c.bf16 %v8929_v14, %v8920_v46  ;;  %v2186_v5 = vpop.f32.mrf.mxu1 }
 0xa0c   :  { %v7844_v30 = vpop.eup %7843  ;;  %v7497_v0 = vpop.f32.mrf.mxu0 }
 0xa0d   :  { %v9062_v20 = vmul.f32 %v7844_v30, %v2078_v61  ;;  %10691 = vst [vmem:[#allocation9_spill] sm:$0xff] %v9064_v52  ;;  %v2253_v2 = vpack.c.bf16 %v7497_v0, %v7496_v7  ;;  %v1724_v7 = vpack.c.bf16 %v8955_v49, %v8942_v13  ;;  %v2188_v61 = vpop.f32.mrf.mxu1 }
 0xa0e   :  { %v7846_v1 = vpop.eup %7845  ;;  %v2240_v12 = vpop.f32.mrf.mxu0 }
 0xa0f   :  { %10690 = vst [vmem:[#allocation13_spill] sm:$0xff] %v9062_v20  ;;  %v9068_v59 = vpack.c.bf16 %v9062_v20, %v9060_v15  ;;  %v9070_v17 = vmul.f32 %v7846_v1, %v2076_v4  ;;  %v2252_v8 = vpack.c.bf16 %v2240_v12, %v2237_v45  ;;  %v1725_v45 = vpack.c.bf16 %v8952_v50, %v8940_v25  ;;  %v2190_v30 = vpop.f32.mrf.mxu1 }
 0xa11   :  { %10692 = vst [vmem:[#allocation10_spill] sm:$0xff] %v9070_v17  ;;  %7210 = vmatmul.mubr.msk.bf16.vlgmr.msra.gmra.mxu1 %vm753_vm1, %v2252_v8  ;;  %7674 = vmatprep.subr.msk.bf16.mxu1 %vm170_vm0, %v9068_v59  ;;  %v2345_v43 = vsel %vm170_vm0, %v9068_v59, 0  ;;  %v9079_v6 = vpack.c.bf16 %v9070_v17, %v9064_v52  ;;  %v2194_v0 = vpop.f32.mrf.mxu1 }
 0xa12   :  { %7499 = vmatpush3.bf16.xpose.msra.mxu1 %v2345_v43  ;;  %2310 = vmatprep.mubr.bf16.mxu1 %v10671_v28 }
 0xa13   :  { %7212 = vmatmul.mubr.msk.bf16.vlgmr.msra.gmra.mxu0 %vm170_vm0, %v9079_v6  ;;  %7675 = vmatprep.subr.msk.bf16.mxu1 %vm170_vm0, %v9079_v6  ;;  %v2342_v27 = vsel %vm170_vm0, %v9079_v6, 0  ;;  %v2196_v34 = vpop.f32.mrf.mxu1 }
 0xa14   :  { %2547 = vmatpush1.bf16.xpose.msra.mxu0 %v8326_v24  ;;  %2389 = vmatprep.mubr.bf16.mxu0 %v10671_v28 }
 0xa15   :  { %2548 = vmatprep.subr.bf16.mxu0 %v8330_v29  ;;  %v2198_v48 = vpop.f32.mrf.mxu1 }
 0xa17   :  { %v2200_v63 = vpop.f32.mrf.mxu1 }
 0xa19   :  { %7211 = vmatmul.mubr.msk.bf16.gmra.mxu1 %vm753_vm1, %v2253_v2 }
 0xa1a   :  { %7502 = vmatprep.mubr.msk.bf16.mxu1 %vm170_vm0, %v9079_v6  ;;  %7501 = vmatpush3.bf16.xpose.msra.mxu1 %v2342_v27 }
 0xa1b   :  { %7213 = vmatmul.mubr.msk.bf16.gmra.mxu0 %vm170_vm0, %v9068_v59  ;;  %2477 = vmatprep.subr.bf16.mxu1 %v1725_v45 }
 0xa1c   :  { %2549 = vmatpush1.bf16.xpose.msra.mxu0 %v8354_v62 }
 0xa1d   :  { %2550 = vmatprep.subr.bf16.mxu0 %v8358_v26 }
 0xa21   :  { %7503 = vmatmul.mubr.msk.bf16.vlgmr.msra.gmra.mxu1 %vm170_vm0, %v9068_v59 }
 0xa22   :  { %2478 = vmatpush1.bf16.msra.mxu1 %v1724_v7  ;;  %2497 = vmatprep.mubr.bf16.mxu1 %v10671_v28 }
 0xa23   :  { %2479 = vmatprep.subr.bf16.mxu1 %v1723_v55 }
 0xa24   :  { %2551 = vmatpush1.bf16.xpose.msra.mxu0 %v10672_v44 }
 0xa25   :  { %2552 = vmatprep.subr.bf16.mxu0 %v10674_v23 }
 0xa26   :  { %2480 = vmatpush1.bf16.msra.mxu1 %v1722_v21 }
 0xa2c   :  { %2553 = vmatpush1.bf16.xpose.msra.mxu0 %v10675_v38 }
 0xa2d   :  { %2755 = vmatprep.subr.bf16.mxu0 %v10678_v41 }
 0xad1   :  { %v2302_v4 = vpop.f32.mrf.mxu1 }
 0xad2   :  { %v2303_v1 = vadd.f32 1e-06, %v2302_v4 }
 0xad3   :  { %v2304_v12 = vpop.f32.mrf.mxu1 }
 0xad4   :  { %v2305_v8 = vadd.f32 1e-06, %v2304_v12  ;;  %7847 = vrcp.f32 %v2303_v1 }
 0xad5   :  { %v2306_v43 = vpop.f32.mrf.mxu1 }
 0xad6   :  { %7849 = vrcp.f32 %v2305_v8  ;;  %v2307_v2 = vadd.f32 1e-06, %v2306_v43  ;;  %v2255_v8 = vmul.f32 %v2186_v5, %v8845_v10 }
 0xad7   :  { %v2308_v27 = vpop.f32.mrf.mxu1 }
 0xad8   :  { %v2309_v45 = vadd.f32 1e-06, %v2308_v27  ;;  %7851 = vrcp.f32 %v2307_v2  ;;  %v2254_v2 = vmul.f32 %v2184_v54, %v8847_v18 }
 0xad9   :  { %v2312_v7 = vpop.f32.mrf.mxu1 }
 0xada   :  { %7853 = vrcp.f32 %v2309_v45  ;;  %v2313_v55 = vadd.f32 1e-06, %v2312_v7 }
 0xadb   :  { %v2314_v21 = vpop.f32.mrf.mxu1 }
 0xadc   :  { %v2315_v17 = vadd.f32 1e-06, %v2314_v21  ;;  %7855 = vrcp.f32 %v2313_v55 }
 0xadd   :  { %v2316_v52 = vpop.f32.mrf.mxu1 }
 0xade   :  { %7857 = vrcp.f32 %v2315_v17  ;;  %v2317_v20 = vadd.f32 1e-06, %v2316_v52  ;;  %v2257_v52 = vmul.f32 %v2190_v30, %v8854_v16  ;;  %v2259_v16 = vmul.f32 %v2196_v34, %v8865_v36 }
 0xadf   :  { %v2318_v15 = vpop.f32.mrf.mxu1  ;;  %v2260_v34 = vmul.f32 %v2198_v48, %v8877_v60 }
 0xae0   :  { %v2319_v4 = vadd.f32 1e-06, %v2318_v15  ;;  %7859 = vrcp.f32 %v2317_v20  ;;  %v2256_v20 = vmul.f32 %v2188_v61, %v8857_v51  ;;  %v2258_v61 = vmul.f32 %v2194_v0, %v8867_v11 }
 0xae1   :  { %v7504_v12 = vpop.f32.mrf.mxu1  ;;  %v7848_v1 = vpop.eup %7847 }
 0xae2   :  { %7861 = vrcp.f32 %v2319_v4  ;;  %v9117_v21 = vmul.f32 %v7848_v1, %v2254_v2 }
 0xae3   :  { %v7850_v43 = vpop.eup %7849  ;;  %v2434_v27 = vpop.f32.mrf.mxu1 }
 0xae4   :  { %v9115_v45 = vmul.f32 %v7850_v43, %v2255_v8  ;;  %v2261_v8 = vmul.f32 %v2200_v63, %v8874_v22  ;;  %v2381_v22 = vpop.f32.mrf.mxu0 }
 0xae5   :  { %v7505_v7 = vpop.f32.mrf.mxu1  ;;  %v7852_v55 = vpop.eup %7851 }
 0xae6   :  { %2570 = vmatprep.mubr.f32.mxu0 %v9115_v45  ;;  %v9127_v54 = vmul.f32 %v7852_v55, %v2256_v20  ;;  %v2450_v0 = vpack.c.bf16 %v7505_v7, %v7504_v12  ;;  %v2383_v60 = vpop.f32.mrf.mxu0 }
 0xae7   :  { %v7854_v15 = vpop.eup %7853  ;;  %2571 = vmatmul.mubr.f32.vlgmr.msra.gmra.mxu0 %v9117_v21  ;;  %v2437_v10 = vpop.f32.mrf.mxu1 }
 0xae8   :  { %2756 = vmatpush1.bf16.xpose.msra.mxu0 %v8332_v32  ;;  %v2449_v18 = vpack.c.bf16 %v2437_v10, %v2434_v27  ;;  %v9124_v17 = vmul.f32 %v7854_v15, %v2257_v52  ;;  %v2385_v48 = vpop.f32.mrf.mxu0 }
 0xae9   :  { %2757 = vmatprep.subr.bf16.mxu0 %v8337_v42  ;;  %v7856_v5 = vpop.eup %7855 }
 0xaea   :  { %2575 = vmatprep.mubr.f32.mxu0 %v9124_v17  ;;  %7216 = vmatmul.mubr.msk.bf16.vlgmr.msra.gmra.mxu1 %vm753_vm1, %v2449_v18  ;;  %v9137_v4 = vmul.f32 %v7856_v5, %v2258_v61  ;;  %v2387_v63 = vpop.f32.mrf.mxu0 }
 0xaeb   :  { %v7858_v51 = vpop.eup %7857  ;;  %2576 = vmatmul.mubr.f32.gmra.mxu0 %v9127_v54  ;;  %2507 = vmatprep.mubr.bf16.mxu1 %v10671_v28 }
 0xaec   :  { %v9135_v30 = vmul.f32 %v7858_v51, %v2259_v16  ;;  %v2391_v12 = vpop.f32.mrf.mxu0 }
 0xaed   :  { %v7860_v1 = vpop.eup %7859 }
 0xaee   :  { %2580 = vmatprep.mubr.f32.mxu0 %v9135_v30  ;;  %v9147_v43 = vmul.f32 %v7860_v1, %v2260_v34 }
 0xaef   :  { %v7862_v36 = vpop.eup %7861  ;;  %2581 = vmatmul.mubr.f32.gmra.mxu0 %v9137_v4 }
 0xaf0   :  { %2758 = vmatpush1.bf16.xpose.msra.mxu0 %v8360_v39  ;;  %v9144_v11 = vmul.f32 %v7862_v36, %v2261_v8 }
 0xaf1   :  { %2759 = vmatprep.subr.bf16.mxu0 %v8365_v31 }
 0xaf2   :  { %2585 = vmatprep.mubr.f32.mxu0 %v9144_v11  ;;  %2615 = vmatprep.subr.mxu1 %v9144_v11 }
 0xaf3   :  { %7217 = vmatmul.mubr.msk.bf16.gmra.mxu1 %vm753_vm1, %v2450_v0  ;;  %2586 = vmatmul.mubr.f32.gmra.mxu0 %v9147_v43 }
 0xaf4   :  { %2616 = vmatpush1.xpose.msra.mxu1 %v9147_v43  ;;  %2655 = vmatprep.mubr.f32.mxu1 %v9115_v45 }
 0xaf5   :  { %2617 = vmatprep.subr.mxu1 %v9135_v30 }
 0xaf8   :  { %2618 = vmatpush1.xpose.msra.mxu1 %v9137_v4  ;;  %2760 = vmatpush1.bf16.xpose.msra.mxu0 %v8375_v35 }
 0xaf9   :  { %2619 = vmatprep.subr.mxu1 %v9124_v17  ;;  %2761 = vmatprep.subr.bf16.mxu0 %v8378_v53 }
 0xafc   :  { %2620 = vmatpush1.xpose.msra.mxu1 %v9127_v54 }
 0xafd   :  { %2621 = vmatprep.subr.mxu1 %v9115_v45 }
 0xb00   :  { %2622 = vmatpush1.xpose.msra.mxu1 %v9117_v21  ;;  %2762 = vmatpush1.bf16.xpose.msra.mxu0 %v10683_v3  ;;  %v2452_v3 = vmul.f32 %v2383_v60, %v8920_v46 }
 0xb01   :  { %7506 = vmatprep.subr.bf16.mxu1 %v9008_v33  ;;  %2970 = vmatprep.subr.bf16.mxu0 %v10684_v56 }
 0xb03   :  { %2656 = vmatmul.mubr.f32.vlgmr.msra.gmra.mxu1 %v9117_v21 }
 0xb04   :  { %2660 = vmatprep.mubr.f32.mxu1 %v9124_v17  ;;  %7507 = vmatpush3.bf16.msra.mxu1 %v9008_v33  ;;  %v2393_v33 = vpop.f32.mrf.mxu0 }
 0xb05   :  { %7508 = vmatprep.subr.bf16.mxu1 %v9017_v37 }
 0xb06   :  { %v9176_v2 = vpop.f32.mrf.mxu0 }
 0xb07   :  { %2661 = vmatmul.mubr.f32.gmra.mxu1 %v9127_v54 }
 0xb08   :  { %2665 = vmatprep.mubr.f32.mxu1 %v9135_v30  ;;  %7509 = vmatpush3.bf16.msra.mxu1 %v9017_v37  ;;  %v9178_v27 = vpop.f32.mrf.mxu0 }
 0xb0b   :  { %2666 = vmatmul.mubr.f32.gmra.mxu1 %v9137_v4 }
 0xb0c   :  { %2670 = vmatprep.mubr.f32.mxu1 %v9144_v11 }
 0xb0f   :  { %2671 = vmatmul.mubr.f32.gmra.mxu1 %v9147_v43 }
 0xba7   :  { %v9180_v7 = vpop.f32.mrf.mxu0 }
 0xba9   :  { %v2574_v55 = vpop.f32.mrf.mxu0 }
 0xbaa   :  { %v2499_v37 = vpop.f32.mrf.mxu1 }
 0xbab   :  { %v2500_v52 = vadd.f32 1e-06, %v2499_v37  ;;  %v9182_v15 = vpop.f32.mrf.mxu0 }
 0xbac   :  { %v2501_v20 = vpop.f32.mrf.mxu1 }
 0xbad   :  { %v2502_v10 = vadd.f32 1e-06, %v2501_v20  ;;  %v2579_v18 = vpop.f32.mrf.mxu0  ;;  %7863 = vrcp.f32 %v2500_v52 }
 0xbae   :  { %v2503_v5 = vpop.f32.mrf.mxu1 }
 0xbaf   :  { %7865 = vrcp.f32 %v2502_v10  ;;  %v2504_v16 = vadd.f32 1e-06, %v2503_v5  ;;  %v9184_v51 = vpop.f32.mrf.mxu0 }
 0xbb0   :  { %v2505_v61 = vpop.f32.mrf.mxu1 }
 0xbb1   :  { %v2506_v1 = vadd.f32 1e-06, %v2505_v61  ;;  %v2584_v8 = vpop.f32.mrf.mxu0  ;;  %7867 = vrcp.f32 %v2504_v16  ;;  %v2451_v16 = vmul.f32 %v2381_v22, %v8922_v47 }
 0xbb3   :  { %7869 = vrcp.f32 %v2506_v1  ;;  %v2509_v36 = vpop.f32.mrf.mxu1  ;;  %v9186_v34 = vpop.f32.mrf.mxu0 }
 0xbb4   :  { %v2510_v0 = vadd.f32 1e-06, %v2509_v36 }
 0xbb5   :  { %v2511_v55 = vpop.f32.mrf.mxu1  ;;  %v2589_v37 = vpop.f32.mrf.mxu0 }
 0xbb6   :  { %v2512_v56 = vadd.f32 1e-06, %v2511_v55  ;;  %7871 = vrcp.f32 %v2510_v0  ;;  %v2454_v0 = vmul.f32 %v2387_v63, %v8929_v14  ;;  %v2453_v55 = vmul.f32 %v2385_v48, %v8932_v58 }
 0xbb7   :  { %v2513_v20 = vpop.f32.mrf.mxu1  ;;  %v2456_v14 = vmul.f32 %v2393_v33, %v8940_v25  ;;  %v2455_v58 = vmul.f32 %v2391_v12, %v8942_v13  ;;  %v2457_v13 = vmul.f32 %v9176_v2, %v8955_v49  ;;  %v2340_v49 = vpack.c.bf16 %v9144_v11, %v9135_v30 }
 0xbb8   :  { %7873 = vrcp.f32 %v2512_v56  ;;  %v2514_v52 = vadd.f32 1e-06, %v2513_v20 }
 0xbb9   :  { %v2515_v10 = vpop.f32.mrf.mxu1 }
 0xbba   :  { %v2516_v18 = vadd.f32 1e-06, %v2515_v10  ;;  %v7864_v5 = vpop.eup %7863  ;;  %7875 = vrcp.f32 %v2514_v52  ;;  %v2458_v10 = vmul.f32 %v9178_v27, %v8952_v50 }
 0xbbb   :  { %v9192_v8 = vmul.f32 %v7864_v5, %v2451_v16 }
 0xbbc   :  { %v7866_v61 = vpop.eup %7865  ;;  %7877 = vrcp.f32 %v2516_v18 }
 0xbbd   :  { %v9190_v1 = vmul.f32 %v7866_v61, %v2452_v3 }
 0xbbe   :  { %v7868_v36 = vpop.eup %7867 }
 0xbbf   :  { %2779 = vmatprep.mubr.f32.mxu0 %v9190_v1  ;;  %v9202_v47 = vmul.f32 %v7868_v36, %v2453_v55 }
 0xbc0   :  { %v7870_v56 = vpop.eup %7869  ;;  %2780 = vmatmul.mubr.f32.vlgmr.msra.gmra.mxu0 %v9192_v8 }
 0xbc1   :  { %2971 = vmatpush1.bf16.msra.mxu0 %v8326_v24  ;;  %v9199_v46 = vmul.f32 %v7870_v56, %v2454_v0 }
 0xbc2   :  { %2972 = vmatprep.subr.bf16.mxu0 %v8330_v29 }
 0xbc3   :  { %v2657_v3 = vpop.f32.mrf.mxu1  ;;  %2784 = vmatprep.mubr.f32.mxu0 %v9199_v46  ;;  %v7872_v22 = vpop.eup %7871 }
 0xbc4   :  { %2785 = vmatmul.mubr.f32.gmra.mxu0 %v9202_v47  ;;  %v9212_v20 = vmul.f32 %v7872_v22, %v2455_v58 }
 0xbc5   :  { %v7874_v60 = vpop.eup %7873  ;;  %v2659_v48 = vpop.f32.mrf.mxu1  ;;  %2973 = vmatpush1.bf16.msra.mxu0 %v8354_v62 }
 0xbc6   :  { %2974 = vmatprep.subr.bf16.mxu0 %v8358_v26  ;;  %v9210_v63 = vmul.f32 %v7874_v60, %v2456_v14 }
 0xbc7   :  { %v2662_v37 = vpop.f32.mrf.mxu1  ;;  %v7876_v52 = vpop.eup %7875 }
 0xbc8   :  { %v2676_v25 = vpack.c.bf16 %v2662_v37, %v2657_v3  ;;  %2789 = vmatprep.mubr.f32.mxu0 %v9210_v63  ;;  %v9225_v50 = vmul.f32 %v7876_v52, %v2457_v13 }
 0xbc9   :  { %v7878_v33 = vpop.eup %7877  ;;  %v2664_v12 = vpop.f32.mrf.mxu1  ;;  %2790 = vmatmul.mubr.f32.gmra.mxu0 %v9212_v20 }
 0xbca   :  { %7510 = vmatprep.mubr.msk.bf16.mxu1 %vm753_vm1, %v2676_v25  ;;  %2975 = vmatpush1.bf16.msra.mxu0 %v10672_v44  ;;  %v9222_v18 = vmul.f32 %v7878_v33, %v2458_v10 }
 0xbcb   :  { %v2667_v5 = vpop.f32.mrf.mxu1  ;;  %2976 = vmatprep.subr.bf16.mxu0 %v10674_v23 }
 0xbcc   :  { %2794 = vmatprep.mubr.f32.mxu0 %v9222_v18  ;;  %2824 = vmatprep.subr.mxu1 %v9222_v18 }
 0xbcd   :  { %v2669_v27 = vpop.f32.mrf.mxu1  ;;  %2795 = vmatmul.mubr.f32.gmra.mxu0 %v9225_v50 }
 0xbce   :  { %2977 = vmatpush1.bf16.msra.mxu0 %v10675_v38  ;;  %2994 = vmatprep.mubr.bf16.mxu0 %v10671_v28  ;;  %v2680_v27 = vmul.f32 %v9184_v51, %v9000_v57  ;;  %v2338_v51 = vpack.c.bf16 %v9124_v17, %v9115_v45 }
 0xbcf   :  { %v2672_v2 = vpop.f32.mrf.mxu1  ;;  %3092 = vmatprep.subr.bf16.mxu0 %v2340_v49  ;;  %v2681_v49 = vmul.f32 %v9186_v34, %v9002_v19 }
 0xbd0   :  { %v2677_v61 = vpack.c.bf16 %v2672_v2, %v2667_v5 }
 0xbd1   :  { %v2674_v16 = vpop.f32.mrf.mxu1 }
 0xbd2   :  { %7511 = vmatmul.mubr.msk.bf16.vlgmr.msra.gmra.mxu1 %vm753_vm1, %v2677_v61  ;;  %v2678_v61 = vmul.f32 %v9180_v7, %v9004_v40 }
 0xbd3   :  { %2825 = vmatpush1.xpose.msra.mxu1 %v9225_v50  ;;  %2864 = vmatprep.mubr.f32.mxu1 %v9190_v1 }
 0xbd4   :  { %2826 = vmatprep.subr.mxu1 %v9210_v63 }
 0xbd7   :  { %2827 = vmatpush1.xpose.msra.mxu1 %v9212_v20 }
 0xbd8   :  { %2828 = vmatprep.subr.mxu1 %v9199_v46 }
 0xbdb   :  { %2829 = vmatpush1.xpose.msra.mxu1 %v9202_v47 }
 0xbdc   :  { %2830 = vmatprep.subr.mxu1 %v9190_v1 }
 0xbdf   :  { %2831 = vmatpush1.xpose.msra.mxu1 %v9192_v8 }
 0xbe0   :  { %7514 = vmatprep.subr.bf16.mxu1 %v9068_v59 }
 0xbe2   :  { %2865 = vmatmul.mubr.f32.vlgmr.msra.gmra.mxu1 %v9192_v8 }
 0xbe3   :  { %2869 = vmatprep.mubr.f32.mxu1 %v9199_v46  ;;  %7515 = vmatpush3.bf16.msra.mxu1 %v9068_v59 }
 0xbe4   :  { %7516 = vmatprep.subr.bf16.mxu1 %v9079_v6 }
 0xbe6   :  { %2870 = vmatmul.mubr.f32.gmra.mxu1 %v9202_v47 }
 0xbe7   :  { %2874 = vmatprep.mubr.f32.mxu1 %v9210_v63  ;;  %7517 = vmatpush3.bf16.msra.mxu1 %v9079_v6 }
 0xbea   :  { %2875 = vmatmul.mubr.f32.gmra.mxu1 %v9212_v20 }
 0xbeb   :  { %2879 = vmatprep.mubr.f32.mxu1 %v9222_v18 }
 0xbee   :  { %2880 = vmatmul.mubr.f32.gmra.mxu1 %v9225_v50 }
 0xc80   :  { %v9254_v36 = vpop.f32.mrf.mxu0 }
 0xc82   :  { %v2783_v0 = vpop.f32.mrf.mxu0 }
 0xc83   :  { %v2679_v0 = vmul.f32 %v9182_v15, %v9010_v9  ;;  %v2339_v15 = vpack.c.bf16 %v9147_v43, %v9137_v4 }
 0xc84   :  { %v9256_v56 = vpop.f32.mrf.mxu0 }
 0xc86   :  { %v2788_v59 = vpop.f32.mrf.mxu0 }
 0xc89   :  { %v9258_v55 = vpop.f32.mrf.mxu0 }
 0xc8b   :  { %v2793_v3 = vpop.f32.mrf.mxu0 }
 0xc8d   :  { %v9260_v22 = vpop.f32.mrf.mxu0 }
 0xc8f   :  { %v2798_v14 = vpop.f32.mrf.mxu0 }
 0xc92   :  { %v7512_v60 = vpop.f32.mrf.mxu1 }
 0xc93   :  { %v2731_v6 = vadd.f32 1e-06, %v7512_v60 }
 0xc94   :  { %v2722_v58 = vpop.f32.mrf.mxu1 }
 0xc95   :  { %v2723_v48 = vadd.f32 1e-06, %v2722_v58  ;;  %7879 = vrcp.f32 %v2731_v6 }
 0xc96   :  { %v7513_v37 = vpop.f32.mrf.mxu1 }
 0xc97   :  { %v2734_v52 = vadd.f32 1e-06, %v7513_v37  ;;  %7881 = vrcp.f32 %v2723_v48 }
 0xc98   :  { %v2725_v10 = vpop.f32.mrf.mxu1 }
 0xc99   :  { %7883 = vrcp.f32 %v2734_v52  ;;  %v2726_v25 = vadd.f32 1e-06, %v2725_v10  ;;  %v2337_v10 = vpack.c.bf16 %v9127_v54, %v9117_v21 }
 0xc9b   :  { %7885 = vrcp.f32 %v2726_v25 }
 0xca2   :  { %v2866_v33 = vpop.f32.mrf.mxu1  ;;  %v7880_v13 = vpop.eup %7879 }
 0xca3   :  { %v9270_v59 = vmul.f32 %v7880_v13, %v2680_v27  ;;  %v10694_v13 = vld [vmem:[#allocation8_spill] sm:$0xff] }
 0xca4   :  { %v2868_v12 = vpop.f32.mrf.mxu1  ;;  %v7882_v5 = vpop.eup %7881 }
 0xca5   :  { %v9274_v58 = vmul.f32 %v7882_v5, %v2678_v61 }
 0xca6   :  { %v7884_v2 = vpop.eup %7883  ;;  %v2871_v16 = vpop.f32.mrf.mxu1 }
 0xca7   :  { %v9272_v3 = vmul.f32 %v7884_v2, %v2681_v49  ;;  %v2885_v14 = vpack.c.bf16 %v2871_v16, %v2866_v33  ;;  %v10693_v33 = vld [vmem:[#allocation16_spill] sm:$0xff] }
 0xca8   :  { %v7886_v60 = vpop.eup %7885  ;;  %v2873_v6 = vpop.f32.mrf.mxu1 }
 0xca9   :  { %v9278_v57 = vpack.c.bf16 %v9272_v3, %v9270_v59  ;;  %v9280_v19 = vmul.f32 %v7886_v60, %v2679_v0  ;;  %7518 = vmatprep.mubr.msk.bf16.mxu1 %vm753_vm1, %v2885_v14 }
 0xcaa   :  { %v2876_v40 = vpop.f32.mrf.mxu1 }
 0xcab   :  { %v9285_v9 = vpack.c.bf16 %v9280_v19, %v9274_v58  ;;  %7676 = vmatprep.subr.msk.bf16.mxu1 %vm170_vm0, %v9278_v57  ;;  %v2960_v52 = vsel %vm170_vm0, %v9278_v57, 0 }
 0xcac   :  { %v2878_v7 = vpop.f32.mrf.mxu1 }
 0xcad   :  { %7222 = vmatmul.mubr.msk.bf16.vlgmr.msra.gmra.mxu0 %vm170_vm0, %v9285_v9  ;;  %v2957_v25 = vsel %vm170_vm0, %v9285_v9, 0  ;;  %v10695_v7 = vld [vmem:[#allocation14_spill] sm:$0xff] }
 0xcae   :  { %v2881_v34 = vpop.f32.mrf.mxu1  ;;  %3093 = vmatpush1.bf16.msra.mxu0 %v2339_v15  ;;  %3004 = vmatprep.mubr.bf16.mxu0 %v10671_v28  ;;  %v2889_v15 = vmul.f32 %v9258_v55, %v10695_v7  ;;  %v2534_v7 = vpack.c.bf16 %v9202_v47, %v9192_v8 }
 0xcaf   :  { %v2886_v48 = vpack.c.bf16 %v2881_v34, %v2876_v40  ;;  %3094 = vmatprep.subr.bf16.mxu0 %v2338_v51  ;;  %v10696_v51 = vld [vmem:[#allocation13_spill] sm:$0xff] }
 0xcb0   :  { %v2883_v37 = vpop.f32.mrf.mxu1  ;;  %v2890_v34 = vmul.f32 %v9260_v22, %v10696_v51 }
 0xcb1   :  { %7519 = vmatmul.mubr.msk.bf16.vlgmr.msra.gmra.mxu1 %vm753_vm1, %v2886_v48 }
 0xcb2   :  { %7523 = vmatpush3.bf16.xpose.msra.mxu1 %v2960_v52  ;;  %7526 = vmatprep.mubr.msk.bf16.mxu1 %vm170_vm0, %v9285_v9  ;;  %v10697_v52 = vld [vmem:[#allocation9_spill] sm:$0xff] }
 0xcb3   :  { %7677 = vmatprep.subr.msk.bf16.mxu1 %vm170_vm0, %v9285_v9  ;;  %3095 = vmatpush1.bf16.msra.mxu0 %v2337_v10  ;;  %v2887_v10 = vmul.f32 %v9254_v36, %v10697_v52 }
 0xcb5   :  { %7223 = vmatmul.mubr.msk.bf16.gmra.mxu0 %vm170_vm0, %v9278_v57 }
 0xcb6   :  { %3112 = vmatprep.mubr.bf16.mxu0 %v10671_v28 }
 0xcba   :  { %7525 = vmatpush3.bf16.xpose.msra.mxu1 %v2957_v25  ;;  %v10698_v25 = vld [vmem:[#allocation10_spill] sm:$0xff] }
 0xcbb   :  { %3167 = vmatprep.subr.bf16.mxu1 %v10678_v41 }
 0xcc1   :  { %7527 = vmatmul.mubr.msk.bf16.vlgmr.msra.gmra.mxu1 %vm170_vm0, %v9278_v57 }
 0xcc2   :  { %3168 = vmatpush1.bf16.msra.mxu1 %v8332_v32  ;;  %3191 = vmatprep.mubr.bf16.mxu1 %v10671_v28 }
 0xcc3   :  { %3169 = vmatprep.subr.bf16.mxu1 %v8337_v42 }
 0xcc6   :  { %3170 = vmatpush1.bf16.msra.mxu1 %v8360_v39 }
 0xcc7   :  { %3171 = vmatprep.subr.bf16.mxu1 %v8365_v31 }
 0xcca   :  { %3172 = vmatpush1.bf16.msra.mxu1 %v8375_v35 }
 0xccb   :  { %3173 = vmatprep.subr.bf16.mxu1 %v8378_v53 }
 0xcce   :  { %3174 = vmatpush1.bf16.msra.mxu1 %v10693_v33 }
 0xccf   :  { %3358 = vmatprep.subr.bf16.mxu1 %v10694_v13 }
 0xd71   :  { %v7520_v12 = vpop.f32.mrf.mxu1 }
 0xd72   :  { %v2940_v5 = vadd.f32 1e-06, %v7520_v12  ;;  %v2888_v12 = vmul.f32 %v9256_v56, %v10698_v25 }
 0xd73   :  { %v2931_v27 = vpop.f32.mrf.mxu1 }
 0xd74   :  { %v2932_v49 = vadd.f32 1e-06, %v2931_v27  ;;  %7887 = vrcp.f32 %v2940_v5 }
 0xd75   :  { %v7521_v2 = vpop.f32.mrf.mxu1 }
 0xd76   :  { %v2943_v61 = vadd.f32 1e-06, %v7521_v2  ;;  %7889 = vrcp.f32 %v2932_v49 }
 0xd77   :  { %v2934_v16 = vpop.f32.mrf.mxu1 }
 0xd78   :  { %7891 = vrcp.f32 %v2943_v61  ;;  %v2935_v0 = vadd.f32 1e-06, %v2934_v16 }
 0xd7a   :  { %7893 = vrcp.f32 %v2935_v0 }
 0xd81   :  { %v7528_v14 = vpop.f32.mrf.mxu1  ;;  %v7888_v60 = vpop.eup %7887 }
 0xd82   :  { %v9330_v5 = vmul.f32 %v7888_v60, %v2889_v15  ;;  %v2996_v15 = vpop.f32.mrf.mxu0 }
 0xd83   :  { %v3049_v6 = vpop.f32.mrf.mxu1  ;;  %v7890_v40 = vpop.eup %7889 }
 0xd84   :  { %10699 = vst [vmem:[#allocation12_spill] sm:$0xff] %v9330_v5  ;;  %v9334_v61 = vmul.f32 %v7890_v40, %v2887_v10  ;;  %v2535_v40 = vpack.c.bf16 %v9199_v46, %v9190_v1  ;;  %v2998_v51 = vpop.f32.mrf.mxu0 }
 0xd85   :  { %v7892_v48 = vpop.eup %7891  ;;  %v7529_v37 = vpop.f32.mrf.mxu1 }
 0xd86   :  { %v9332_v27 = vmul.f32 %v7892_v48, %v2890_v34  ;;  %10701 = vst [vmem:[#allocation15_spill] sm:$0xff] %v9334_v61  ;;  %v3065_v0 = vpack.c.bf16 %v7529_v37, %v7528_v14  ;;  %v2536_v14 = vpack.c.bf16 %v9225_v50, %v9212_v20  ;;  %v3000_v34 = vpop.f32.mrf.mxu0 }
 0xd87   :  { %v7894_v49 = vpop.eup %7893  ;;  %v3052_v2 = vpop.f32.mrf.mxu1 }
 0xd88   :  { %10700 = vst [vmem:[#allocation11_spill] sm:$0xff] %v9332_v27  ;;  %v9338_v55 = vpack.c.bf16 %v9332_v27, %v9330_v5  ;;  %v9340_v22 = vmul.f32 %v7894_v49, %v2888_v12  ;;  %v3064_v16 = vpack.c.bf16 %v3052_v2, %v3049_v6  ;;  %v2537_v6 = vpack.c.bf16 %v9222_v18, %v9210_v63  ;;  %v3002_v48 = vpop.f32.mrf.mxu0 }
 0xd8a   :  { %10702 = vst [vmem:[#allocation14_spill] sm:$0xff] %v9340_v22  ;;  %7226 = vmatmul.mubr.msk.bf16.vlgmr.msra.gmra.mxu0 %vm753_vm1, %v3064_v16  ;;  %7678 = vmatprep.subr.msk.bf16.mxu0 %vm170_vm0, %v9338_v55  ;;  %v3157_v36 = vsel %vm170_vm0, %v9338_v55, 0  ;;  %v9349_v56 = vpack.c.bf16 %v9340_v22, %v9334_v61  ;;  %v3006_v37 = vpop.f32.mrf.mxu0 }
 0xd8b   :  { %7531 = vmatpush3.bf16.xpose.msra.mxu0 %v3157_v36  ;;  %3122 = vmatprep.mubr.bf16.mxu0 %v10671_v28 }
 0xd8c   :  { %7228 = vmatmul.mubr.msk.bf16.vlgmr.msra.gmra.mxu1 %vm170_vm0, %v9349_v56  ;;  %7679 = vmatprep.subr.msk.bf16.mxu0 %vm170_vm0, %v9349_v56  ;;  %v3154_v60 = vsel %vm170_vm0, %v9349_v56, 0  ;;  %v3008_v52 = vpop.f32.mrf.mxu0 }
 0xd8d   :  { %3359 = vmatpush1.bf16.xpose.msra.mxu1 %v8326_v24  ;;  %3201 = vmatprep.mubr.bf16.mxu1 %v10671_v28 }
 0xd8e   :  { %3360 = vmatprep.subr.bf16.mxu1 %v8330_v29  ;;  %v3010_v10 = vpop.f32.mrf.mxu0 }
 0xd90   :  { %v3012_v25 = vpop.f32.mrf.mxu0 }
 0xd92   :  { %7227 = vmatmul.mubr.msk.bf16.gmra.mxu0 %vm753_vm1, %v3065_v0 }
 0xd93   :  { %7534 = vmatprep.mubr.msk.bf16.mxu0 %vm170_vm0, %v9349_v56  ;;  %7533 = vmatpush3.bf16.xpose.msra.mxu0 %v3154_v60 }
 0xd94   :  { %7229 = vmatmul.mubr.msk.bf16.gmra.mxu1 %vm170_vm0, %v9338_v55  ;;  %3289 = vmatprep.subr.bf16.mxu0 %v2537_v6 }
 0xd95   :  { %3361 = vmatpush1.bf16.xpose.msra.mxu1 %v8354_v62 }
 0xd96   :  { %3362 = vmatprep.subr.bf16.mxu1 %v8358_v26 }
 0xd9a   :  { %7535 = vmatmul.mubr.msk.bf16.vlgmr.msra.gmra.mxu0 %vm170_vm0, %v9338_v55 }
 0xd9b   :  { %3290 = vmatpush1.bf16.msra.mxu0 %v2536_v14  ;;  %3309 = vmatprep.mubr.bf16.mxu0 %v10671_v28 }
 0xd9c   :  { %3291 = vmatprep.subr.bf16.mxu0 %v2535_v40 }
 0xd9d   :  { %3363 = vmatpush1.bf16.xpose.msra.mxu1 %v10672_v44 }
 0xd9e   :  { %3364 = vmatprep.subr.bf16.mxu1 %v10674_v23 }
 0xd9f   :  { %3292 = vmatpush1.bf16.msra.mxu0 %v2534_v7 }
 0xda5   :  { %3365 = vmatpush1.bf16.xpose.msra.mxu1 %v10675_v38 }
 0xda6   :  { %3567 = vmatprep.subr.bf16.mxu1 %v10678_v41 }
 0xe4a   :  { %v3114_v12 = vpop.f32.mrf.mxu0 }
 0xe4b   :  { %v3115_v49 = vadd.f32 1e-06, %v3114_v12 }
 0xe4c   :  { %v3116_v2 = vpop.f32.mrf.mxu0 }
 0xe4d   :  { %v3117_v16 = vadd.f32 1e-06, %v3116_v2  ;;  %7895 = vrcp.f32 %v3115_v49 }
 0xe4e   :  { %v3118_v36 = vpop.f32.mrf.mxu0 }
 0xe4f   :  { %7897 = vrcp.f32 %v3117_v16  ;;  %v3119_v0 = vadd.f32 1e-06, %v3118_v36  ;;  %v3067_v16 = vmul.f32 %v2998_v51, %v9115_v45 }
 0xe50   :  { %v3120_v60 = vpop.f32.mrf.mxu0 }
 0xe51   :  { %v3121_v6 = vadd.f32 1e-06, %v3120_v60  ;;  %7899 = vrcp.f32 %v3119_v0  ;;  %v3066_v0 = vmul.f32 %v2996_v15, %v9117_v21 }
 0xe52   :  { %v3124_v14 = vpop.f32.mrf.mxu0 }
 0xe53   :  { %7901 = vrcp.f32 %v3121_v6  ;;  %v3125_v40 = vadd.f32 1e-06, %v3124_v14 }
 0xe54   :  { %v3126_v7 = vpop.f32.mrf.mxu0 }
 0xe55   :  { %v3127_v22 = vadd.f32 1e-06, %v3126_v7  ;;  %7903 = vrcp.f32 %v3125_v40 }
 0xe56   :  { %v3128_v61 = vpop.f32.mrf.mxu0 }
 0xe57   :  { %7905 = vrcp.f32 %v3127_v22  ;;  %v3129_v27 = vadd.f32 1e-06, %v3128_v61  ;;  %v3069_v61 = vmul.f32 %v3002_v48, %v9124_v17  ;;  %v3071_v17 = vmul.f32 %v3008_v52, %v9135_v30 }
 0xe58   :  { %v3130_v5 = vpop.f32.mrf.mxu0  ;;  %v3072_v52 = vmul.f32 %v3010_v10, %v9147_v43 }
 0xe59   :  { %v3131_v12 = vadd.f32 1e-06, %v3130_v5  ;;  %7907 = vrcp.f32 %v3129_v27  ;;  %v3068_v27 = vmul.f32 %v3000_v34, %v9127_v54  ;;  %v3070_v34 = vmul.f32 %v3006_v37, %v9137_v4 }
 0xe5a   :  { %v7536_v2 = vpop.f32.mrf.mxu0  ;;  %v7896_v49 = vpop.eup %7895 }
 0xe5b   :  { %7909 = vrcp.f32 %v3131_v12  ;;  %v9387_v14 = vmul.f32 %v7896_v49, %v3066_v0 }
 0xe5c   :  { %v7898_v36 = vpop.eup %7897  ;;  %v3246_v60 = vpop.f32.mrf.mxu0 }
 0xe5d   :  { %v9385_v6 = vmul.f32 %v7898_v36, %v3067_v16  ;;  %v3073_v16 = vmul.f32 %v3012_v25, %v9144_v11  ;;  %v3193_v11 = vpop.f32.mrf.mxu1 }
 0xe5e   :  { %v7537_v40 = vpop.f32.mrf.mxu0  ;;  %v7900_v7 = vpop.eup %7899 }
 0xe5f   :  { %3382 = vmatprep.mubr.f32.mxu1 %v9385_v6  ;;  %v9397_v15 = vmul.f32 %v7900_v7, %v3068_v27  ;;  %v3262_v37 = vpack.c.bf16 %v7537_v40, %v7536_v2  ;;  %v3195_v43 = vpop.f32.mrf.mxu1 }
 0xe60   :  { %v7902_v5 = vpop.eup %7901  ;;  %3383 = vmatmul.mubr.f32.vlgmr.msra.gmra.mxu1 %v9387_v14  ;;  %v3249_v45 = vpop.f32.mrf.mxu0 }
 0xe61   :  { %3568 = vmatpush1.bf16.xpose.msra.mxu1 %v8332_v32  ;;  %v3261_v21 = vpack.c.bf16 %v3249_v45, %v3246_v60  ;;  %v9394_v22 = vmul.f32 %v7902_v5, %v3069_v61  ;;  %v3197_v10 = vpop.f32.mrf.mxu1 }
 0xe62   :  { %3569 = vmatprep.subr.bf16.mxu1 %v8337_v42  ;;  %v7904_v51 = vpop.eup %7903 }
 0xe63   :  { %3387 = vmatprep.mubr.f32.mxu1 %v9394_v22  ;;  %7232 = vmatmul.mubr.msk.bf16.vlgmr.msra.gmra.mxu0 %vm753_vm1, %v3261_v21  ;;  %v9407_v12 = vmul.f32 %v7904_v51, %v3070_v34  ;;  %v3199_v25 = vpop.f32.mrf.mxu1 }
 0xe64   :  { %v7906_v54 = vpop.eup %7905  ;;  %3388 = vmatmul.mubr.f32.gmra.mxu1 %v9397_v15  ;;  %3319 = vmatprep.mubr.bf16.mxu0 %v10671_v28 }
 0xe65   :  { %v9405_v48 = vmul.f32 %v7906_v54, %v3071_v17  ;;  %v3203_v2 = vpop.f32.mrf.mxu1 }
 0xe66   :  { %v7908_v49 = vpop.eup %7907 }
 0xe67   :  { %3392 = vmatprep.mubr.f32.mxu1 %v9405_v48  ;;  %v9417_v36 = vmul.f32 %v7908_v49, %v3072_v52 }
 0xe68   :  { %v7910_v30 = vpop.eup %7909  ;;  %3393 = vmatmul.mubr.f32.gmra.mxu1 %v9407_v12 }
 0xe69   :  { %3570 = vmatpush1.bf16.xpose.msra.mxu1 %v8360_v39  ;;  %v9414_v4 = vmul.f32 %v7910_v30, %v3073_v16 }
 0xe6a   :  { %3571 = vmatprep.subr.bf16.mxu1 %v8365_v31 }
 0xe6b   :  { %3397 = vmatprep.mubr.f32.mxu1 %v9414_v4  ;;  %3427 = vmatprep.subr.mxu0 %v9414_v4 }
 0xe6c   :  { %7233 = vmatmul.mubr.msk.bf16.gmra.mxu0 %vm753_vm1, %v3262_v37  ;;  %3398 = vmatmul.mubr.f32.gmra.mxu1 %v9417_v36 }
 0xe6d   :  { %3428 = vmatpush1.xpose.msra.mxu0 %v9417_v36  ;;  %3467 = vmatprep.mubr.f32.mxu0 %v9385_v6 }
 0xe6e   :  { %3429 = vmatprep.subr.mxu0 %v9405_v48 }
 0xe71   :  { %3430 = vmatpush1.xpose.msra.mxu0 %v9407_v12  ;;  %3572 = vmatpush1.bf16.xpose.msra.mxu1 %v8375_v35 }
 0xe72   :  { %3431 = vmatprep.subr.mxu0 %v9394_v22  ;;  %3573 = vmatprep.subr.bf16.mxu1 %v8378_v53 }
 0xe75   :  { %3432 = vmatpush1.xpose.msra.mxu0 %v9397_v15 }
 0xe76   :  { %3433 = vmatprep.subr.mxu0 %v9385_v6 }
 0xe79   :  { %3434 = vmatpush1.xpose.msra.mxu0 %v9387_v14  ;;  %3574 = vmatpush1.bf16.xpose.msra.mxu1 %v10693_v33  ;;  %v3264_v33 = vmul.f32 %v3195_v43, %v9190_v1 }
 0xe7a   :  { %7538 = vmatprep.subr.bf16.mxu0 %v9278_v57  ;;  %3782 = vmatprep.subr.bf16.mxu1 %v10694_v13 }
 0xe7c   :  { %3468 = vmatmul.mubr.f32.vlgmr.msra.gmra.mxu0 %v9387_v14 }
 0xe7d   :  { %3472 = vmatprep.mubr.f32.mxu0 %v9394_v22  ;;  %7539 = vmatpush3.bf16.msra.mxu0 %v9278_v57  ;;  %v3205_v57 = vpop.f32.mrf.mxu1 }
 0xe7e   :  { %7540 = vmatprep.subr.bf16.mxu0 %v9285_v9 }
 0xe7f   :  { %v9446_v0 = vpop.f32.mrf.mxu1 }
 0xe80   :  { %3473 = vmatmul.mubr.f32.gmra.mxu0 %v9397_v15 }
 0xe81   :  { %3477 = vmatprep.mubr.f32.mxu0 %v9405_v48  ;;  %7541 = vmatpush3.bf16.msra.mxu0 %v9285_v9  ;;  %v9448_v60 = vpop.f32.mrf.mxu1 }
 0xe84   :  { %3478 = vmatmul.mubr.f32.gmra.mxu0 %v9407_v12 }
 0xe85   :  { %3482 = vmatprep.mubr.f32.mxu0 %v9414_v4 }
 0xe88   :  { %3483 = vmatmul.mubr.f32.gmra.mxu0 %v9417_v36 }
 0xf20   :  { %v9450_v40 = vpop.f32.mrf.mxu1 }
 0xf22   :  { %v3386_v7 = vpop.f32.mrf.mxu1 }
 0xf23   :  { %v3311_v9 = vpop.f32.mrf.mxu0 }
 0xf24   :  { %v3312_v61 = vadd.f32 1e-06, %v3311_v9  ;;  %v9452_v5 = vpop.f32.mrf.mxu1 }
 0xf25   :  { %v3313_v27 = vpop.f32.mrf.mxu0 }
 0xf26   :  { %v3314_v45 = vadd.f32 1e-06, %v3313_v27  ;;  %v3391_v21 = vpop.f32.mrf.mxu1  ;;  %7911 = vrcp.f32 %v3312_v61 }
 0xf27   :  { %v3315_v51 = vpop.f32.mrf.mxu0 }
 0xf28   :  { %7913 = vrcp.f32 %v3314_v45  ;;  %v3316_v17 = vadd.f32 1e-06, %v3315_v51  ;;  %v9454_v54 = vpop.f32.mrf.mxu1 }
 0xf29   :  { %v3317_v34 = vpop.f32.mrf.mxu0 }
 0xf2a   :  { %v3318_v49 = vadd.f32 1e-06, %v3317_v34  ;;  %v3396_v16 = vpop.f32.mrf.mxu1  ;;  %7915 = vrcp.f32 %v3316_v17  ;;  %v3263_v17 = vmul.f32 %v3193_v11, %v9192_v8 }
 0xf2c   :  { %7917 = vrcp.f32 %v3318_v49  ;;  %v3321_v30 = vpop.f32.mrf.mxu0  ;;  %v9456_v52 = vpop.f32.mrf.mxu1 }
 0xf2d   :  { %v3322_v37 = vadd.f32 1e-06, %v3321_v30 }
 0xf2e   :  { %v3323_v7 = vpop.f32.mrf.mxu0  ;;  %v3401_v9 = vpop.f32.mrf.mxu1 }
 0xf2f   :  { %v3324_v13 = vadd.f32 1e-06, %v3323_v7  ;;  %7919 = vrcp.f32 %v3322_v37  ;;  %v3266_v37 = vmul.f32 %v3199_v25, %v9199_v46  ;;  %v3265_v7 = vmul.f32 %v3197_v10, %v9202_v47 }
 0xf30   :  { %v3325_v27 = vpop.f32.mrf.mxu0  ;;  %v3268_v46 = vmul.f32 %v3205_v57, %v9210_v63  ;;  %v3267_v47 = vmul.f32 %v3203_v2, %v9212_v20  ;;  %v3269_v20 = vmul.f32 %v9446_v0, %v9225_v50  ;;  %v3152_v50 = vpack.c.bf16 %v9414_v4, %v9405_v48 }
 0xf31   :  { %7921 = vrcp.f32 %v3324_v13  ;;  %v3326_v61 = vadd.f32 1e-06, %v3325_v27 }
 0xf32   :  { %v3327_v45 = vpop.f32.mrf.mxu0 }
 0xf33   :  { %v3328_v21 = vadd.f32 1e-06, %v3327_v45  ;;  %v7912_v51 = vpop.eup %7911  ;;  %7923 = vrcp.f32 %v3326_v61  ;;  %v3270_v45 = vmul.f32 %v9448_v60, %v9222_v18 }
 0xf34   :  { %v9462_v16 = vmul.f32 %v7912_v51, %v3263_v17 }
 0xf35   :  { %v7914_v34 = vpop.eup %7913  ;;  %7925 = vrcp.f32 %v3328_v21 }
 0xf36   :  { %v9460_v49 = vmul.f32 %v7914_v34, %v3264_v33 }
 0xf37   :  { %v7916_v30 = vpop.eup %7915 }
 0xf38   :  { %3591 = vmatprep.mubr.f32.mxu1 %v9460_v49  ;;  %v9472_v8 = vmul.f32 %v7916_v30, %v3265_v7 }
 0xf39   :  { %v7918_v13 = vpop.eup %7917  ;;  %3592 = vmatmul.mubr.f32.vlgmr.msra.gmra.mxu1 %v9462_v16 }
 0xf3a   :  { %3783 = vmatpush1.bf16.msra.mxu1 %v8326_v24  ;;  %v9469_v1 = vmul.f32 %v7918_v13, %v3266_v37 }
 0xf3b   :  { %3784 = vmatprep.subr.bf16.mxu1 %v8330_v29 }
 0xf3c   :  { %v3469_v33 = vpop.f32.mrf.mxu0  ;;  %3596 = vmatprep.mubr.f32.mxu1 %v9469_v1  ;;  %v7920_v11 = vpop.eup %7919 }
 0xf3d   :  { %3597 = vmatmul.mubr.f32.gmra.mxu1 %v9472_v8  ;;  %v9482_v27 = vmul.f32 %v7920_v11, %v3267_v47 }
 0xf3e   :  { %v7922_v43 = vpop.eup %7921  ;;  %v3471_v10 = vpop.f32.mrf.mxu0  ;;  %3785 = vmatpush1.bf16.msra.mxu1 %v8354_v62 }
 0xf3f   :  { %3786 = vmatprep.subr.bf16.mxu1 %v8358_v26  ;;  %v9480_v25 = vmul.f32 %v7922_v43, %v3268_v46 }
 0xf40   :  { %v3474_v9 = vpop.f32.mrf.mxu0  ;;  %v7924_v61 = vpop.eup %7923 }
 0xf41   :  { %v3488_v63 = vpack.c.bf16 %v3474_v9, %v3469_v33  ;;  %3601 = vmatprep.mubr.f32.mxu1 %v9480_v25  ;;  %v9495_v18 = vmul.f32 %v7924_v61, %v3269_v20 }
 0xf42   :  { %v7926_v57 = vpop.eup %7925  ;;  %v3476_v2 = vpop.f32.mrf.mxu0  ;;  %3602 = vmatmul.mubr.f32.gmra.mxu1 %v9482_v27 }
 0xf43   :  { %7542 = vmatprep.mubr.msk.bf16.mxu0 %vm753_vm1, %v3488_v63  ;;  %3787 = vmatpush1.bf16.msra.mxu1 %v10672_v44  ;;  %v9492_v21 = vmul.f32 %v7926_v57, %v3270_v45 }
 0xf44   :  { %v3479_v51 = vpop.f32.mrf.mxu0  ;;  %3788 = vmatprep.subr.bf16.mxu1 %v10674_v23 }
 0xf45   :  { %3606 = vmatprep.mubr.f32.mxu1 %v9492_v21  ;;  %3636 = vmatprep.subr.mxu0 %v9492_v21 }
 0xf46   :  { %v3481_v60 = vpop.f32.mrf.mxu0  ;;  %3607 = vmatmul.mubr.f32.gmra.mxu1 %v9495_v18 }
 0xf47   :  { %3789 = vmatpush1.bf16.msra.mxu1 %v10675_v38  ;;  %3806 = vmatprep.mubr.bf16.mxu1 %v10671_v28  ;;  %v3492_v60 = vmul.f32 %v9454_v54, %v9270_v59  ;;  %v3150_v54 = vpack.c.bf16 %v9394_v22, %v9385_v6 }
 0xf48   :  { %v3484_v0 = vpop.f32.mrf.mxu0  ;;  %3904 = vmatprep.subr.bf16.mxu1 %v3152_v50  ;;  %v3493_v50 = vmul.f32 %v9456_v52, %v9272_v3 }
 0xf49   :  { %v3489_v34 = vpack.c.bf16 %v3484_v0, %v3479_v51 }
 0xf4a   :  { %v3486_v17 = vpop.f32.mrf.mxu0 }
 0xf4b   :  { %7543 = vmatmul.mubr.msk.bf16.vlgmr.msra.gmra.mxu0 %vm753_vm1, %v3489_v34  ;;  %v3490_v34 = vmul.f32 %v9450_v40, %v9274_v58 }
 0xf4c   :  { %3637 = vmatpush1.xpose.msra.mxu0 %v9495_v18  ;;  %3676 = vmatprep.mubr.f32.mxu0 %v9460_v49 }
 0xf4d   :  { %3638 = vmatprep.subr.mxu0 %v9480_v25 }
 0xf50   :  { %3639 = vmatpush1.xpose.msra.mxu0 %v9482_v27 }
 0xf51   :  { %3640 = vmatprep.subr.mxu0 %v9469_v1 }
 0xf54   :  { %3641 = vmatpush1.xpose.msra.mxu0 %v9472_v8 }
 0xf55   :  { %3642 = vmatprep.subr.mxu0 %v9460_v49 }
 0xf58   :  { %3643 = vmatpush1.xpose.msra.mxu0 %v9462_v16 }
 0xf59   :  { %7546 = vmatprep.subr.bf16.mxu0 %v9338_v55 }
 0xf5b   :  { %3677 = vmatmul.mubr.f32.vlgmr.msra.gmra.mxu0 %v9462_v16 }
 0xf5c   :  { %3681 = vmatprep.mubr.f32.mxu0 %v9469_v1  ;;  %7547 = vmatpush3.bf16.msra.mxu0 %v9338_v55 }
 0xf5d   :  { %7548 = vmatprep.subr.bf16.mxu0 %v9349_v56 }
 0xf5f   :  { %3682 = vmatmul.mubr.f32.gmra.mxu0 %v9472_v8 }
 0xf60   :  { %3686 = vmatprep.mubr.f32.mxu0 %v9480_v25  ;;  %7549 = vmatpush3.bf16.msra.mxu0 %v9349_v56 }
 0xf63   :  { %3687 = vmatmul.mubr.f32.gmra.mxu0 %v9482_v27 }
 0xf64   :  { %3691 = vmatprep.mubr.f32.mxu0 %v9492_v21 }
 0xf67   :  { %3692 = vmatmul.mubr.f32.gmra.mxu0 %v9495_v18 }
 0xff9   :  { %v9524_v30 = vpop.f32.mrf.mxu1 }
 0xffb   :  { %v3595_v37 = vpop.f32.mrf.mxu1 }
 0xffc   :  { %v3491_v37 = vmul.f32 %v9452_v5, %v9280_v19  ;;  %v3151_v5 = vpack.c.bf16 %v9417_v36, %v9407_v12 }
 0xffd   :  { %v9526_v13 = vpop.f32.mrf.mxu1 }
 0xfff   :  { %v3600_v55 = vpop.f32.mrf.mxu1 }
0x1002   :  { %v9528_v7 = vpop.f32.mrf.mxu1 }
0x1004   :  { %v3605_v33 = vpop.f32.mrf.mxu1 }
0x1006   :  { %v9530_v11 = vpop.f32.mrf.mxu1 }
0x1008   :  { %v3610_v46 = vpop.f32.mrf.mxu1 }
0x100b   :  { %v7544_v43 = vpop.f32.mrf.mxu0 }
0x100c   :  { %v3543_v56 = vadd.f32 1e-06, %v7544_v43 }
0x100d   :  { %v3534_v47 = vpop.f32.mrf.mxu0 }
0x100e   :  { %v3535_v10 = vadd.f32 1e-06, %v3534_v47  ;;  %7927 = vrcp.f32 %v3543_v56 }
0x100f   :  { %v7545_v9 = vpop.f32.mrf.mxu0 }
0x1010   :  { %v3546_v61 = vadd.f32 1e-06, %v7545_v9  ;;  %7929 = vrcp.f32 %v3535_v10 }
0x1011   :  { %v3537_v45 = vpop.f32.mrf.mxu0 }
0x1012   :  { %7931 = vrcp.f32 %v3546_v61  ;;  %v3538_v63 = vadd.f32 1e-06, %v3537_v45  ;;  %v3149_v45 = vpack.c.bf16 %v9397_v15, %v9387_v14 }
0x1014   :  { %7933 = vrcp.f32 %v3538_v63 }
0x101b   :  { %v3678_v57 = vpop.f32.mrf.mxu0  ;;  %v7928_v20 = vpop.eup %7927 }
0x101c   :  { %v9540_v55 = vmul.f32 %v7928_v20, %v3492_v60  ;;  %v10704_v20 = vld [vmem:[#allocation8_spill] sm:$0xff] }
0x101d   :  { %v3680_v2 = vpop.f32.mrf.mxu0  ;;  %v7930_v51 = vpop.eup %7929 }
0x101e   :  { %v9544_v47 = vmul.f32 %v7930_v51, %v3490_v34 }
0x101f   :  { %v7932_v0 = vpop.eup %7931  ;;  %v3683_v17 = vpop.f32.mrf.mxu0 }
0x1020   :  { %v9542_v33 = vmul.f32 %v7932_v0, %v3493_v50  ;;  %v3697_v46 = vpack.c.bf16 %v3683_v17, %v3678_v57  ;;  %v10703_v57 = vld [vmem:[#allocation16_spill] sm:$0xff] }
0x1021   :  { %v7934_v43 = vpop.eup %7933  ;;  %v3685_v56 = vpop.f32.mrf.mxu0 }
0x1022   :  { %v9548_v59 = vpack.c.bf16 %v9542_v33, %v9540_v55  ;;  %v9550_v3 = vmul.f32 %v7934_v43, %v3491_v37  ;;  %7550 = vmatprep.mubr.msk.bf16.mxu0 %vm753_vm1, %v3697_v46 }
0x1023   :  { %v3688_v58 = vpop.f32.mrf.mxu0 }
0x1024   :  { %v9555_v19 = vpack.c.bf16 %v9550_v3, %v9544_v47  ;;  %7680 = vmatprep.subr.msk.bf16.mxu0 %vm170_vm0, %v9548_v59  ;;  %v3772_v61 = vsel %vm170_vm0, %v9548_v59, 0 }
0x1025   :  { %v3690_v40 = vpop.f32.mrf.mxu0 }
0x1026   :  { %7238 = vmatmul.mubr.msk.bf16.vlgmr.msra.gmra.mxu1 %vm170_vm0, %v9555_v19  ;;  %v3769_v63 = vsel %vm170_vm0, %v9555_v19, 0  ;;  %v10705_v40 = vld [vmem:[#allocation12_spill] sm:$0xff] }
0x1027   :  { %v3693_v52 = vpop.f32.mrf.mxu0  ;;  %3905 = vmatpush1.bf16.msra.mxu1 %v3151_v5  ;;  %3816 = vmatprep.mubr.bf16.mxu1 %v10671_v28  ;;  %v3701_v5 = vmul.f32 %v9528_v7, %v10705_v40  ;;  %v3346_v40 = vpack.c.bf16 %v9472_v8, %v9462_v16 }
0x1028   :  { %v3698_v10 = vpack.c.bf16 %v3693_v52, %v3688_v58  ;;  %3906 = vmatprep.subr.bf16.mxu1 %v3150_v54  ;;  %v10706_v54 = vld [vmem:[#allocation11_spill] sm:$0xff] }
0x1029   :  { %v3695_v9 = vpop.f32.mrf.mxu0  ;;  %v3702_v52 = vmul.f32 %v9530_v11, %v10706_v54 }
0x102a   :  { %7551 = vmatmul.mubr.msk.bf16.vlgmr.msra.gmra.mxu0 %vm753_vm1, %v3698_v10 }
0x102b   :  { %7555 = vmatpush3.bf16.xpose.msra.mxu0 %v3772_v61  ;;  %7558 = vmatprep.mubr.msk.bf16.mxu0 %vm170_vm0, %v9555_v19  ;;  %v10707_v61 = vld [vmem:[#allocation15_spill] sm:$0xff] }
0x102c   :  { %7681 = vmatprep.subr.msk.bf16.mxu0 %vm170_vm0, %v9555_v19  ;;  %3907 = vmatpush1.bf16.msra.mxu1 %v3149_v45  ;;  %v3699_v45 = vmul.f32 %v9524_v30, %v10707_v61 }
0x102e   :  { %7239 = vmatmul.mubr.msk.bf16.gmra.mxu1 %vm170_vm0, %v9548_v59 }
0x102f   :  { %3924 = vmatprep.mubr.bf16.mxu1 %v10671_v28 }
0x1033   :  { %7557 = vmatpush3.bf16.xpose.msra.mxu0 %v3769_v63  ;;  %v10708_v63 = vld [vmem:[#allocation14_spill] sm:$0xff] }
0x1034   :  { %3979 = vmatprep.subr.bf16.mxu0 %v10678_v41 }
0x103a   :  { %7559 = vmatmul.mubr.msk.bf16.vlgmr.msra.gmra.mxu0 %vm170_vm0, %v9548_v59 }
0x103b   :  { %3980 = vmatpush1.bf16.msra.mxu0 %v8332_v32  ;;  %4003 = vmatprep.mubr.bf16.mxu0 %v10671_v28 }
0x103c   :  { %3981 = vmatprep.subr.bf16.mxu0 %v8337_v42 }
0x103f   :  { %3982 = vmatpush1.bf16.msra.mxu0 %v8360_v39 }
0x1040   :  { %3983 = vmatprep.subr.bf16.mxu0 %v8365_v31 }
0x1043   :  { %3984 = vmatpush1.bf16.msra.mxu0 %v8375_v35 }
0x1044   :  { %3985 = vmatprep.subr.bf16.mxu0 %v8378_v53 }
0x1047   :  { %3986 = vmatpush1.bf16.msra.mxu0 %v10703_v57 }
0x1048   :  { %4170 = vmatprep.subr.bf16.mxu0 %v10704_v20 }
0x10ea   :  { %v7552_v2 = vpop.f32.mrf.mxu0 }
0x10eb   :  { %v3752_v51 = vadd.f32 1e-06, %v7552_v2  ;;  %v3700_v2 = vmul.f32 %v9526_v13, %v10708_v63 }
0x10ec   :  { %v3743_v60 = vpop.f32.mrf.mxu0 }
0x10ed   :  { %v3744_v50 = vadd.f32 1e-06, %v3743_v60  ;;  %7935 = vrcp.f32 %v3752_v51 }
0x10ee   :  { %v7553_v0 = vpop.f32.mrf.mxu0 }
0x10ef   :  { %v3755_v34 = vadd.f32 1e-06, %v7553_v0  ;;  %7937 = vrcp.f32 %v3744_v50 }
0x10f0   :  { %v3746_v17 = vpop.f32.mrf.mxu0 }
0x10f1   :  { %7939 = vrcp.f32 %v3755_v34  ;;  %v3747_v37 = vadd.f32 1e-06, %v3746_v17 }
0x10f3   :  { %7941 = vrcp.f32 %v3747_v37 }
0x10fa   :  { %v7560_v46 = vpop.f32.mrf.mxu0  ;;  %v7936_v43 = vpop.eup %7935 }
0x10fb   :  { %v9600_v51 = vmul.f32 %v7936_v43, %v3701_v5  ;;  %v3808_v5 = vpop.f32.mrf.mxu1 }
0x10fc   :  { %v3861_v56 = vpop.f32.mrf.mxu0  ;;  %v7938_v58 = vpop.eup %7937 }
0x10fd   :  { %10709 = vst [vmem:[#allocation13_spill] sm:$0xff] %v9600_v51  ;;  %v9604_v34 = vmul.f32 %v7938_v58, %v3699_v45  ;;  %v3347_v58 = vpack.c.bf16 %v9469_v1, %v9460_v49  ;;  %v3810_v54 = vpop.f32.mrf.mxu1 }
0x10fe   :  { %v7940_v10 = vpop.eup %7939  ;;  %v7561_v9 = vpop.f32.mrf.mxu0 }
0x10ff   :  { %v9602_v60 = vmul.f32 %v7940_v10, %v3702_v52  ;;  %10711 = vst [vmem:[#allocation10_spill] sm:$0xff] %v9604_v34  ;;  %v3877_v37 = vpack.c.bf16 %v7561_v9, %v7560_v46  ;;  %v3348_v46 = vpack.c.bf16 %v9495_v18, %v9482_v27  ;;  %v3812_v52 = vpop.f32.mrf.mxu1 }
0x1100   :  { %v7942_v50 = vpop.eup %7941  ;;  %v3864_v0 = vpop.f32.mrf.mxu0 }
0x1101   :  { %10710 = vst [vmem:[#allocation9_spill] sm:$0xff] %v9602_v60  ;;  %v9608_v7 = vpack.c.bf16 %v9602_v60, %v9600_v51  ;;  %v9610_v11 = vmul.f32 %v7942_v50, %v3700_v2  ;;  %v3876_v17 = vpack.c.bf16 %v3864_v0, %v3861_v56  ;;  %v3349_v56 = vpack.c.bf16 %v9492_v21, %v9480_v25  ;;  %v3814_v10 = vpop.f32.mrf.mxu1 }
0x1103   :  { %10712 = vst [vmem:[#allocation12_spill] sm:$0xff] %v9610_v11  ;;  %7242 = vmatmul.mubr.msk.bf16.vlgmr.msra.gmra.mxu1 %vm753_vm1, %v3876_v17  ;;  %7682 = vmatprep.subr.msk.bf16.mxu1 %vm170_vm0, %v9608_v7  ;;  %v3969_v30 = vsel %vm170_vm0, %v9608_v7, 0  ;;  %v9619_v13 = vpack.c.bf16 %v9610_v11, %v9604_v34  ;;  %v3818_v9 = vpop.f32.mrf.mxu1 }
0x1104   :  { %7563 = vmatpush3.bf16.xpose.msra.mxu1 %v3969_v30  ;;  %3934 = vmatprep.mubr.bf16.mxu1 %v10671_v28 }
0x1105   :  { %7244 = vmatmul.mubr.msk.bf16.vlgmr.msra.gmra.mxu0 %vm170_vm0, %v9619_v13  ;;  %7683 = vmatprep.subr.msk.bf16.mxu1 %vm170_vm0, %v9619_v13  ;;  %v3966_v43 = vsel %vm170_vm0, %v9619_v13, 0  ;;  %v3820_v61 = vpop.f32.mrf.mxu1 }
0x1106   :  { %4171 = vmatpush1.bf16.xpose.msra.mxu0 %v8326_v24  ;;  %4013 = vmatprep.mubr.bf16.mxu0 %v10671_v28 }
0x1107   :  { %4172 = vmatprep.subr.bf16.mxu0 %v8330_v29  ;;  %v3822_v45 = vpop.f32.mrf.mxu1 }
0x1109   :  { %v3824_v63 = vpop.f32.mrf.mxu1 }
0x110b   :  { %7243 = vmatmul.mubr.msk.bf16.gmra.mxu1 %vm753_vm1, %v3877_v37 }
0x110c   :  { %7566 = vmatprep.mubr.msk.bf16.mxu1 %vm170_vm0, %v9619_v13  ;;  %7565 = vmatpush3.bf16.xpose.msra.mxu1 %v3966_v43 }
0x110d   :  { %7245 = vmatmul.mubr.msk.bf16.gmra.mxu0 %vm170_vm0, %v9608_v7  ;;  %4101 = vmatprep.subr.bf16.mxu1 %v3349_v56 }
0x110e   :  { %4173 = vmatpush1.bf16.xpose.msra.mxu0 %v8354_v62 }
0x110f   :  { %4174 = vmatprep.subr.bf16.mxu0 %v8358_v26 }
0x1113   :  { %7567 = vmatmul.mubr.msk.bf16.vlgmr.msra.gmra.mxu1 %vm170_vm0, %v9608_v7 }
0x1114   :  { %4102 = vmatpush1.bf16.msra.mxu1 %v3348_v46  ;;  %4121 = vmatprep.mubr.bf16.mxu1 %v10671_v28 }
0x1115   :  { %4103 = vmatprep.subr.bf16.mxu1 %v3347_v58 }
0x1116   :  { %4175 = vmatpush1.bf16.xpose.msra.mxu0 %v10672_v44 }
0x1117   :  { %4176 = vmatprep.subr.bf16.mxu0 %v10674_v23 }
0x1118   :  { %4104 = vmatpush1.bf16.msra.mxu1 %v3346_v40 }
0x111e   :  { %4177 = vmatpush1.bf16.xpose.msra.mxu0 %v10675_v38 }
0x111f   :  { %4379 = vmatprep.subr.bf16.mxu0 %v10678_v41 }
0x11c3   :  { %v3926_v2 = vpop.f32.mrf.mxu1 }
0x11c4   :  { %v3927_v50 = vadd.f32 1e-06, %v3926_v2 }
0x11c5   :  { %v3928_v0 = vpop.f32.mrf.mxu1 }
0x11c6   :  { %v3929_v17 = vadd.f32 1e-06, %v3928_v0  ;;  %7943 = vrcp.f32 %v3927_v50 }
0x11c7   :  { %v3930_v30 = vpop.f32.mrf.mxu1 }
0x11c8   :  { %7945 = vrcp.f32 %v3929_v17  ;;  %v3931_v37 = vadd.f32 1e-06, %v3930_v30  ;;  %v3879_v17 = vmul.f32 %v3810_v54, %v9385_v6 }
0x11c9   :  { %v3932_v43 = vpop.f32.mrf.mxu1 }
0x11ca   :  { %v3933_v56 = vadd.f32 1e-06, %v3932_v43  ;;  %7947 = vrcp.f32 %v3931_v37  ;;  %v3878_v37 = vmul.f32 %v3808_v5, %v9387_v14 }
0x11cb   :  { %v3936_v46 = vpop.f32.mrf.mxu1 }
0x11cc   :  { %7949 = vrcp.f32 %v3933_v56  ;;  %v3937_v58 = vadd.f32 1e-06, %v3936_v46 }
0x11cd   :  { %v3938_v40 = vpop.f32.mrf.mxu1 }
0x11ce   :  { %v3939_v11 = vadd.f32 1e-06, %v3938_v40  ;;  %7951 = vrcp.f32 %v3937_v58 }
0x11cf   :  { %v3940_v34 = vpop.f32.mrf.mxu1 }
0x11d0   :  { %7953 = vrcp.f32 %v3939_v11  ;;  %v3941_v60 = vadd.f32 1e-06, %v3940_v34  ;;  %v3881_v34 = vmul.f32 %v3814_v10, %v9394_v22  ;;  %v3883_v22 = vmul.f32 %v3820_v61, %v9405_v48 }
0x11d1   :  { %v3942_v51 = vpop.f32.mrf.mxu1  ;;  %v3884_v61 = vmul.f32 %v3822_v45, %v9417_v36 }
0x11d2   :  { %v3943_v2 = vadd.f32 1e-06, %v3942_v51  ;;  %7955 = vrcp.f32 %v3941_v60  ;;  %v3880_v60 = vmul.f32 %v3812_v52, %v9397_v15  ;;  %v3882_v52 = vmul.f32 %v3818_v9, %v9407_v12 }
0x11d3   :  { %v7568_v0 = vpop.f32.mrf.mxu1  ;;  %v7944_v50 = vpop.eup %7943 }
0x11d4   :  { %7957 = vrcp.f32 %v3943_v2  ;;  %v9657_v46 = vmul.f32 %v7944_v50, %v3878_v37 }
0x11d5   :  { %v7946_v30 = vpop.eup %7945  ;;  %v4058_v43 = vpop.f32.mrf.mxu1 }
0x11d6   :  { %v9655_v56 = vmul.f32 %v7946_v30, %v3879_v17  ;;  %v3885_v17 = vmul.f32 %v3824_v63, %v9414_v4  ;;  %v4005_v4 = vpop.f32.mrf.mxu0 }
0x11d7   :  { %v7569_v58 = vpop.f32.mrf.mxu1  ;;  %v7948_v40 = vpop.eup %7947 }
0x11d8   :  { %4194 = vmatprep.mubr.f32.mxu0 %v9655_v56  ;;  %v9667_v5 = vmul.f32 %v7948_v40, %v3880_v60  ;;  %v4074_v9 = vpack.c.bf16 %v7569_v58, %v7568_v0  ;;  %v4007_v36 = vpop.f32.mrf.mxu0 }
0x11d9   :  { %v7950_v51 = vpop.eup %7949  ;;  %4195 = vmatmul.mubr.f32.vlgmr.msra.gmra.mxu0 %v9657_v46  ;;  %v4061_v6 = vpop.f32.mrf.mxu1 }
0x11da   :  { %4380 = vmatpush1.bf16.xpose.msra.mxu0 %v8332_v32  ;;  %v4073_v14 = vpack.c.bf16 %v4061_v6, %v4058_v43  ;;  %v9664_v11 = vmul.f32 %v7950_v51, %v3881_v34  ;;  %v4009_v45 = vpop.f32.mrf.mxu0 }
0x11db   :  { %4381 = vmatprep.subr.bf16.mxu0 %v8337_v42  ;;  %v7952_v54 = vpop.eup %7951 }
0x11dc   :  { %4199 = vmatprep.mubr.f32.mxu0 %v9664_v11  ;;  %7248 = vmatmul.mubr.msk.bf16.vlgmr.msra.gmra.mxu1 %vm753_vm1, %v4073_v14  ;;  %v9677_v2 = vmul.f32 %v7952_v54, %v3882_v52  ;;  %v4011_v63 = vpop.f32.mrf.mxu0 }
0x11dd   :  { %v7954_v15 = vpop.eup %7953  ;;  %4200 = vmatmul.mubr.f32.gmra.mxu0 %v9667_v5  ;;  %4131 = vmatprep.mubr.bf16.mxu1 %v10671_v28 }
0x11de   :  { %v9675_v10 = vmul.f32 %v7954_v15, %v3883_v22  ;;  %v4015_v0 = vpop.f32.mrf.mxu0 }
0x11df   :  { %v7956_v50 = vpop.eup %7955 }
0x11e0   :  { %4204 = vmatprep.mubr.f32.mxu0 %v9675_v10  ;;  %v9687_v30 = vmul.f32 %v7956_v50, %v3884_v61 }
0x11e1   :  { %v7958_v48 = vpop.eup %7957  ;;  %4205 = vmatmul.mubr.f32.gmra.mxu0 %v9677_v2 }
0x11e2   :  { %4382 = vmatpush1.bf16.xpose.msra.mxu0 %v8360_v39  ;;  %v9684_v12 = vmul.f32 %v7958_v48, %v3885_v17 }
0x11e3   :  { %4383 = vmatprep.subr.bf16.mxu0 %v8365_v31 }
0x11e4   :  { %4209 = vmatprep.mubr.f32.mxu0 %v9684_v12  ;;  %4239 = vmatprep.subr.mxu1 %v9684_v12 }
0x11e5   :  { %7249 = vmatmul.mubr.msk.bf16.gmra.mxu1 %vm753_vm1, %v4074_v9  ;;  %4210 = vmatmul.mubr.f32.gmra.mxu0 %v9687_v30 }
0x11e6   :  { %4240 = vmatpush1.xpose.msra.mxu1 %v9687_v30  ;;  %4279 = vmatprep.mubr.f32.mxu1 %v9655_v56 }
0x11e7   :  { %4241 = vmatprep.subr.mxu1 %v9675_v10 }
0x11ea   :  { %4242 = vmatpush1.xpose.msra.mxu1 %v9677_v2  ;;  %4384 = vmatpush1.bf16.xpose.msra.mxu0 %v8375_v35 }
0x11eb   :  { %4243 = vmatprep.subr.mxu1 %v9664_v11  ;;  %4385 = vmatprep.subr.bf16.mxu0 %v8378_v53 }
0x11ee   :  { %4244 = vmatpush1.xpose.msra.mxu1 %v9667_v5 }
0x11ef   :  { %4245 = vmatprep.subr.mxu1 %v9655_v56 }
0x11f2   :  { %4246 = vmatpush1.xpose.msra.mxu1 %v9657_v46  ;;  %4386 = vmatpush1.bf16.xpose.msra.mxu0 %v10703_v57  ;;  %v4076_v57 = vmul.f32 %v4007_v36, %v9460_v49 }
0x11f3   :  { %7570 = vmatprep.subr.bf16.mxu1 %v9548_v59  ;;  %4594 = vmatprep.subr.bf16.mxu0 %v10704_v20 }
0x11f5   :  { %4280 = vmatmul.mubr.f32.vlgmr.msra.gmra.mxu1 %v9657_v46 }
0x11f6   :  { %4284 = vmatprep.mubr.f32.mxu1 %v9664_v11  ;;  %7571 = vmatpush3.bf16.msra.mxu1 %v9548_v59  ;;  %v4017_v59 = vpop.f32.mrf.mxu0 }
0x11f7   :  { %7572 = vmatprep.subr.bf16.mxu1 %v9555_v19 }
0x11f8   :  { %v9716_v37 = vpop.f32.mrf.mxu0 }
0x11f9   :  { %4285 = vmatmul.mubr.f32.gmra.mxu1 %v9667_v5 }
0x11fa   :  { %4289 = vmatprep.mubr.f32.mxu1 %v9675_v10  ;;  %7573 = vmatpush3.bf16.msra.mxu1 %v9555_v19  ;;  %v9718_v43 = vpop.f32.mrf.mxu0 }
0x11fd   :  { %4290 = vmatmul.mubr.f32.gmra.mxu1 %v9677_v2 }
0x11fe   :  { %4294 = vmatprep.mubr.f32.mxu1 %v9684_v12 }
0x1201   :  { %4295 = vmatmul.mubr.f32.gmra.mxu1 %v9687_v30 }
0x1299   :  { %v9720_v58 = vpop.f32.mrf.mxu0 }
0x129b   :  { %v4198_v40 = vpop.f32.mrf.mxu0 }
0x129c   :  { %v4123_v19 = vpop.f32.mrf.mxu1 }
0x129d   :  { %v4124_v34 = vadd.f32 1e-06, %v4123_v19  ;;  %v9722_v51 = vpop.f32.mrf.mxu0 }
0x129e   :  { %v4125_v60 = vpop.f32.mrf.mxu1 }
0x129f   :  { %v4126_v6 = vadd.f32 1e-06, %v4125_v60  ;;  %v4203_v14 = vpop.f32.mrf.mxu0  ;;  %7959 = vrcp.f32 %v4124_v34 }
0x12a0   :  { %v4127_v54 = vpop.f32.mrf.mxu1 }
0x12a1   :  { %7961 = vrcp.f32 %v4126_v6  ;;  %v4128_v22 = vadd.f32 1e-06, %v4127_v54  ;;  %v9724_v15 = vpop.f32.mrf.mxu0 }
0x12a2   :  { %v4129_v52 = vpop.f32.mrf.mxu1 }
0x12a3   :  { %v4130_v50 = vadd.f32 1e-06, %v4129_v52  ;;  %v4208_v17 = vpop.f32.mrf.mxu0  ;;  %7963 = vrcp.f32 %v4128_v22  ;;  %v4075_v22 = vmul.f32 %v4005_v4, %v9462_v16 }
0x12a5   :  { %7965 = vrcp.f32 %v4130_v50  ;;  %v4133_v48 = vpop.f32.mrf.mxu1  ;;  %v9726_v61 = vpop.f32.mrf.mxu0 }
0x12a6   :  { %v4134_v9 = vadd.f32 1e-06, %v4133_v48 }
0x12a7   :  { %v4135_v40 = vpop.f32.mrf.mxu1  ;;  %v4213_v19 = vpop.f32.mrf.mxu0 }
0x12a8   :  { %v4136_v20 = vadd.f32 1e-06, %v4135_v40  ;;  %7967 = vrcp.f32 %v4134_v9  ;;  %v4078_v9 = vmul.f32 %v4011_v63, %v9469_v1  ;;  %v4077_v40 = vmul.f32 %v4009_v45, %v9472_v8 }
0x12a9   :  { %v4137_v60 = vpop.f32.mrf.mxu1  ;;  %v4080_v1 = vmul.f32 %v4017_v59, %v9480_v25  ;;  %v4079_v8 = vmul.f32 %v4015_v0, %v9482_v27  ;;  %v4081_v27 = vmul.f32 %v9716_v37, %v9495_v18  ;;  %v3964_v18 = vpack.c.bf16 %v9684_v12, %v9675_v10 }
0x12aa   :  { %7969 = vrcp.f32 %v4136_v20  ;;  %v4138_v34 = vadd.f32 1e-06, %v4137_v60 }
0x12ab   :  { %v4139_v6 = vpop.f32.mrf.mxu1 }
0x12ac   :  { %v4140_v14 = vadd.f32 1e-06, %v4139_v6  ;;  %v7960_v54 = vpop.eup %7959  ;;  %7971 = vrcp.f32 %v4138_v34  ;;  %v4082_v6 = vmul.f32 %v9718_v43, %v9492_v21 }
0x12ad   :  { %v9732_v17 = vmul.f32 %v7960_v54, %v4075_v22 }
0x12ae   :  { %v7962_v52 = vpop.eup %7961  ;;  %7973 = vrcp.f32 %v4140_v14 }
0x12af   :  { %v9730_v50 = vmul.f32 %v7962_v52, %v4076_v57 }
0x12b0   :  { %v7964_v48 = vpop.eup %7963 }
0x12b1   :  { %4403 = vmatprep.mubr.f32.mxu0 %v9730_v50  ;;  %v9742_v16 = vmul.f32 %v7964_v48, %v4077_v40 }
0x12b2   :  { %v7966_v20 = vpop.eup %7965  ;;  %4404 = vmatmul.mubr.f32.vlgmr.msra.gmra.mxu0 %v9732_v17 }
0x12b3   :  { %4595 = vmatpush1.bf16.msra.mxu0 %v8326_v24  ;;  %v9739_v49 = vmul.f32 %v7966_v20, %v4078_v9 }
0x12b4   :  { %4596 = vmatprep.subr.bf16.mxu0 %v8330_v29 }
0x12b5   :  { %v4281_v57 = vpop.f32.mrf.mxu1  ;;  %4408 = vmatprep.mubr.f32.mxu0 %v9739_v49  ;;  %v7968_v4 = vpop.eup %7967 }
0x12b6   :  { %4409 = vmatmul.mubr.f32.gmra.mxu0 %v9742_v16  ;;  %v9752_v60 = vmul.f32 %v7968_v4, %v4079_v8 }
0x12b7   :  { %v7970_v36 = vpop.eup %7969  ;;  %v4283_v45 = vpop.f32.mrf.mxu1  ;;  %4597 = vmatpush1.bf16.msra.mxu0 %v8354_v62 }
0x12b8   :  { %4598 = vmatprep.subr.bf16.mxu0 %v8358_v26  ;;  %v9750_v63 = vmul.f32 %v7970_v36, %v4080_v1 }
0x12b9   :  { %v4286_v19 = vpop.f32.mrf.mxu1  ;;  %v7972_v34 = vpop.eup %7971 }
0x12ba   :  { %v4300_v25 = vpack.c.bf16 %v4286_v19, %v4281_v57  ;;  %4413 = vmatprep.mubr.f32.mxu0 %v9750_v63  ;;  %v9765_v21 = vmul.f32 %v7972_v34, %v4081_v27 }
0x12bb   :  { %v7974_v59 = vpop.eup %7973  ;;  %v4288_v0 = vpop.f32.mrf.mxu1  ;;  %4414 = vmatmul.mubr.f32.gmra.mxu0 %v9752_v60 }
0x12bc   :  { %7574 = vmatprep.mubr.msk.bf16.mxu1 %vm753_vm1, %v4300_v25  ;;  %4599 = vmatpush1.bf16.msra.mxu0 %v10672_v44  ;;  %v9762_v14 = vmul.f32 %v7974_v59, %v4082_v6 }
0x12bd   :  { %v4291_v54 = vpop.f32.mrf.mxu1  ;;  %4600 = vmatprep.subr.bf16.mxu0 %v10674_v23 }
0x12be   :  { %4418 = vmatprep.mubr.f32.mxu0 %v9762_v14  ;;  %4448 = vmatprep.subr.mxu1 %v9762_v14 }
0x12bf   :  { %v4293_v43 = vpop.f32.mrf.mxu1  ;;  %4419 = vmatmul.mubr.f32.gmra.mxu0 %v9765_v21 }
0x12c0   :  { %4601 = vmatpush1.bf16.msra.mxu0 %v10675_v38  ;;  %4618 = vmatprep.mubr.bf16.mxu0 %v10671_v28  ;;  %v4304_v43 = vmul.f32 %v9724_v15, %v9540_v55  ;;  %v3962_v15 = vpack.c.bf16 %v9664_v11, %v9655_v56 }
0x12c1   :  { %v4296_v37 = vpop.f32.mrf.mxu1  ;;  %4716 = vmatprep.subr.bf16.mxu0 %v3964_v18  ;;  %v4305_v18 = vmul.f32 %v9726_v61, %v9542_v33 }
0x12c2   :  { %v4301_v52 = vpack.c.bf16 %v4296_v37, %v4291_v54 }
0x12c3   :  { %v4298_v22 = vpop.f32.mrf.mxu1 }
0x12c4   :  { %7575 = vmatmul.mubr.msk.bf16.vlgmr.msra.gmra.mxu1 %vm753_vm1, %v4301_v52  ;;  %v4302_v52 = vmul.f32 %v9720_v58, %v9544_v47 }
0x12c5   :  { %4449 = vmatpush1.xpose.msra.mxu1 %v9765_v21  ;;  %4488 = vmatprep.mubr.f32.mxu1 %v9730_v50 }
0x12c6   :  { %4450 = vmatprep.subr.mxu1 %v9750_v63 }
0x12c9   :  { %4451 = vmatpush1.xpose.msra.mxu1 %v9752_v60 }
0x12ca   :  { %4452 = vmatprep.subr.mxu1 %v9739_v49 }
0x12cd   :  { %4453 = vmatpush1.xpose.msra.mxu1 %v9742_v16 }
0x12ce   :  { %4454 = vmatprep.subr.mxu1 %v9730_v50 }
0x12d1   :  { %4455 = vmatpush1.xpose.msra.mxu1 %v9732_v17 }
0x12d2   :  { %7578 = vmatprep.subr.bf16.mxu1 %v9608_v7 }
0x12d4   :  { %4489 = vmatmul.mubr.f32.vlgmr.msra.gmra.mxu1 %v9732_v17 }
0x12d5   :  { %4493 = vmatprep.mubr.f32.mxu1 %v9739_v49  ;;  %7579 = vmatpush3.bf16.msra.mxu1 %v9608_v7 }
0x12d6   :  { %7580 = vmatprep.subr.bf16.mxu1 %v9619_v13 }
0x12d8   :  { %4494 = vmatmul.mubr.f32.gmra.mxu1 %v9742_v16 }
0x12d9   :  { %4498 = vmatprep.mubr.f32.mxu1 %v9750_v63  ;;  %7581 = vmatpush3.bf16.msra.mxu1 %v9619_v13 }
0x12dc   :  { %4499 = vmatmul.mubr.f32.gmra.mxu1 %v9752_v60 }
0x12dd   :  { %4503 = vmatprep.mubr.f32.mxu1 %v9762_v14 }
0x12e0   :  { %4504 = vmatmul.mubr.f32.gmra.mxu1 %v9765_v21 }
0x1372   :  { %v9794_v48 = vpop.f32.mrf.mxu0 }
0x1374   :  { %v4407_v9 = vpop.f32.mrf.mxu0 }
0x1375   :  { %v4303_v9 = vmul.f32 %v9722_v51, %v9550_v3  ;;  %v3963_v51 = vpack.c.bf16 %v9687_v30, %v9677_v2 }
0x1376   :  { %v9796_v20 = vpop.f32.mrf.mxu0 }
0x1378   :  { %v4412_v7 = vpop.f32.mrf.mxu0 }
0x137b   :  { %v9798_v40 = vpop.f32.mrf.mxu0 }
0x137d   :  { %v4417_v57 = vpop.f32.mrf.mxu0 }
0x137f   :  { %v9800_v4 = vpop.f32.mrf.mxu0 }
0x1381   :  { %v4422_v1 = vpop.f32.mrf.mxu0 }
0x1384   :  { %v7576_v36 = vpop.f32.mrf.mxu1 }
0x1385   :  { %v4355_v13 = vadd.f32 1e-06, %v7576_v36 }
0x1386   :  { %v4346_v8 = vpop.f32.mrf.mxu1 }
0x1387   :  { %v4347_v45 = vadd.f32 1e-06, %v4346_v8  ;;  %7975 = vrcp.f32 %v4355_v13 }
0x1388   :  { %v7577_v19 = vpop.f32.mrf.mxu1 }
0x1389   :  { %v4358_v34 = vadd.f32 1e-06, %v7577_v19  ;;  %7977 = vrcp.f32 %v4347_v45 }
0x138a   :  { %v4349_v6 = vpop.f32.mrf.mxu1 }
0x138b   :  { %7979 = vrcp.f32 %v4358_v34  ;;  %v4350_v25 = vadd.f32 1e-06, %v4349_v6  ;;  %v3961_v6 = vpack.c.bf16 %v9667_v5, %v9657_v46 }
0x138d   :  { %7981 = vrcp.f32 %v4350_v25 }
0x1394   :  { %v4490_v59 = vpop.f32.mrf.mxu1  ;;  %v7976_v27 = vpop.eup %7975 }
0x1395   :  { %v9810_v7 = vmul.f32 %v7976_v27, %v4304_v43  ;;  %v10714_v27 = vld [vmem:[#allocation8_spill] sm:$0xff] }
0x1396   :  { %v4492_v0 = vpop.f32.mrf.mxu1  ;;  %v7978_v54 = vpop.eup %7977 }
0x1397   :  { %v9814_v8 = vmul.f32 %v7978_v54, %v4302_v52 }
0x1398   :  { %v7980_v37 = vpop.eup %7979  ;;  %v4495_v22 = vpop.f32.mrf.mxu1 }
0x1399   :  { %v9812_v57 = vmul.f32 %v7980_v37, %v4305_v18  ;;  %v4509_v1 = vpack.c.bf16 %v4495_v22, %v4490_v59  ;;  %v10713_v59 = vld [vmem:[#allocation16_spill] sm:$0xff] }
0x139a   :  { %v7982_v36 = vpop.eup %7981  ;;  %v4497_v13 = vpop.f32.mrf.mxu1 }
0x139b   :  { %v9818_v55 = vpack.c.bf16 %v9812_v57, %v9810_v7  ;;  %v9820_v33 = vmul.f32 %v7982_v36, %v4303_v9  ;;  %7582 = vmatprep.mubr.msk.bf16.mxu1 %vm753_vm1, %v4509_v1 }
0x139c   :  { %v4500_v47 = vpop.f32.mrf.mxu1 }
0x139d   :  { %v9825_v3 = vpack.c.bf16 %v9820_v33, %v9814_v8  ;;  %7684 = vmatprep.subr.msk.bf16.mxu1 %vm170_vm0, %v9818_v55  ;;  %v4584_v34 = vsel %vm170_vm0, %v9818_v55, 0 }
0x139e   :  { %v4502_v58 = vpop.f32.mrf.mxu1 }
0x139f   :  { %7254 = vmatmul.mubr.msk.bf16.vlgmr.msra.gmra.mxu0 %vm170_vm0, %v9825_v3  ;;  %v4581_v25 = vsel %vm170_vm0, %v9825_v3, 0  ;;  %v10715_v58 = vld [vmem:[#allocation13_spill] sm:$0xff] }
0x13a0   :  { %v4505_v61 = vpop.f32.mrf.mxu1  ;;  %4717 = vmatpush1.bf16.msra.mxu0 %v3963_v51  ;;  %4628 = vmatprep.mubr.bf16.mxu0 %v10671_v28  ;;  %v4513_v51 = vmul.f32 %v9798_v40, %v10715_v58  ;;  %v4158_v58 = vpack.c.bf16 %v9742_v16, %v9732_v17 }
0x13a1   :  { %v4510_v45 = vpack.c.bf16 %v4505_v61, %v4500_v47  ;;  %4718 = vmatprep.subr.bf16.mxu0 %v3962_v15  ;;  %v10716_v15 = vld [vmem:[#allocation9_spill] sm:$0xff] }
0x13a2   :  { %v4507_v19 = vpop.f32.mrf.mxu1  ;;  %v4514_v61 = vmul.f32 %v9800_v4, %v10716_v15 }
0x13a3   :  { %7583 = vmatmul.mubr.msk.bf16.vlgmr.msra.gmra.mxu1 %vm753_vm1, %v4510_v45 }
0x13a4   :  { %7587 = vmatpush3.bf16.xpose.msra.mxu1 %v4584_v34  ;;  %7590 = vmatprep.mubr.msk.bf16.mxu1 %vm170_vm0, %v9825_v3  ;;  %v10717_v34 = vld [vmem:[#allocation10_spill] sm:$0xff] }
0x13a5   :  { %7685 = vmatprep.subr.msk.bf16.mxu1 %vm170_vm0, %v9825_v3  ;;  %4719 = vmatpush1.bf16.msra.mxu0 %v3961_v6  ;;  %v4511_v6 = vmul.f32 %v9794_v48, %v10717_v34 }
0x13a7   :  { %7255 = vmatmul.mubr.msk.bf16.gmra.mxu0 %vm170_vm0, %v9818_v55 }
0x13a8   :  { %4736 = vmatprep.mubr.bf16.mxu0 %v10671_v28 }
0x13ac   :  { %7589 = vmatpush3.bf16.xpose.msra.mxu1 %v4581_v25  ;;  %v10718_v25 = vld [vmem:[#allocation12_spill] sm:$0xff] }
0x13ad   :  { %4791 = vmatprep.subr.bf16.mxu1 %v10678_v41 }
0x13b3   :  { %7591 = vmatmul.mubr.msk.bf16.vlgmr.msra.gmra.mxu1 %vm170_vm0, %v9818_v55 }
0x13b4   :  { %4792 = vmatpush1.bf16.msra.mxu1 %v8332_v32  ;;  %4815 = vmatprep.mubr.bf16.mxu1 %v10671_v28 }
0x13b5   :  { %4793 = vmatprep.subr.bf16.mxu1 %v8337_v42 }
0x13b8   :  { %4794 = vmatpush1.bf16.msra.mxu1 %v8360_v39 }
0x13b9   :  { %4795 = vmatprep.subr.bf16.mxu1 %v8365_v31 }
0x13bc   :  { %4796 = vmatpush1.bf16.msra.mxu1 %v8375_v35 }
0x13bd   :  { %4797 = vmatprep.subr.bf16.mxu1 %v8378_v53 }
0x13c0   :  { %4798 = vmatpush1.bf16.msra.mxu1 %v10713_v59 }
0x13c1   :  { %4982 = vmatprep.subr.bf16.mxu1 %v10714_v27 }
0x1463   :  { %v7584_v0 = vpop.f32.mrf.mxu1 }
0x1464   :  { %v4564_v54 = vadd.f32 1e-06, %v7584_v0  ;;  %v4512_v0 = vmul.f32 %v9796_v20, %v10718_v25 }
0x1465   :  { %v4555_v43 = vpop.f32.mrf.mxu1 }
0x1466   :  { %v4556_v18 = vadd.f32 1e-06, %v4555_v43  ;;  %7983 = vrcp.f32 %v4564_v54 }
0x1467   :  { %v7585_v37 = vpop.f32.mrf.mxu1 }
0x1468   :  { %v4567_v52 = vadd.f32 1e-06, %v7585_v37  ;;  %7985 = vrcp.f32 %v4556_v18 }
0x1469   :  { %v4558_v22 = vpop.f32.mrf.mxu1 }
0x146a   :  { %7987 = vrcp.f32 %v4567_v52  ;;  %v4559_v9 = vadd.f32 1e-06, %v4558_v22 }
0x146c   :  { %7989 = vrcp.f32 %v4559_v9 }
0x1473   :  { %v7592_v1 = vpop.f32.mrf.mxu1  ;;  %v7984_v36 = vpop.eup %7983 }
0x1474   :  { %v9870_v54 = vmul.f32 %v7984_v36, %v4513_v51  ;;  %v4620_v51 = vpop.f32.mrf.mxu0 }
0x1475   :  { %v4673_v13 = vpop.f32.mrf.mxu1  ;;  %v7986_v47 = vpop.eup %7985 }
0x1476   :  { %10719 = vst [vmem:[#allocation11_spill] sm:$0xff] %v9870_v54  ;;  %v9874_v52 = vmul.f32 %v7986_v47, %v4511_v6  ;;  %v4159_v47 = vpack.c.bf16 %v9739_v49, %v9730_v50  ;;  %v4622_v15 = vpop.f32.mrf.mxu0 }
0x1477   :  { %v7988_v45 = vpop.eup %7987  ;;  %v7593_v19 = vpop.f32.mrf.mxu1 }
0x1478   :  { %v9872_v43 = vmul.f32 %v7988_v45, %v4514_v61  ;;  %10721 = vst [vmem:[#allocation14_spill] sm:$0xff] %v9874_v52  ;;  %v4689_v9 = vpack.c.bf16 %v7593_v19, %v7592_v1  ;;  %v4160_v1 = vpack.c.bf16 %v9765_v21, %v9752_v60  ;;  %v4624_v61 = vpop.f32.mrf.mxu0 }
0x1479   :  { %v7990_v18 = vpop.eup %7989  ;;  %v4676_v37 = vpop.f32.mrf.mxu1 }
0x147a   :  { %10720 = vst [vmem:[#allocation15_spill] sm:$0xff] %v9872_v43  ;;  %v9878_v40 = vpack.c.bf16 %v9872_v43, %v9870_v54  ;;  %v9880_v4 = vmul.f32 %v7990_v18, %v4512_v0  ;;  %v4688_v22 = vpack.c.bf16 %v4676_v37, %v4673_v13  ;;  %v4161_v13 = vpack.c.bf16 %v9762_v14, %v9750_v63  ;;  %v4626_v45 = vpop.f32.mrf.mxu0 }
0x147c   :  { %10722 = vst [vmem:[#allocation13_spill] sm:$0xff] %v9880_v4  ;;  %7258 = vmatmul.mubr.msk.bf16.vlgmr.msra.gmra.mxu0 %vm753_vm1, %v4688_v22  ;;  %7686 = vmatprep.subr.msk.bf16.mxu0 %vm170_vm0, %v9878_v40  ;;  %v4781_v48 = vsel %vm170_vm0, %v9878_v40, 0  ;;  %v9889_v20 = vpack.c.bf16 %v9880_v4, %v9874_v52  ;;  %v4630_v19 = vpop.f32.mrf.mxu0 }
0x147d   :  { %7595 = vmatpush3.bf16.xpose.msra.mxu0 %v4781_v48  ;;  %4746 = vmatprep.mubr.bf16.mxu0 %v10671_v28 }
0x147e   :  { %7260 = vmatmul.mubr.msk.bf16.vlgmr.msra.gmra.mxu1 %vm170_vm0, %v9889_v20  ;;  %7687 = vmatprep.subr.msk.bf16.mxu0 %vm170_vm0, %v9889_v20  ;;  %v4778_v36 = vsel %vm170_vm0, %v9889_v20, 0  ;;  %v4632_v34 = vpop.f32.mrf.mxu0 }
0x147f   :  { %4983 = vmatpush1.bf16.xpose.msra.mxu1 %v8326_v24  ;;  %4825 = vmatprep.mubr.bf16.mxu1 %v10671_v28 }
0x1480   :  { %4984 = vmatprep.subr.bf16.mxu1 %v8330_v29  ;;  %v4634_v6 = vpop.f32.mrf.mxu0 }
0x1482   :  { %v4636_v25 = vpop.f32.mrf.mxu0 }
0x1484   :  { %7259 = vmatmul.mubr.msk.bf16.gmra.mxu0 %vm753_vm1, %v4689_v9 }
0x1485   :  { %7598 = vmatprep.mubr.msk.bf16.mxu0 %vm170_vm0, %v9889_v20  ;;  %7597 = vmatpush3.bf16.xpose.msra.mxu0 %v4778_v36 }
0x1486   :  { %7261 = vmatmul.mubr.msk.bf16.gmra.mxu1 %vm170_vm0, %v9878_v40  ;;  %4913 = vmatprep.subr.bf16.mxu0 %v4161_v13 }
0x1487   :  { %4985 = vmatpush1.bf16.xpose.msra.mxu1 %v8354_v62 }
0x1488   :  { %4986 = vmatprep.subr.bf16.mxu1 %v8358_v26 }
0x148c   :  { %7599 = vmatmul.mubr.msk.bf16.vlgmr.msra.gmra.mxu0 %vm170_vm0, %v9878_v40 }
0x148d   :  { %4914 = vmatpush1.bf16.msra.mxu0 %v4160_v1  ;;  %4933 = vmatprep.mubr.bf16.mxu0 %v10671_v28 }
0x148e   :  { %4915 = vmatprep.subr.bf16.mxu0 %v4159_v47 }
0x148f   :  { %4987 = vmatpush1.bf16.xpose.msra.mxu1 %v10672_v44 }
0x1490   :  { %4988 = vmatprep.subr.bf16.mxu1 %v10674_v23 }
0x1491   :  { %4916 = vmatpush1.bf16.msra.mxu0 %v4158_v58 }
0x1497   :  { %4989 = vmatpush1.bf16.xpose.msra.mxu1 %v10675_v38 }
0x1498   :  { %5191 = vmatprep.subr.bf16.mxu1 %v10678_v41 }
0x153c   :  { %v4738_v0 = vpop.f32.mrf.mxu0 }
0x153d   :  { %v4739_v18 = vadd.f32 1e-06, %v4738_v0 }
0x153e   :  { %v4740_v37 = vpop.f32.mrf.mxu0 }
0x153f   :  { %v4741_v22 = vadd.f32 1e-06, %v4740_v37  ;;  %7991 = vrcp.f32 %v4739_v18 }
0x1540   :  { %v4742_v48 = vpop.f32.mrf.mxu0 }
0x1541   :  { %7993 = vrcp.f32 %v4741_v22  ;;  %v4743_v9 = vadd.f32 1e-06, %v4742_v48  ;;  %v4691_v22 = vmul.f32 %v4622_v15, %v9655_v56 }
0x1542   :  { %v4744_v36 = vpop.f32.mrf.mxu0 }
0x1543   :  { %v4745_v13 = vadd.f32 1e-06, %v4744_v36  ;;  %7995 = vrcp.f32 %v4743_v9  ;;  %v4690_v9 = vmul.f32 %v4620_v51, %v9657_v46 }
0x1544   :  { %v4748_v1 = vpop.f32.mrf.mxu0 }
0x1545   :  { %7997 = vrcp.f32 %v4745_v13  ;;  %v4749_v47 = vadd.f32 1e-06, %v4748_v1 }
0x1546   :  { %v4750_v58 = vpop.f32.mrf.mxu0 }
0x1547   :  { %v4751_v4 = vadd.f32 1e-06, %v4750_v58  ;;  %7999 = vrcp.f32 %v4749_v47 }
0x1548   :  { %v4752_v52 = vpop.f32.mrf.mxu0 }
0x1549   :  { %8001 = vrcp.f32 %v4751_v4  ;;  %v4753_v43 = vadd.f32 1e-06, %v4752_v52  ;;  %v4693_v52 = vmul.f32 %v4626_v45, %v9664_v11  ;;  %v4695_v11 = vmul.f32 %v4632_v34, %v9675_v10 }
0x154a   :  { %v4754_v54 = vpop.f32.mrf.mxu0  ;;  %v4696_v34 = vmul.f32 %v4634_v6, %v9687_v30 }
0x154b   :  { %v4755_v0 = vadd.f32 1e-06, %v4754_v54  ;;  %8003 = vrcp.f32 %v4753_v43  ;;  %v4692_v43 = vmul.f32 %v4624_v61, %v9667_v5  ;;  %v4694_v61 = vmul.f32 %v4630_v19, %v9677_v2 }
0x154c   :  { %v7600_v37 = vpop.f32.mrf.mxu0  ;;  %v7992_v18 = vpop.eup %7991 }
0x154d   :  { %8005 = vrcp.f32 %v4755_v0  ;;  %v9927_v1 = vmul.f32 %v7992_v18, %v4690_v9 }
0x154e   :  { %v7994_v48 = vpop.eup %7993  ;;  %v4870_v36 = vpop.f32.mrf.mxu0 }
0x154f   :  { %v9925_v13 = vmul.f32 %v7994_v48, %v4691_v22  ;;  %v4697_v22 = vmul.f32 %v4636_v25, %v9684_v12  ;;  %v4817_v12 = vpop.f32.mrf.mxu1 }
0x1550   :  { %v7601_v47 = vpop.f32.mrf.mxu0  ;;  %v7996_v58 = vpop.eup %7995 }
0x1551   :  { %5006 = vmatprep.mubr.f32.mxu1 %v9925_v13  ;;  %v9937_v51 = vmul.f32 %v7996_v58, %v4692_v43  ;;  %v4886_v19 = vpack.c.bf16 %v7601_v47, %v7600_v37  ;;  %v4819_v30 = vpop.f32.mrf.mxu1 }
0x1552   :  { %v7998_v54 = vpop.eup %7997  ;;  %5007 = vmatmul.mubr.f32.vlgmr.msra.gmra.mxu1 %v9927_v1  ;;  %v4873_v56 = vpop.f32.mrf.mxu0 }
0x1553   :  { %5192 = vmatpush1.bf16.xpose.msra.mxu1 %v8332_v32  ;;  %v4885_v46 = vpack.c.bf16 %v4873_v56, %v4870_v36  ;;  %v9934_v4 = vmul.f32 %v7998_v54, %v4693_v52  ;;  %v4821_v6 = vpop.f32.mrf.mxu1 }
0x1554   :  { %5193 = vmatprep.subr.bf16.mxu1 %v8337_v42  ;;  %v8000_v15 = vpop.eup %7999 }
0x1555   :  { %5011 = vmatprep.mubr.f32.mxu1 %v9934_v4  ;;  %7264 = vmatmul.mubr.msk.bf16.vlgmr.msra.gmra.mxu0 %vm753_vm1, %v4885_v46  ;;  %v9947_v0 = vmul.f32 %v8000_v15, %v4694_v61  ;;  %v4823_v25 = vpop.f32.mrf.mxu1 }
0x1556   :  { %v8002_v5 = vpop.eup %8001  ;;  %5012 = vmatmul.mubr.f32.gmra.mxu1 %v9937_v51  ;;  %4943 = vmatprep.mubr.bf16.mxu0 %v10671_v28 }
0x1557   :  { %v9945_v45 = vmul.f32 %v8002_v5, %v4695_v11  ;;  %v4827_v37 = vpop.f32.mrf.mxu1 }
0x1558   :  { %v8004_v18 = vpop.eup %8003 }
0x1559   :  { %5016 = vmatprep.mubr.f32.mxu1 %v9945_v45  ;;  %v9957_v48 = vmul.f32 %v8004_v18, %v4696_v34 }
0x155a   :  { %v8006_v10 = vpop.eup %8005  ;;  %5017 = vmatmul.mubr.f32.gmra.mxu1 %v9947_v0 }
0x155b   :  { %5194 = vmatpush1.bf16.xpose.msra.mxu1 %v8360_v39  ;;  %v9954_v2 = vmul.f32 %v8006_v10, %v4697_v22 }
0x155c   :  { %5195 = vmatprep.subr.bf16.mxu1 %v8365_v31 }
0x155d   :  { %5021 = vmatprep.mubr.f32.mxu1 %v9954_v2  ;;  %5051 = vmatprep.subr.mxu0 %v9954_v2 }
0x155e   :  { %7265 = vmatmul.mubr.msk.bf16.gmra.mxu0 %vm753_vm1, %v4886_v19  ;;  %5022 = vmatmul.mubr.f32.gmra.mxu1 %v9957_v48 }
0x155f   :  { %5052 = vmatpush1.xpose.msra.mxu0 %v9957_v48  ;;  %5091 = vmatprep.mubr.f32.mxu0 %v9925_v13 }
0x1560   :  { %5053 = vmatprep.subr.mxu0 %v9945_v45 }
0x1563   :  { %5054 = vmatpush1.xpose.msra.mxu0 %v9947_v0  ;;  %5196 = vmatpush1.bf16.xpose.msra.mxu1 %v8375_v35 }
0x1564   :  { %5055 = vmatprep.subr.mxu0 %v9934_v4  ;;  %5197 = vmatprep.subr.bf16.mxu1 %v8378_v53 }
0x1567   :  { %5056 = vmatpush1.xpose.msra.mxu0 %v9937_v51 }
0x1568   :  { %5057 = vmatprep.subr.mxu0 %v9925_v13 }
0x156b   :  { %5058 = vmatpush1.xpose.msra.mxu0 %v9927_v1  ;;  %5198 = vmatpush1.bf16.xpose.msra.mxu1 %v10713_v59  ;;  %v4888_v59 = vmul.f32 %v4819_v30, %v9730_v50 }
0x156c   :  { %7602 = vmatprep.subr.bf16.mxu0 %v9818_v55  ;;  %5406 = vmatprep.subr.bf16.mxu1 %v10714_v27 }
0x156e   :  { %5092 = vmatmul.mubr.f32.vlgmr.msra.gmra.mxu0 %v9927_v1 }
0x156f   :  { %5096 = vmatprep.mubr.f32.mxu0 %v9934_v4  ;;  %7603 = vmatpush3.bf16.msra.mxu0 %v9818_v55  ;;  %v4829_v55 = vpop.f32.mrf.mxu1 }
0x1570   :  { %7604 = vmatprep.subr.bf16.mxu0 %v9825_v3 }
0x1571   :  { %v9986_v9 = vpop.f32.mrf.mxu1 }
0x1572   :  { %5097 = vmatmul.mubr.f32.gmra.mxu0 %v9937_v51 }
0x1573   :  { %5101 = vmatprep.mubr.f32.mxu0 %v9945_v45  ;;  %7605 = vmatpush3.bf16.msra.mxu0 %v9825_v3  ;;  %v9988_v36 = vpop.f32.mrf.mxu1 }
0x1576   :  { %5102 = vmatmul.mubr.f32.gmra.mxu0 %v9947_v0 }
0x1577   :  { %5106 = vmatprep.mubr.f32.mxu0 %v9954_v2 }
0x157a   :  { %5107 = vmatmul.mubr.f32.gmra.mxu0 %v9957_v48 }
0x1612   :  { %v9990_v47 = vpop.f32.mrf.mxu1 }
0x1614   :  { %v5010_v58 = vpop.f32.mrf.mxu1 }
0x1615   :  { %v4935_v3 = vpop.f32.mrf.mxu0 }
0x1616   :  { %v4936_v52 = vadd.f32 1e-06, %v4935_v3  ;;  %v9992_v54 = vpop.f32.mrf.mxu1 }
0x1617   :  { %v4937_v43 = vpop.f32.mrf.mxu0 }
0x1618   :  { %v4938_v56 = vadd.f32 1e-06, %v4937_v43  ;;  %v5015_v46 = vpop.f32.mrf.mxu1  ;;  %8007 = vrcp.f32 %v4936_v52 }
0x1619   :  { %v4939_v15 = vpop.f32.mrf.mxu0 }
0x161a   :  { %8009 = vrcp.f32 %v4938_v56  ;;  %v4940_v11 = vadd.f32 1e-06, %v4939_v15  ;;  %v9994_v5 = vpop.f32.mrf.mxu1 }
0x161b   :  { %v4941_v61 = vpop.f32.mrf.mxu0 }
0x161c   :  { %v4942_v18 = vadd.f32 1e-06, %v4941_v61  ;;  %v5020_v22 = vpop.f32.mrf.mxu1  ;;  %8011 = vrcp.f32 %v4940_v11  ;;  %v4887_v11 = vmul.f32 %v4817_v12, %v9732_v17 }
0x161e   :  { %8013 = vrcp.f32 %v4942_v18  ;;  %v4945_v10 = vpop.f32.mrf.mxu0  ;;  %v9996_v34 = vpop.f32.mrf.mxu1 }
0x161f   :  { %v4946_v19 = vadd.f32 1e-06, %v4945_v10 }
0x1620   :  { %v4947_v58 = vpop.f32.mrf.mxu0  ;;  %v5025_v3 = vpop.f32.mrf.mxu1 }
0x1621   :  { %v4948_v27 = vadd.f32 1e-06, %v4947_v58  ;;  %8015 = vrcp.f32 %v4946_v19  ;;  %v4890_v19 = vmul.f32 %v4823_v25, %v9739_v49  ;;  %v4889_v58 = vmul.f32 %v4821_v6, %v9742_v16 }
0x1622   :  { %v4949_v43 = vpop.f32.mrf.mxu0  ;;  %v4892_v49 = vmul.f32 %v4829_v55, %v9750_v63  ;;  %v4891_v16 = vmul.f32 %v4827_v37, %v9752_v60  ;;  %v4893_v60 = vmul.f32 %v9986_v9, %v9765_v21  ;;  %v4776_v21 = vpack.c.bf16 %v9954_v2, %v9945_v45 }
0x1623   :  { %8017 = vrcp.f32 %v4948_v27  ;;  %v4950_v52 = vadd.f32 1e-06, %v4949_v43 }
0x1624   :  { %v4951_v56 = vpop.f32.mrf.mxu0 }
0x1625   :  { %v4952_v46 = vadd.f32 1e-06, %v4951_v56  ;;  %v8008_v15 = vpop.eup %8007  ;;  %8019 = vrcp.f32 %v4950_v52  ;;  %v4894_v56 = vmul.f32 %v9988_v36, %v9762_v14 }
0x1626   :  { %v10002_v22 = vmul.f32 %v8008_v15, %v4887_v11 }
0x1627   :  { %v8010_v61 = vpop.eup %8009  ;;  %8021 = vrcp.f32 %v4952_v46 }
0x1628   :  { %v10000_v18 = vmul.f32 %v8010_v61, %v4888_v59 }
0x1629   :  { %v8012_v10 = vpop.eup %8011 }
0x162a   :  { %5215 = vmatprep.mubr.f32.mxu1 %v10000_v18  ;;  %v10012_v17 = vmul.f32 %v8012_v10, %v4889_v58 }
0x162b   :  { %v8014_v27 = vpop.eup %8013  ;;  %5216 = vmatmul.mubr.f32.vlgmr.msra.gmra.mxu1 %v10002_v22 }
0x162c   :  { %5407 = vmatpush1.bf16.msra.mxu1 %v8326_v24  ;;  %v10009_v50 = vmul.f32 %v8014_v27, %v4890_v19 }
0x162d   :  { %5408 = vmatprep.subr.bf16.mxu1 %v8330_v29 }
0x162e   :  { %v5093_v59 = vpop.f32.mrf.mxu0  ;;  %5220 = vmatprep.mubr.f32.mxu1 %v10009_v50  ;;  %v8016_v12 = vpop.eup %8015 }
0x162f   :  { %5221 = vmatmul.mubr.f32.gmra.mxu1 %v10012_v17  ;;  %v10022_v43 = vmul.f32 %v8016_v12, %v4891_v16 }
0x1630   :  { %v8018_v30 = vpop.eup %8017  ;;  %v5095_v6 = vpop.f32.mrf.mxu0  ;;  %5409 = vmatpush1.bf16.msra.mxu1 %v8354_v62 }
0x1631   :  { %5410 = vmatprep.subr.bf16.mxu1 %v8358_v26  ;;  %v10020_v25 = vmul.f32 %v8018_v30, %v4892_v49 }
0x1632   :  { %v5098_v3 = vpop.f32.mrf.mxu0  ;;  %v8020_v52 = vpop.eup %8019 }
0x1633   :  { %v5112_v63 = vpack.c.bf16 %v5098_v3, %v5093_v59  ;;  %5225 = vmatprep.mubr.f32.mxu1 %v10020_v25  ;;  %v10035_v14 = vmul.f32 %v8020_v52, %v4893_v60 }
0x1634   :  { %v8022_v55 = vpop.eup %8021  ;;  %v5100_v37 = vpop.f32.mrf.mxu0  ;;  %5226 = vmatmul.mubr.f32.gmra.mxu1 %v10022_v43 }
0x1635   :  { %7606 = vmatprep.mubr.msk.bf16.mxu0 %vm753_vm1, %v5112_v63  ;;  %5411 = vmatpush1.bf16.msra.mxu1 %v10672_v44  ;;  %v10032_v46 = vmul.f32 %v8022_v55, %v4894_v56 }
0x1636   :  { %v5103_v15 = vpop.f32.mrf.mxu0  ;;  %5412 = vmatprep.subr.bf16.mxu1 %v10674_v23 }
0x1637   :  { %5230 = vmatprep.mubr.f32.mxu1 %v10032_v46  ;;  %5260 = vmatprep.subr.mxu0 %v10032_v46 }
0x1638   :  { %v5105_v36 = vpop.f32.mrf.mxu0  ;;  %5231 = vmatmul.mubr.f32.gmra.mxu1 %v10035_v14 }
0x1639   :  { %5413 = vmatpush1.bf16.msra.mxu1 %v10675_v38  ;;  %5430 = vmatprep.mubr.bf16.mxu1 %v10671_v28  ;;  %v5116_v36 = vmul.f32 %v9994_v5, %v9810_v7  ;;  %v4774_v5 = vpack.c.bf16 %v9934_v4, %v9925_v13 }
0x163a   :  { %v5108_v9 = vpop.f32.mrf.mxu0  ;;  %5528 = vmatprep.subr.bf16.mxu1 %v4776_v21  ;;  %v5117_v21 = vmul.f32 %v9996_v34, %v9812_v57 }
0x163b   :  { %v5113_v61 = vpack.c.bf16 %v5108_v9, %v5103_v15 }
0x163c   :  { %v5110_v11 = vpop.f32.mrf.mxu0 }
0x163d   :  { %7607 = vmatmul.mubr.msk.bf16.vlgmr.msra.gmra.mxu0 %vm753_vm1, %v5113_v61  ;;  %v5114_v61 = vmul.f32 %v9990_v47, %v9814_v8 }
0x163e   :  { %5261 = vmatpush1.xpose.msra.mxu0 %v10035_v14  ;;  %5300 = vmatprep.mubr.f32.mxu0 %v10000_v18 }
0x163f   :  { %5262 = vmatprep.subr.mxu0 %v10020_v25 }
0x1642   :  { %5263 = vmatpush1.xpose.msra.mxu0 %v10022_v43 }
0x1643   :  { %5264 = vmatprep.subr.mxu0 %v10009_v50 }
0x1646   :  { %5265 = vmatpush1.xpose.msra.mxu0 %v10012_v17 }
0x1647   :  { %5266 = vmatprep.subr.mxu0 %v10000_v18 }
0x164a   :  { %5267 = vmatpush1.xpose.msra.mxu0 %v10002_v22 }
0x164b   :  { %7610 = vmatprep.subr.bf16.mxu0 %v9878_v40 }
0x164d   :  { %5301 = vmatmul.mubr.f32.vlgmr.msra.gmra.mxu0 %v10002_v22 }
0x164e   :  { %5305 = vmatprep.mubr.f32.mxu0 %v10009_v50  ;;  %7611 = vmatpush3.bf16.msra.mxu0 %v9878_v40 }
0x164f   :  { %7612 = vmatprep.subr.bf16.mxu0 %v9889_v20 }
0x1651   :  { %5306 = vmatmul.mubr.f32.gmra.mxu0 %v10012_v17 }
0x1652   :  { %5310 = vmatprep.mubr.f32.mxu0 %v10020_v25  ;;  %7613 = vmatpush3.bf16.msra.mxu0 %v9889_v20 }
0x1655   :  { %5311 = vmatmul.mubr.f32.gmra.mxu0 %v10022_v43 }
0x1656   :  { %5315 = vmatprep.mubr.f32.mxu0 %v10032_v46 }
0x1659   :  { %5316 = vmatmul.mubr.f32.gmra.mxu0 %v10035_v14 }
0x16eb   :  { %v10064_v10 = vpop.f32.mrf.mxu1 }
0x16ed   :  { %v5219_v19 = vpop.f32.mrf.mxu1 }
0x16ee   :  { %v5115_v19 = vmul.f32 %v9992_v54, %v9820_v33  ;;  %v4775_v54 = vpack.c.bf16 %v9957_v48, %v9947_v0 }
0x16ef   :  { %v10066_v27 = vpop.f32.mrf.mxu1 }
0x16f1   :  { %v5224_v40 = vpop.f32.mrf.mxu1 }
0x16f4   :  { %v10068_v58 = vpop.f32.mrf.mxu1 }
0x16f6   :  { %v5229_v59 = vpop.f32.mrf.mxu1 }
0x16f8   :  { %v10070_v12 = vpop.f32.mrf.mxu1 }
0x16fa   :  { %v5234_v49 = vpop.f32.mrf.mxu1 }
0x16fd   :  { %v7608_v30 = vpop.f32.mrf.mxu0 }
0x16fe   :  { %v5167_v20 = vadd.f32 1e-06, %v7608_v30 }
0x16ff   :  { %v5158_v16 = vpop.f32.mrf.mxu0 }
0x1700   :  { %v5159_v6 = vadd.f32 1e-06, %v5158_v16  ;;  %8023 = vrcp.f32 %v5167_v20 }
0x1701   :  { %v7609_v3 = vpop.f32.mrf.mxu0 }
0x1702   :  { %v5170_v52 = vadd.f32 1e-06, %v7609_v3  ;;  %8025 = vrcp.f32 %v5159_v6 }
0x1703   :  { %v5161_v56 = vpop.f32.mrf.mxu0 }
0x1704   :  { %8027 = vrcp.f32 %v5170_v52  ;;  %v5162_v63 = vadd.f32 1e-06, %v5161_v56  ;;  %v4773_v56 = vpack.c.bf16 %v9937_v51, %v9927_v1 }
0x1706   :  { %8029 = vrcp.f32 %v5162_v63 }
0x170d   :  { %v5302_v55 = vpop.f32.mrf.mxu0  ;;  %v8024_v60 = vpop.eup %8023 }
0x170e   :  { %v10080_v40 = vmul.f32 %v8024_v60, %v5116_v36  ;;  %v10724_v60 = vld [vmem:[#allocation8_spill] sm:$0xff] }
0x170f   :  { %v5304_v37 = vpop.f32.mrf.mxu0  ;;  %v8026_v15 = vpop.eup %8025 }
0x1710   :  { %v10084_v16 = vmul.f32 %v8026_v15, %v5114_v61 }
0x1711   :  { %v8028_v9 = vpop.eup %8027  ;;  %v5307_v11 = vpop.f32.mrf.mxu0 }
0x1712   :  { %v10082_v59 = vmul.f32 %v8028_v9, %v5117_v21  ;;  %v5321_v49 = vpack.c.bf16 %v5307_v11, %v5302_v55  ;;  %v10723_v55 = vld [vmem:[#allocation16_spill] sm:$0xff] }
0x1713   :  { %v8030_v30 = vpop.eup %8029  ;;  %v5309_v20 = vpop.f32.mrf.mxu0 }
0x1714   :  { %v10088_v7 = vpack.c.bf16 %v10082_v59, %v10080_v40  ;;  %v10090_v57 = vmul.f32 %v8030_v30, %v5115_v19  ;;  %7614 = vmatprep.mubr.msk.bf16.mxu0 %vm753_vm1, %v5321_v49 }
0x1715   :  { %v5312_v8 = vpop.f32.mrf.mxu0 }
0x1716   :  { %v10095_v33 = vpack.c.bf16 %v10090_v57, %v10084_v16  ;;  %7688 = vmatprep.subr.msk.bf16.mxu0 %vm170_vm0, %v10088_v7  ;;  %v5396_v52 = vsel %vm170_vm0, %v10088_v7, 0 }
0x1717   :  { %v5314_v47 = vpop.f32.mrf.mxu0 }
0x1718   :  { %7270 = vmatmul.mubr.msk.bf16.vlgmr.msra.gmra.mxu1 %vm170_vm0, %v10095_v33  ;;  %v5393_v63 = vsel %vm170_vm0, %v10095_v33, 0  ;;  %v10725_v47 = vld [vmem:[#allocation11_spill] sm:$0xff] }
0x1719   :  { %v5317_v34 = vpop.f32.mrf.mxu0  ;;  %5529 = vmatpush1.bf16.msra.mxu1 %v4775_v54  ;;  %5440 = vmatprep.mubr.bf16.mxu1 %v10671_v28  ;;  %v5325_v54 = vmul.f32 %v10068_v58, %v10725_v47  ;;  %v4970_v47 = vpack.c.bf16 %v10012_v17, %v10002_v22 }
0x171a   :  { %v5322_v6 = vpack.c.bf16 %v5317_v34, %v5312_v8  ;;  %5530 = vmatprep.subr.bf16.mxu1 %v4774_v5  ;;  %v10726_v5 = vld [vmem:[#allocation15_spill] sm:$0xff] }
0x171b   :  { %v5319_v3 = vpop.f32.mrf.mxu0  ;;  %v5326_v34 = vmul.f32 %v10070_v12, %v10726_v5 }
0x171c   :  { %7615 = vmatmul.mubr.msk.bf16.vlgmr.msra.gmra.mxu0 %vm753_vm1, %v5322_v6 }
0x171d   :  { %7619 = vmatpush3.bf16.xpose.msra.mxu0 %v5396_v52  ;;  %7622 = vmatprep.mubr.msk.bf16.mxu0 %vm170_vm0, %v10095_v33  ;;  %v10727_v52 = vld [vmem:[#allocation14_spill] sm:$0xff] }
0x171e   :  { %7689 = vmatprep.subr.msk.bf16.mxu0 %vm170_vm0, %v10095_v33  ;;  %5531 = vmatpush1.bf16.msra.mxu1 %v4773_v56  ;;  %v5323_v56 = vmul.f32 %v10064_v10, %v10727_v52 }
0x1720   :  { %7271 = vmatmul.mubr.msk.bf16.gmra.mxu1 %vm170_vm0, %v10088_v7 }
0x1721   :  { %5548 = vmatprep.mubr.bf16.mxu1 %v10671_v28 }
0x1725   :  { %7621 = vmatpush3.bf16.xpose.msra.mxu0 %v5393_v63  ;;  %v10728_v63 = vld [vmem:[#allocation13_spill] sm:$0xff] }
0x1726   :  { %5603 = vmatprep.subr.bf16.mxu0 %v10678_v41 }
0x172c   :  { %7623 = vmatmul.mubr.msk.bf16.vlgmr.msra.gmra.mxu0 %vm170_vm0, %v10088_v7 }
0x172d   :  { %5604 = vmatpush1.bf16.msra.mxu0 %v8332_v32  ;;  %5627 = vmatprep.mubr.bf16.mxu0 %v10671_v28 }
0x172e   :  { %5605 = vmatprep.subr.bf16.mxu0 %v8337_v42 }
0x1731   :  { %5606 = vmatpush1.bf16.msra.mxu0 %v8360_v39 }
0x1732   :  { %5607 = vmatprep.subr.bf16.mxu0 %v8365_v31 }
0x1735   :  { %5608 = vmatpush1.bf16.msra.mxu0 %v8375_v35 }
0x1736   :  { %5609 = vmatprep.subr.bf16.mxu0 %v8378_v53 }
0x1739   :  { %5610 = vmatpush1.bf16.msra.mxu0 %v10723_v55 }
0x173a   :  { %5794 = vmatprep.subr.bf16.mxu0 %v10724_v60 }
0x17dc   :  { %v7616_v37 = vpop.f32.mrf.mxu0 }
0x17dd   :  { %v5376_v15 = vadd.f32 1e-06, %v7616_v37  ;;  %v5324_v37 = vmul.f32 %v10066_v27, %v10728_v63 }
0x17de   :  { %v5367_v36 = vpop.f32.mrf.mxu0 }
0x17df   :  { %v5368_v21 = vadd.f32 1e-06, %v5367_v36  ;;  %8031 = vrcp.f32 %v5376_v15 }
0x17e0   :  { %v7617_v9 = vpop.f32.mrf.mxu0 }
0x17e1   :  { %v5379_v61 = vadd.f32 1e-06, %v7617_v9  ;;  %8033 = vrcp.f32 %v5368_v21 }
0x17e2   :  { %v5370_v11 = vpop.f32.mrf.mxu0 }
0x17e3   :  { %8035 = vrcp.f32 %v5379_v61  ;;  %v5371_v19 = vadd.f32 1e-06, %v5370_v11 }
0x17e5   :  { %8037 = vrcp.f32 %v5371_v19 }
0x17ec   :  { %v7624_v49 = vpop.f32.mrf.mxu0  ;;  %v8032_v30 = vpop.eup %8031 }
0x17ed   :  { %v10140_v15 = vmul.f32 %v8032_v30, %v5325_v54  ;;  %v5432_v54 = vpop.f32.mrf.mxu1 }
0x17ee   :  { %v5485_v20 = vpop.f32.mrf.mxu0  ;;  %v8034_v8 = vpop.eup %8033 }
0x17ef   :  { %10729 = vst [vmem:[#allocation9_spill] sm:$0xff] %v10140_v15  ;;  %v10144_v61 = vmul.f32 %v8034_v8, %v5323_v56  ;;  %v4971_v8 = vpack.c.bf16 %v10009_v50, %v10000_v18  ;;  %v5434_v5 = vpop.f32.mrf.mxu1 }
0x17f0   :  { %v8036_v6 = vpop.eup %8035  ;;  %v7625_v3 = vpop.f32.mrf.mxu0 }
0x17f1   :  { %v10142_v36 = vmul.f32 %v8036_v6, %v5326_v34  ;;  %10731 = vst [vmem:[#allocation12_spill] sm:$0xff] %v10144_v61  ;;  %v5501_v19 = vpack.c.bf16 %v7625_v3, %v7624_v49  ;;  %v4972_v49 = vpack.c.bf16 %v10035_v14, %v10022_v43  ;;  %v5436_v34 = vpop.f32.mrf.mxu1 }
0x17f2   :  { %v8038_v21 = vpop.eup %8037  ;;  %v5488_v9 = vpop.f32.mrf.mxu0 }
0x17f3   :  { %10730 = vst [vmem:[#allocation10_spill] sm:$0xff] %v10142_v36  ;;  %v10148_v58 = vpack.c.bf16 %v10142_v36, %v10140_v15  ;;  %v10150_v12 = vmul.f32 %v8038_v21, %v5324_v37  ;;  %v5500_v11 = vpack.c.bf16 %v5488_v9, %v5485_v20  ;;  %v4973_v20 = vpack.c.bf16 %v10032_v46, %v10020_v25  ;;  %v5438_v6 = vpop.f32.mrf.mxu1 }
0x17f5   :  { %10732 = vst [vmem:[#allocation8_spill] sm:$0xff] %v10150_v12  ;;  %v10154_v10 = vpack.c.bf16 %v10150_v12, %v10144_v61  ;;  %7274 = vmatmul.mubr.msk.bf16.vlgmr.msra.gmra.mxu1 %vm753_vm1, %v5500_v11  ;;  %7690 = vmatprep.subr.msk.bf16.mxu1 %vm170_vm0, %v10148_v58  ;;  %v5593_v27 = vsel %vm170_vm0, %v10148_v58, 0  ;;  %v5442_v3 = vpop.f32.mrf.mxu1 }
0x17f6   :  { %7627 = vmatpush3.bf16.xpose.msra.mxu1 %v5593_v27  ;;  %5558 = vmatprep.mubr.bf16.mxu1 %v10671_v28 }
0x17f7   :  { %7276 = vmatmul.mubr.msk.bf16.vlgmr.msra.gmra.mxu0 %vm170_vm0, %v10154_v10  ;;  %7691 = vmatprep.subr.msk.bf16.mxu1 %vm170_vm0, %v10154_v10  ;;  %v5590_v30 = vsel %vm170_vm0, %v10154_v10, 0  ;;  %v5444_v52 = vpop.f32.mrf.mxu1 }
0x17f8   :  { %5795 = vmatpush1.bf16.xpose.msra.mxu0 %v8326_v24  ;;  %5637 = vmatprep.mubr.bf16.mxu0 %v10671_v28 }
0x17f9   :  { %5796 = vmatprep.subr.bf16.mxu0 %v8330_v29  ;;  %v5446_v56 = vpop.f32.mrf.mxu1 }
0x17fb   :  { %v5448_v63 = vpop.f32.mrf.mxu1 }
0x17fd   :  { %7275 = vmatmul.mubr.msk.bf16.gmra.mxu1 %vm753_vm1, %v5501_v19 }
0x17fe   :  { %7630 = vmatprep.mubr.msk.bf16.mxu1 %vm170_vm0, %v10154_v10  ;;  %7629 = vmatpush3.bf16.xpose.msra.mxu1 %v5590_v30 }
0x17ff   :  { %7277 = vmatmul.mubr.msk.bf16.gmra.mxu0 %vm170_vm0, %v10148_v58  ;;  %5725 = vmatprep.subr.bf16.mxu1 %v4973_v20 }
0x1800   :  { %5797 = vmatpush1.bf16.xpose.msra.mxu0 %v8354_v62 }
0x1801   :  { %5798 = vmatprep.subr.bf16.mxu0 %v8358_v26 }
0x1805   :  { %7631 = vmatmul.mubr.msk.bf16.vlgmr.msra.gmra.mxu1 %vm170_vm0, %v10148_v58 }
0x1806   :  { %5726 = vmatpush1.bf16.msra.mxu1 %v4972_v49  ;;  %5745 = vmatprep.mubr.bf16.mxu1 %v10671_v28 }
0x1807   :  { %5727 = vmatprep.subr.bf16.mxu1 %v4971_v8 }
0x1808   :  { %5799 = vmatpush1.bf16.xpose.msra.mxu0 %v10672_v44 }
0x1809   :  { %5800 = vmatprep.subr.bf16.mxu0 %v10674_v23 }
0x180a   :  { %5728 = vmatpush1.bf16.msra.mxu1 %v4970_v47 }
0x1810   :  { %5801 = vmatpush1.bf16.xpose.msra.mxu0 %v10675_v38 }
0x1811   :  { %6003 = vmatprep.subr.bf16.mxu0 %v10678_v41 }
0x18b5   :  { %v5550_v37 = vpop.f32.mrf.mxu1 }
0x18b6   :  { %v5551_v21 = vadd.f32 1e-06, %v5550_v37 }
0x18b7   :  { %v5552_v9 = vpop.f32.mrf.mxu1 }
0x18b8   :  { %v5553_v11 = vadd.f32 1e-06, %v5552_v9  ;;  %8039 = vrcp.f32 %v5551_v21 }
0x18b9   :  { %v5554_v27 = vpop.f32.mrf.mxu1 }
0x18ba   :  { %8041 = vrcp.f32 %v5553_v11  ;;  %v5555_v19 = vadd.f32 1e-06, %v5554_v27  ;;  %v5503_v11 = vmul.f32 %v5434_v5, %v9925_v13 }
0x18bb   :  { %v5556_v30 = vpop.f32.mrf.mxu1 }
0x18bc   :  { %v5557_v20 = vadd.f32 1e-06, %v5556_v30  ;;  %8043 = vrcp.f32 %v5555_v19  ;;  %v5502_v19 = vmul.f32 %v5432_v54, %v9927_v1 }
0x18bd   :  { %v5560_v49 = vpop.f32.mrf.mxu1 }
0x18be   :  { %8045 = vrcp.f32 %v5557_v20  ;;  %v5561_v8 = vadd.f32 1e-06, %v5560_v49 }
0x18bf   :  { %v5562_v47 = vpop.f32.mrf.mxu1 }
0x18c0   :  { %v5563_v12 = vadd.f32 1e-06, %v5562_v47  ;;  %8047 = vrcp.f32 %v5561_v8 }
0x18c1   :  { %v5564_v61 = vpop.f32.mrf.mxu1 }
0x18c2   :  { %8049 = vrcp.f32 %v5563_v12  ;;  %v5565_v36 = vadd.f32 1e-06, %v5564_v61  ;;  %v5505_v61 = vmul.f32 %v5438_v6, %v9934_v4  ;;  %v5507_v4 = vmul.f32 %v5444_v52, %v9945_v45 }
0x18c3   :  { %v5566_v15 = vpop.f32.mrf.mxu1  ;;  %v5508_v52 = vmul.f32 %v5446_v56, %v9957_v48 }
0x18c4   :  { %v5567_v37 = vadd.f32 1e-06, %v5566_v15  ;;  %8051 = vrcp.f32 %v5565_v36  ;;  %v5504_v36 = vmul.f32 %v5436_v34, %v9937_v51  ;;  %v5506_v34 = vmul.f32 %v5442_v3, %v9947_v0 }
0x18c5   :  { %v7632_v9 = vpop.f32.mrf.mxu1  ;;  %v8040_v21 = vpop.eup %8039 }
0x18c6   :  { %8053 = vrcp.f32 %v5567_v37  ;;  %v10197_v49 = vmul.f32 %v8040_v21, %v5502_v19 }
0x18c7   :  { %v8042_v27 = vpop.eup %8041  ;;  %v5682_v30 = vpop.f32.mrf.mxu1 }
0x18c8   :  { %v10195_v20 = vmul.f32 %v8042_v27, %v5503_v11  ;;  %v5509_v11 = vmul.f32 %v5448_v63, %v9954_v2  ;;  %v5629_v2 = vpop.f32.mrf.mxu0 }
0x18c9   :  { %v7633_v8 = vpop.f32.mrf.mxu1  ;;  %v8044_v47 = vpop.eup %8043 }
0x18ca   :  { %5818 = vmatprep.mubr.f32.mxu0 %v10195_v20  ;;  %v10207_v54 = vmul.f32 %v8044_v47, %v5504_v36  ;;  %v5698_v3 = vpack.c.bf16 %v7633_v8, %v7632_v9  ;;  %v5631_v48 = vpop.f32.mrf.mxu0 }
0x18cb   :  { %v8046_v15 = vpop.eup %8045  ;;  %5819 = vmatmul.mubr.f32.vlgmr.msra.gmra.mxu0 %v10197_v49  ;;  %v5685_v13 = vpop.f32.mrf.mxu1 }
0x18cc   :  { %6004 = vmatpush1.bf16.xpose.msra.mxu0 %v8332_v32  ;;  %v5697_v1 = vpack.c.bf16 %v5685_v13, %v5682_v30  ;;  %v10204_v12 = vmul.f32 %v8046_v15, %v5505_v61 }
0x18cd   :  { %6005 = vmatprep.subr.bf16.mxu0 %v8337_v42  ;;  %v8048_v5 = vpop.eup %8047 }
0x18ce   :  { %5823 = vmatprep.mubr.f32.mxu0 %v10204_v12  ;;  %7280 = vmatmul.mubr.msk.bf16.vlgmr.msra.gmra.mxu1 %vm753_vm1, %v5697_v1  ;;  %v10217_v37 = vmul.f32 %v8048_v5, %v5506_v34 }
0x18cf   :  { %v8050_v51 = vpop.eup %8049  ;;  %5824 = vmatmul.mubr.f32.gmra.mxu0 %v10207_v54  ;;  %5755 = vmatprep.mubr.bf16.mxu1 %v10671_v28 }
0x18d0   :  { %v10215_v6 = vmul.f32 %v8050_v51, %v5507_v4 }
0x18d1   :  { %v8052_v21 = vpop.eup %8051 }
0x18d2   :  { %5828 = vmatprep.mubr.f32.mxu0 %v10215_v6  ;;  %v10227_v27 = vmul.f32 %v8052_v21, %v5508_v52 }
0x18d3   :  { %v8054_v45 = vpop.eup %8053  ;;  %5829 = vmatmul.mubr.f32.gmra.mxu0 %v10217_v37 }
0x18d4   :  { %6006 = vmatpush1.bf16.xpose.msra.mxu0 %v8360_v39  ;;  %v10224_v0 = vmul.f32 %v8054_v45, %v5509_v11 }
0x18d5   :  { %6007 = vmatprep.subr.bf16.mxu0 %v8365_v31 }
0x18d6   :  { %5833 = vmatprep.mubr.f32.mxu0 %v10224_v0  ;;  %5863 = vmatprep.subr.mxu1 %v10224_v0 }
0x18d7   :  { %7281 = vmatmul.mubr.msk.bf16.gmra.mxu1 %vm753_vm1, %v5698_v3  ;;  %5834 = vmatmul.mubr.f32.gmra.mxu0 %v10227_v27 }
0x18d8   :  { %5864 = vmatpush1.xpose.msra.mxu1 %v10227_v27  ;;  %5903 = vmatprep.mubr.f32.mxu1 %v10195_v20 }
0x18d9   :  { %5865 = vmatprep.subr.mxu1 %v10215_v6 }
0x18dc   :  { %5866 = vmatpush1.xpose.msra.mxu1 %v10217_v37  ;;  %6008 = vmatpush1.bf16.xpose.msra.mxu0 %v8375_v35 }
0x18dd   :  { %5867 = vmatprep.subr.mxu1 %v10204_v12  ;;  %6009 = vmatprep.subr.bf16.mxu0 %v8378_v53 }
0x18e0   :  { %5868 = vmatpush1.xpose.msra.mxu1 %v10207_v54 }
0x18e1   :  { %5869 = vmatprep.subr.mxu1 %v10195_v20 }
0x18e4   :  { %5870 = vmatpush1.xpose.msra.mxu1 %v10197_v49  ;;  %6010 = vmatpush1.bf16.xpose.msra.mxu0 %v10723_v55  ;;  %v5700_v55 = vmul.f32 %v5631_v48, %v10000_v18 }
0x18e5   :  { %7634 = vmatprep.subr.bf16.mxu1 %v10088_v7  ;;  %6218 = vmatprep.subr.bf16.mxu0 %v10724_v60  ;;  %v5633_v60 = vpop.f32.mrf.mxu0 }
0x18e7   :  { %5904 = vmatmul.mubr.f32.vlgmr.msra.gmra.mxu1 %v10197_v49  ;;  %v5635_v56 = vpop.f32.mrf.mxu0 }
0x18e8   :  { %5908 = vmatprep.mubr.f32.mxu1 %v10204_v12  ;;  %7635 = vmatpush3.bf16.msra.mxu1 %v10088_v7 }
0x18e9   :  { %7636 = vmatprep.subr.bf16.mxu1 %v10095_v33  ;;  %v5639_v63 = vpop.f32.mrf.mxu0 }
0x18eb   :  { %5909 = vmatmul.mubr.f32.gmra.mxu1 %v10207_v54  ;;  %v5641_v7 = vpop.f32.mrf.mxu0 }
0x18ec   :  { %5913 = vmatprep.mubr.f32.mxu1 %v10215_v6  ;;  %7637 = vmatpush3.bf16.msra.mxu1 %v10095_v33 }
0x18ed   :  { %v10256_v9 = vpop.f32.mrf.mxu0 }
0x18ef   :  { %5914 = vmatmul.mubr.f32.gmra.mxu1 %v10217_v37  ;;  %v10258_v19 = vpop.f32.mrf.mxu0 }
0x18f0   :  { %5918 = vmatprep.mubr.f32.mxu1 %v10224_v0 }
0x18f3   :  { %5919 = vmatmul.mubr.f32.gmra.mxu1 %v10227_v27 }
0x198b   :  { %v10260_v30 = vpop.f32.mrf.mxu0 }
0x198d   :  { %v5822_v8 = vpop.f32.mrf.mxu0 }
0x198e   :  { %v5747_v33 = vpop.f32.mrf.mxu1 }
0x198f   :  { %v5748_v47 = vadd.f32 1e-06, %v5747_v33  ;;  %v10262_v61 = vpop.f32.mrf.mxu0 }
0x1990   :  { %v5749_v15 = vpop.f32.mrf.mxu1 }
0x1991   :  { %v5750_v36 = vadd.f32 1e-06, %v5749_v15  ;;  %v5827_v13 = vpop.f32.mrf.mxu0  ;;  %8055 = vrcp.f32 %v5748_v47 }
0x1992   :  { %v5751_v1 = vpop.f32.mrf.mxu1 }
0x1993   :  { %8057 = vrcp.f32 %v5750_v36  ;;  %v5752_v5 = vadd.f32 1e-06, %v5751_v1  ;;  %v10264_v4 = vpop.f32.mrf.mxu0 }
0x1994   :  { %v5753_v51 = vpop.f32.mrf.mxu1 }
0x1995   :  { %v5754_v34 = vadd.f32 1e-06, %v5753_v51  ;;  %v5832_v21 = vpop.f32.mrf.mxu0  ;;  %8059 = vrcp.f32 %v5752_v5  ;;  %v5699_v5 = vmul.f32 %v5629_v2, %v10002_v22 }
0x1997   :  { %8061 = vrcp.f32 %v5754_v34  ;;  %v5757_v11 = vpop.f32.mrf.mxu1  ;;  %v10266_v45 = vpop.f32.mrf.mxu0 }
0x1998   :  { %v5758_v52 = vadd.f32 1e-06, %v5757_v11 }
0x1999   :  { %v5759_v3 = vpop.f32.mrf.mxu1  ;;  %v5837_v8 = vpop.f32.mrf.mxu0 }
0x199a   :  { %v5760_v33 = vadd.f32 1e-06, %v5759_v3  ;;  %8063 = vrcp.f32 %v5758_v52  ;;  %v5702_v52 = vmul.f32 %v5635_v56, %v10009_v50  ;;  %v5701_v8 = vmul.f32 %v5633_v60, %v10012_v17 }
0x199b   :  { %v5761_v15 = vpop.f32.mrf.mxu1  ;;  %v5704_v50 = vmul.f32 %v5641_v7, %v10020_v25  ;;  %v5703_v17 = vmul.f32 %v5639_v63, %v10022_v43  ;;  %v5705_v43 = vmul.f32 %v10256_v9, %v10035_v14  ;;  %v5588_v14 = vpack.c.bf16 %v10224_v0, %v10215_v6 }
0x199c   :  { %8065 = vrcp.f32 %v5760_v33  ;;  %v5762_v47 = vadd.f32 1e-06, %v5761_v15  ;;  %v5706_v15 = vmul.f32 %v10258_v19, %v10032_v46 }
0x199d   :  { %v5763_v36 = vpop.f32.mrf.mxu1 }
0x199e   :  { %v5764_v13 = vadd.f32 1e-06, %v5763_v36  ;;  %v8056_v1 = vpop.eup %8055  ;;  %8067 = vrcp.f32 %v5762_v47 }
0x199f   :  { %v10272_v21 = vmul.f32 %v8056_v1, %v5699_v5 }
0x19a0   :  { %v8058_v51 = vpop.eup %8057  ;;  %8069 = vrcp.f32 %v5764_v13 }
0x19a1   :  { %v10270_v34 = vmul.f32 %v8058_v51, %v5700_v55 }
0x19a2   :  { %v8060_v11 = vpop.eup %8059 }
0x19a3   :  { %6027 = vmatprep.mubr.f32.mxu0 %v10270_v34  ;;  %v10282_v22 = vmul.f32 %v8060_v11, %v5701_v8 }
0x19a4   :  { %v8062_v3 = vpop.eup %8061  ;;  %6028 = vmatmul.mubr.f32.vlgmr.msra.gmra.mxu0 %v10272_v21 }
0x19a5   :  { %6219 = vmatpush1.bf16.msra.mxu0 %v8326_v24  ;;  %v10279_v18 = vmul.f32 %v8062_v3, %v5702_v52 }
0x19a6   :  { %6220 = vmatprep.subr.bf16.mxu0 %v8330_v29 }
0x19a7   :  { %v5905_v55 = vpop.f32.mrf.mxu1  ;;  %6032 = vmatprep.mubr.f32.mxu0 %v10279_v18  ;;  %v8064_v2 = vpop.eup %8063 }
0x19a8   :  { %6033 = vmatmul.mubr.f32.gmra.mxu0 %v10282_v22  ;;  %v10292_v56 = vmul.f32 %v8064_v2, %v5703_v17 }
0x19a9   :  { %v8066_v48 = vpop.eup %8065  ;;  %v5907_v60 = vpop.f32.mrf.mxu1  ;;  %6221 = vmatpush1.bf16.msra.mxu0 %v8354_v62 }
0x19aa   :  { %6222 = vmatprep.subr.bf16.mxu0 %v8358_v26  ;;  %v10290_v24 = vmul.f32 %v8066_v48, %v5704_v50 }
0x19ab   :  { %v5910_v29 = vpop.f32.mrf.mxu1  ;;  %v8068_v33 = vpop.eup %8067 }
0x19ac   :  { %v5924_v25 = vpack.c.bf16 %v5910_v29, %v5905_v55  ;;  %6037 = vmatprep.mubr.f32.mxu0 %v10290_v24  ;;  %v10305_v46 = vmul.f32 %v8068_v33, %v5705_v43  ;;  %v5928_v33 = vmul.f32 %v10264_v4, %v10080_v40 }
0x19ad   :  { %v8070_v7 = vpop.eup %8069  ;;  %v5912_v63 = vpop.f32.mrf.mxu1  ;;  %6038 = vmatmul.mubr.f32.gmra.mxu0 %v10292_v56 }
0x19ae   :  { %7638 = vmatprep.mubr.msk.bf16.mxu1 %vm753_vm1, %v5924_v25  ;;  %6223 = vmatpush1.bf16.msra.mxu0 %v10672_v44  ;;  %v10302_v62 = vmul.f32 %v8070_v7, %v5706_v15  ;;  %v5929_v15 = vmul.f32 %v10266_v45, %v10082_v59  ;;  %v5926_v7 = vmul.f32 %v10260_v30, %v10084_v16 }
0x19af   :  { %v5915_v26 = vpop.f32.mrf.mxu1  ;;  %6224 = vmatprep.subr.bf16.mxu0 %v10674_v23  ;;  %v5927_v63 = vmul.f32 %v10262_v61, %v10090_v57  ;;  %v5587_v16 = vpack.c.bf16 %v10227_v27, %v10217_v37  ;;  %v5586_v57 = vpack.c.bf16 %v10204_v12, %v10195_v20 }
0x19b0   :  { %6042 = vmatprep.mubr.f32.mxu0 %v10302_v62  ;;  %6072 = vmatprep.subr.mxu1 %v10302_v62 }
0x19b1   :  { %v5917_v19 = vpop.f32.mrf.mxu1  ;;  %6043 = vmatmul.mubr.f32.gmra.mxu0 %v10305_v46 }
0x19b2   :  { %6225 = vmatpush1.bf16.msra.mxu0 %v10675_v38  ;;  %6242 = vmatprep.mubr.bf16.mxu0 %v10671_v28 }
0x19b3   :  { %v5920_v44 = vpop.f32.mrf.mxu1  ;;  %6340 = vmatprep.subr.bf16.mxu0 %v5588_v14 }
0x19b4   :  { %v5925_v9 = vpack.c.bf16 %v5920_v44, %v5915_v26 }
0x19b5   :  { %v5922_v23 = vpop.f32.mrf.mxu1 }
0x19b6   :  { %7639 = vmatmul.mubr.msk.bf16.vlgmr.msra.gmra.mxu1 %vm753_vm1, %v5925_v9 }
0x19b7   :  { %6073 = vmatpush1.xpose.msra.mxu1 %v10305_v46  ;;  %6112 = vmatprep.mubr.f32.mxu1 %v10270_v34 }
0x19b8   :  { %6074 = vmatprep.subr.mxu1 %v10290_v24 }
0x19bb   :  { %6075 = vmatpush1.xpose.msra.mxu1 %v10292_v56 }
0x19bc   :  { %6076 = vmatprep.subr.mxu1 %v10279_v18 }
0x19bf   :  { %6077 = vmatpush1.xpose.msra.mxu1 %v10282_v22 }
0x19c0   :  { %6078 = vmatprep.subr.mxu1 %v10270_v34 }
0x19c3   :  { %6079 = vmatpush1.xpose.msra.mxu1 %v10272_v21 }
0x19c4   :  { %7642 = vmatprep.subr.bf16.mxu1 %v10148_v58 }
0x19c6   :  { %6113 = vmatmul.mubr.f32.vlgmr.msra.gmra.mxu1 %v10272_v21 }
0x19c7   :  { %6117 = vmatprep.mubr.f32.mxu1 %v10279_v18  ;;  %7643 = vmatpush3.bf16.msra.mxu1 %v10148_v58 }
0x19c8   :  { %7644 = vmatprep.subr.bf16.mxu1 %v10154_v10 }
0x19ca   :  { %6118 = vmatmul.mubr.f32.gmra.mxu1 %v10282_v22 }
0x19cb   :  { %6122 = vmatprep.mubr.f32.mxu1 %v10290_v24  ;;  %7645 = vmatpush3.bf16.msra.mxu1 %v10154_v10 }
0x19ce   :  { %6123 = vmatmul.mubr.f32.gmra.mxu1 %v10292_v56 }
0x19cf   :  { %6127 = vmatprep.mubr.f32.mxu1 %v10302_v62 }
0x19d2   :  { %6128 = vmatmul.mubr.f32.gmra.mxu1 %v10305_v46 }
0x1a64   :  { %v10334_v38 = vpop.f32.mrf.mxu0 }
0x1a66   :  { %v6031_v47 = vpop.f32.mrf.mxu0 }
0x1a68   :  { %v10336_v36 = vpop.f32.mrf.mxu0 }
0x1a6a   :  { %v6036_v58 = vpop.f32.mrf.mxu0 }
0x1a6d   :  { %v10338_v13 = vpop.f32.mrf.mxu0 }
0x1a6f   :  { %v6041_v1 = vpop.f32.mrf.mxu0 }
0x1a71   :  { %v10340_v51 = vpop.f32.mrf.mxu0 }
0x1a73   :  { %v6046_v5 = vpop.f32.mrf.mxu0 }
0x1a74   :  { %v5585_v5 = vpack.c.bf16 %v10207_v54, %v10197_v49 }
0x1a76   :  { %v7640_v11 = vpop.f32.mrf.mxu1 }
0x1a77   :  { %v5979_v10 = vadd.f32 1e-06, %v7640_v11 }
0x1a78   :  { %v5970_v52 = vpop.f32.mrf.mxu1 }
0x1a79   :  { %v5971_v3 = vadd.f32 1e-06, %v5970_v52  ;;  %8071 = vrcp.f32 %v5979_v10  ;;  %v63_v10 = vld [vmem:[%s10610_s5] sm:$0xff]  ;;  %v65_v52 = vld [vmem:[%s10610_s5 + $0x10] sm:$0xff] }
0x1a7a   :  { %v7641_v8 = vpop.f32.mrf.mxu1 }
0x1a7b   :  { %v5982_v55 = vadd.f32 1e-06, %v7641_v8  ;;  %8073 = vrcp.f32 %v5971_v3 }
0x1a7c   :  { %v5973_v2 = vpop.f32.mrf.mxu1 }
0x1a7d   :  { %8075 = vrcp.f32 %v5982_v55  ;;  %v5974_v50 = vadd.f32 1e-06, %v5973_v2 }
0x1a7f   :  { %8077 = vrcp.f32 %v5974_v50 }
0x1a86   :  { %v6114_v48 = vpop.f32.mrf.mxu1  ;;  %v8072_v17 = vpop.eup %8071 }
0x1a87   :  { %v5991_v19 = vmul.f32 %v8072_v17, %v5928_v33 }
0x1a88   :  { %v6116_v60 = vpop.f32.mrf.mxu1  ;;  %v8074_v29 = vpop.eup %8073 }
0x1a89   :  { %v5989_v40 = vmul.f32 %v8074_v29, %v5926_v7  ;;  %v10734_v29 = vld [vmem:[#allocation9_spill] sm:$0xff] }
0x1a8a   :  { %v8076_v25 = vpop.eup %8075  ;;  %v6119_v43 = vpop.f32.mrf.mxu1  ;;  %v6137_v33 = vmul.f32 %v10338_v13, %v10734_v29 }
0x1a8b   :  { %v6133_v26 = vpack.c.bf16 %v6119_v43, %v6114_v48  ;;  %v5992_v14 = vmul.f32 %v8076_v25, %v5929_v15  ;;  %v10735_v15 = vld [vmem:[#allocation10_spill] sm:$0xff] }
0x1a8c   :  { %v8078_v44 = vpop.eup %8077  ;;  %v6121_v9 = vpop.f32.mrf.mxu1  ;;  %v6138_v25 = vmul.f32 %v10340_v51, %v10735_v15 }
0x1a8d   :  { %7646 = vmatprep.mubr.msk.bf16.mxu1 %vm753_vm1, %v6133_v26  ;;  %v5994_v23 = vpack.c.bf16 %v5992_v14, %v5991_v19  ;;  %v5990_v4 = vmul.f32 %v8078_v44, %v5927_v63  ;;  %v10736_v63 = vld [vmem:[#allocation12_spill] sm:$0xff] }
0x1a8e   :  { %v6124_v47 = vpop.f32.mrf.mxu1  ;;  %v6135_v26 = vmul.f32 %v10334_v38, %v10736_v63  ;;  %v10737_v19 = vld [vmem:[#allocation8_spill] sm:$0xff] }
0x1a8f   :  { %7692 = vmatprep.subr.msk.bf16.mxu1 %vm170_vm0, %v5994_v23  ;;  %v5993_v59 = vpack.c.bf16 %v5990_v4, %v5989_v40  ;;  %v6208_v1 = vsel %vm170_vm0, %v5994_v23, 0  ;;  %v6136_v14 = vmul.f32 %v10336_v36, %v10737_v19 }
0x1a90   :  { %v6126_v45 = vpop.f32.mrf.mxu1 }
0x1a91   :  { %6598 = vxpose.xlu0.c.b16.start [1/2] (short) (narrow) %v5993_v59, 64  ;;  %7286 = vmatmul.mubr.msk.bf16.vlgmr.msra.gmra.mxu0 %vm170_vm0, %v5993_v59  ;;  %v6205_v11 = vsel %vm170_vm0, %v5993_v59, 0 }
0x1a92   :  { %v6129_v30 = vpop.f32.mrf.mxu1  ;;  %6341 = vmatpush1.bf16.msra.mxu0 %v5587_v16  ;;  %6252 = vmatprep.mubr.bf16.mxu0 %v10671_v28  ;;  %v5785_v16 = vpack.c.bf16 %v10302_v62, %v10290_v24 }
0x1a93   :  { %v6134_v61 = vpack.c.bf16 %v6129_v30, %v6124_v47  ;;  %6342 = vmatprep.subr.bf16.mxu0 %v5586_v57  ;;  %v5784_v57 = vpack.c.bf16 %v10305_v46, %v10292_v56  ;;  %v64_v30 = vld [vmem:[%s10610_s5 + $0x8] sm:$0xff] }
0x1a94   :  { %v6131_v58 = vpop.f32.mrf.mxu1 }
0x1a95   :  { %7647 = vmatmul.mubr.msk.bf16.vlgmr.msra.gmra.mxu1 %vm753_vm1, %v6134_v61  ;;  %6599 = vxpose.xlu0.c.b16.end [2/2] (short) (narrow) %v5994_v23, 64  ;;  %v5783_v61 = vpack.c.bf16 %v10279_v18, %v10270_v34  ;;  %v5782_v58 = vpack.c.bf16 %v10282_v22, %v10272_v21 }
0x1a96   :  { %7651 = vmatpush3.bf16.xpose.msra.mxu1 %v6208_v1  ;;  %7654 = vmatprep.mubr.msk.bf16.mxu1 %vm170_vm0, %v5993_v59  ;;  %v66_v1 = vld [vmem:[%s10610_s5 + $0x18] sm:$0xff] }
0x1a97   :  { %7693 = vmatprep.subr.msk.bf16.mxu1 %vm170_vm0, %v5993_v59  ;;  %6343 = vmatpush1.bf16.msra.mxu0 %v5585_v5  ;;  %v68_v5 = vld [vmem:[%s10610_s5 + $0x28] sm:$0xff] }
0x1a99   :  { %7287 = vmatmul.mubr.msk.bf16.gmra.mxu0 %vm170_vm0, %v5994_v23 }
0x1a9a   :  { %6360 = vmatprep.mubr.bf16.mxu0 %v10671_v28 }
0x1a9e   :  { %7653 = vmatpush3.bf16.xpose.msra.mxu1 %v6205_v11  ;;  %v70_v11 = vld [vmem:[%s10610_s5 + $0x38] sm:$0xff] }
0x1a9f   :  { %6415 = vmatprep.subr.bf16.mxu1 %v10678_v41  ;;  %v67_v41 = vld [vmem:[%s10610_s5 + $0x20] sm:$0xff] }
0x1aa5   :  { %7655 = vmatmul.mubr.msk.bf16.vlgmr.msra.gmra.mxu1 %vm170_vm0, %v5994_v23 }
0x1aa6   :  { %6416 = vmatpush1.bf16.msra.mxu1 %v8332_v32  ;;  %6709 = vperm.xlu0 %7701, %v63_v10   ;;  %v69_v32 = vld [vmem:[%s10610_s5 + $0x30] sm:$0xff] }
0x1aa7   :  { %6417 = vmatprep.subr.bf16.mxu1 %v8337_v42  ;;  %6439 = vmatprep.mubr.bf16.mxu1 %v10671_v28  ;;  %v10733_v42 = vld [vmem:[#allocation16_spill] sm:$0xff] }
0x1aaa   :  { %6418 = vmatpush1.bf16.msra.mxu1 %v8360_v39  ;;  %6719 = vperm.xlu0 %7701, %v65_v52  }
0x1aab   :  { %6419 = vmatprep.subr.bf16.mxu1 %v8365_v31 }
0x1aae   :  { %6420 = vmatpush1.bf16.msra.mxu1 %v8375_v35  ;;  %6729 = vperm.xlu0 %7701, %v67_v41  }
0x1aaf   :  { %6421 = vmatprep.subr.bf16.mxu1 %v8378_v53 }
0x1ab2   :  { %6422 = vmatpush1.bf16.msra.mxu1 %v10733_v42  ;;  %6739 = vperm.xlu0 %7701, %v69_v32  }
0x1b51   :  { %v10431_v10 = vpop.f32.mrf.mxu0 }
0x1b53   :  { %v6246_v52 = vpop.f32.mrf.mxu0 }
0x1b55   :  { %v7648_v39 = vpop.f32.mrf.mxu1  ;;  %v6248_v41 = vpop.f32.mrf.mxu0 }
0x1b56   :  { %v6188_v3 = vadd.f32 1e-06, %v7648_v39 }
0x1b57   :  { %v6179_v8 = vpop.f32.mrf.mxu1  ;;  %v6250_v32 = vpop.f32.mrf.mxu0 }
0x1b58   :  { %v6180_v31 = vadd.f32 1e-06, %v6179_v8  ;;  %8079 = vrcp.f32 %v6188_v3 }
0x1b59   :  { %v7649_v55 = vpop.f32.mrf.mxu1  ;;  %v6254_v42 = vpop.f32.mrf.mxu0 }
0x1b5a   :  { %v6191_v2 = vadd.f32 1e-06, %v7649_v55  ;;  %8081 = vrcp.f32 %v6180_v31 }
0x1b5b   :  { %v6182_v50 = vpop.f32.mrf.mxu1  ;;  %v6256_v39 = vpop.f32.mrf.mxu0 }
0x1b5c   :  { %8083 = vrcp.f32 %v6191_v2  ;;  %v6183_v35 = vadd.f32 1e-06, %v6182_v50 }
0x1b5d   :  { %v6258_v3 = vpop.f32.mrf.mxu0 }
0x1b5e   :  { %8085 = vrcp.f32 %v6183_v35 }
0x1b5f   :  { %v6260_v8 = vpop.f32.mrf.mxu0 }
0x1b65   :  { %v7656_v53 = vpop.f32.mrf.mxu1  ;;  %v8080_v48 = vpop.eup %8079 }
0x1b66   :  { %v6200_v44 = vmul.f32 %v8080_v48, %v6137_v33 }
0x1b67   :  { %v6297_v17 = vpop.f32.mrf.mxu1  ;;  %v8082_v60 = vpop.eup %8081 }
0x1b68   :  { %v6198_v59 = vmul.f32 %v8082_v60, %v6135_v26 }
0x1b69   :  { %v8084_v7 = vpop.eup %8083  ;;  %v7657_v43 = vpop.f32.mrf.mxu1 }
0x1b6a   :  { %v6201_v9 = vmul.f32 %v8084_v7, %v6138_v25  ;;  %v6313_v38 = vpack.c.bf16 %v7657_v43, %v7656_v53 }
0x1b6b   :  { %v8086_v23 = vpop.eup %8085  ;;  %v6300_v40 = vpop.f32.mrf.mxu1 }
0x1b6c   :  { %v6312_v4 = vpack.c.bf16 %v6300_v40, %v6297_v17  ;;  %v6203_v47 = vpack.c.bf16 %v6201_v9, %v6200_v44  ;;  %v6199_v45 = vmul.f32 %v8086_v23, %v6136_v14 }
0x1b6e   :  { %7290 = vmatmul.mubr.msk.bf16.vlgmr.msra.gmra.mxu0 %vm753_vm1, %v6312_v4  ;;  %7694 = vmatprep.subr.msk.bf16.mxu0 %vm170_vm0, %v6203_v47  ;;  %v6405_v13 = vsel %vm170_vm0, %v6203_v47, 0  ;;  %v6202_v51 = vpack.c.bf16 %v6199_v45, %v6198_v59  ;;  %v6320_v59 = vmul.f32 %v6258_v3, %v10227_v27  ;;  %v6316_v27 = vmul.f32 %v6248_v41, %v10207_v54  ;;  %v6606_v54 = vpop.trf.xlu0 }
0x1b6f   :  { %7659 = vmatpush3.bf16.xpose.msra.mxu0 %v6405_v13  ;;  %6370 = vmatprep.mubr.bf16.mxu0 %v10671_v28  ;;  %v6317_v13 = vmul.f32 %v6250_v32, %v10204_v12 }
0x1b70   :  { %6900 = vxpose.xlu1.c.b16.start [1/2] (short) (narrow) %v6202_v51, 64  ;;  %7292 = vmatmul.mubr.msk.bf16.vlgmr.msra.gmra.mxu1 %vm170_vm0, %v6202_v51  ;;  %v6402_v36 = vsel %vm170_vm0, %v6202_v51, 0 }
0x1b71   :  { %7695 = vmatprep.subr.msk.bf16.mxu0 %vm170_vm0, %v6202_v51  ;;  %6449 = vmatprep.mubr.bf16.mxu1 %v10671_v28 }
0x1b72   :  { %v6607_v41 = vpop.trf.xlu0 }
0x1b74   :  { %6901 = vxpose.xlu1.c.b16.end [2/2] (short) (narrow) %v6203_v47, 64 }
0x1b76   :  { %7291 = vmatmul.mubr.msk.bf16.gmra.mxu0 %vm753_vm1, %v6313_v38  ;;  %v6321_v38 = vmul.f32 %v6260_v8, %v10224_v0  ;;  %v6314_v0 = vmul.f32 %v10431_v10, %v10197_v49  ;;  %v6608_v49 = vpop.trf.xlu0 }
0x1b77   :  { %7662 = vmatprep.mubr.msk.bf16.mxu0 %vm170_vm0, %v6202_v51  ;;  %7661 = vmatpush3.bf16.xpose.msra.mxu0 %v6402_v36  ;;  %v6319_v51 = vmul.f32 %v6256_v39, %v10215_v6 }
0x1b78   :  { %7293 = vmatmul.mubr.msk.bf16.gmra.mxu1 %vm170_vm0, %v6203_v47  ;;  %6537 = vmatprep.subr.bf16.mxu0 %v5785_v16  ;;  %v6315_v16 = vmul.f32 %v6246_v52, %v10195_v20 }
0x1b79   :  { %6658 = vmatprep.mubr.bf16.mxu1 %v10671_v28 }
0x1b7a   :  { %v6609_v10 = vpop.trf.xlu0 }
0x1b7e   :  { %7663 = vmatmul.mubr.msk.bf16.vlgmr.msra.gmra.mxu0 %vm170_vm0, %v6203_v47 }
0x1b7f   :  { %6538 = vmatpush1.bf16.msra.mxu0 %v5784_v57  ;;  %6557 = vmatprep.mubr.bf16.mxu0 %v10671_v28  ;;  %v6318_v57 = vmul.f32 %v6254_v42, %v10217_v37 }
0x1b80   :  { %6714 = vperm.xlu1 %7702, %v64_v30   ;;  %6539 = vmatprep.subr.bf16.mxu0 %v5783_v61 }
0x1b83   :  { %6540 = vmatpush1.bf16.msra.mxu0 %v5782_v58 }
0x1b84   :  { %6724 = vperm.xlu1 %7702, %v66_v1  }
0x1b88   :  { %6734 = vperm.xlu1 %7702, %v68_v5  }
0x1b8c   :  { %6744 = vperm.xlu1 %7702, %v70_v11  }
0x1c2e   :  { %v6362_v31 = vpop.f32.mrf.mxu0 }
0x1c2f   :  { %v6363_v63 = vadd.f32 1e-06, %v6362_v31 }
0x1c30   :  { %v6364_v55 = vpop.f32.mrf.mxu0  ;;  %v6441_v39 = vpop.f32.mrf.mxu1 }
0x1c31   :  { %v6365_v35 = vadd.f32 1e-06, %v6364_v55 }
0x1c32   :  { %v6366_v2 = vpop.f32.mrf.mxu0  ;;  %v6443_v8 = vpop.f32.mrf.mxu1 }
0x1c33   :  { %8087 = vrcp.f32 %v6365_v35  ;;  %v6367_v25 = vadd.f32 1e-06, %v6366_v2 }
0x1c34   :  { %v6368_v50 = vpop.f32.mrf.mxu0  ;;  %v6445_v55 = vpop.f32.mrf.mxu1 }
0x1c35   :  { %v6369_v48 = vadd.f32 1e-06, %v6368_v50 }
0x1c36   :  { %v6372_v53 = vpop.f32.mrf.mxu0  ;;  %v6447_v2 = vpop.f32.mrf.mxu1 }
0x1c37   :  { %v6373_v29 = vadd.f32 1e-06, %v6372_v53  ;;  %8089 = vrcp.f32 %v6369_v48 }
0x1c38   :  { %v6374_v17 = vpop.f32.mrf.mxu0  ;;  %v6451_v53 = vpop.f32.mrf.mxu1 }
0x1c39   :  { %v6375_v60 = vadd.f32 1e-06, %v6374_v17 }
0x1c3a   :  { %v6376_v33 = vpop.f32.mrf.mxu0 }
0x1c3b   :  { %v6377_v15 = vadd.f32 1e-06, %v6376_v33  ;;  %8091 = vrcp.f32 %v6375_v60  ;;  %v6453_v60 = vpop.f32.mrf.mxu1 }
0x1c3c   :  { %v6378_v7 = vpop.f32.mrf.mxu0 }
0x1c3d   :  { %8093 = vrcp.f32 %v6377_v15  ;;  %v6379_v43 = vadd.f32 1e-06, %v6378_v7 }
0x1c3e   :  { %8095 = vrcp.f32 %v6373_v29  ;;  %v7664_v26 = vpop.f32.mrf.mxu0 }
0x1c3f   :  { %8097 = vrcp.f32 %v6379_v43  ;;  %v6455_v43 = vpop.f32.mrf.mxu1 }
0x1c40   :  { %8099 = vrcp.f32 %v6367_v25  ;;  %v6494_v19 = vpop.f32.mrf.mxu0  ;;  %v8088_v23 = vpop.eup %8087 }
0x1c41   :  { %8101 = vrcp.f32 %v6363_v63  ;;  %v6390_v6 = vmul.f32 %v8088_v23, %v6315_v16  ;;  %v6457_v23 = vpop.f32.mrf.mxu1 }
0x1c42   :  { %v7665_v14 = vpop.f32.mrf.mxu0 }
0x1c43   :  { %v6510_v58 = vpack.c.bf16 %v7665_v14, %v7664_v26 }
0x1c44   :  { %v6497_v44 = vpop.f32.mrf.mxu0  ;;  %v8090_v40 = vpop.eup %8089 }
0x1c45   :  { %v6509_v9 = vpack.c.bf16 %v6497_v44, %v6494_v19  ;;  %v6392_v11 = vmul.f32 %v8090_v40, %v6317_v13 }
0x1c47   :  { %7296 = vmatmul.mubr.msk.bf16.vlgmr.msra.gmra.mxu0 %vm753_vm1, %v6509_v9  ;;  %v6398_v37 = vpack.c.bf16 %v6392_v11, %v6390_v6  ;;  %v6512_v6 = vmul.f32 %v6443_v8, %v10270_v34 }
0x1c48   :  { %6567 = vmatprep.mubr.bf16.mxu0 %v10671_v28  ;;  %v8092_v4 = vpop.eup %8091 }
0x1c49   :  { %v6394_v1 = vmul.f32 %v8092_v4, %v6319_v51 }
0x1c4a   :  { %v8094_v47 = vpop.eup %8093 }
0x1c4b   :  { %v8096_v45 = vpop.eup %8095  ;;  %v6395_v30 = vmul.f32 %v8094_v47, %v6320_v59 }
0x1c4c   :  { %v8098_v36 = vpop.eup %8097  ;;  %v6393_v3 = vmul.f32 %v8096_v45, %v6318_v57  ;;  %v6517_v57 = vmul.f32 %v6455_v43, %v10305_v46  ;;  %v6513_v46 = vmul.f32 %v6445_v55, %v10282_v22  ;;  %v6908_v22 = vpop.trf.xlu1 }
0x1c4d   :  { %v8100_v61 = vpop.eup %8099  ;;  %v6396_v5 = vmul.f32 %v8098_v36, %v6321_v38 }
0x1c4e   :  { %v8102_v31 = vpop.eup %8101  ;;  %v6399_v20 = vpack.c.bf16 %v6395_v30, %v6393_v3  ;;  %v6391_v52 = vmul.f32 %v8100_v61, %v6316_v27  ;;  %v6515_v27 = vmul.f32 %v6451_v53, %v10292_v56 }
0x1c4f   :  { %7297 = vmatmul.mubr.msk.bf16.gmra.mxu0 %vm753_vm1, %v6510_v58  ;;  %v6400_v12 = vpack.c.bf16 %v6396_v5, %v6394_v1  ;;  %v6389_v32 = vmul.f32 %v8102_v31, %v6314_v0  ;;  %v6514_v58 = vmul.f32 %v6447_v2, %v10279_v18  ;;  %v6516_v1 = vmul.f32 %v6453_v60, %v10290_v24 }
0x1c50   :  { %6811 = vmatprep.mubr.bf16.mxu0 %v10671_v28  ;;  %v6518_v5 = vmul.f32 %v6457_v23, %v10302_v62  ;;  %v6511_v62 = vmul.f32 %v6441_v39, %v10272_v21  ;;  %v6909_v60 = vpop.trf.xlu1 }
0x1c51   :  { %6638 = vmatprep.subr.bf16.mxu1 %v6400_v12  ;;  %v6397_v42 = vpack.c.bf16 %v6391_v52, %v6389_v32 }
0x1c52   :  { %6639 = vmatpush1.bf16.msra.mxu1 %v6399_v20 }
0x1c53   :  { %6640 = vmatprep.subr.bf16.mxu1 %v6398_v37 }
0x1c56   :  { %6641 = vmatpush1.bf16.msra.mxu1 %v6397_v42 }
0x1c59   :  { %7298 = vmatmul.mubr.msk.bf16.vlgmr.msra.gmra.mxu1 %vm753_vm1, %v6606_v54 }
0x1c5a   :  { %6668 = vmatprep.mubr.bf16.mxu1 %v10671_v28 }
0x1c61   :  { %7299 = vmatmul.mubr.msk.bf16.gmra.mxu1 %vm753_vm1, %v6607_v41 }
0x1c62   :  { %6678 = vmatprep.mubr.bf16.mxu1 %v10671_v28 }
0x1c69   :  { %7300 = vmatmul.mubr.msk.bf16.gmra.mxu1 %vm753_vm1, %v6608_v49 }
0x1c6a   :  { %6688 = vmatprep.mubr.bf16.mxu1 %v10671_v28 }
0x1c71   :  { %7301 = vmatmul.mubr.msk.bf16.gmra.mxu1 %vm753_vm1, %v6609_v10 }
0x1c72   :  { %6960 = vmatprep.mubr.bf16.mxu1 %v10671_v28 }
0x1d07   :  { %v6559_v50 = vpop.f32.mrf.mxu0 }
0x1d08   :  { %v6560_v40 = vadd.f32 1e-06, %v6559_v50 }
0x1d09   :  { %v6561_v35 = vpop.f32.mrf.mxu0 }
0x1d0a   :  { %v6562_v29 = vadd.f32 1e-06, %v6561_v35 }
0x1d0b   :  { %v6563_v48 = vpop.f32.mrf.mxu0 }
0x1d0c   :  { %8103 = vrcp.f32 %v6562_v29  ;;  %v6564_v14 = vadd.f32 1e-06, %v6563_v48 }
0x1d0d   :  { %v6565_v17 = vpop.f32.mrf.mxu0 }
0x1d0e   :  { %v6566_v15 = vadd.f32 1e-06, %v6565_v17 }
0x1d0f   :  { %v6569_v33 = vpop.f32.mrf.mxu0 }
0x1d10   :  { %v6570_v63 = vadd.f32 1e-06, %v6569_v33  ;;  %8105 = vrcp.f32 %v6566_v15 }
0x1d11   :  { %v6571_v25 = vpop.f32.mrf.mxu0 }
0x1d12   :  { %v6572_v7 = vadd.f32 1e-06, %v6571_v25 }
0x1d13   :  { %v6573_v26 = vpop.f32.mrf.mxu0 }
0x1d14   :  { %v6574_v19 = vadd.f32 1e-06, %v6573_v26  ;;  %8107 = vrcp.f32 %v6572_v7  ;;  %v6910_v7 = vpop.trf.xlu1 }
0x1d15   :  { %v6575_v44 = vpop.f32.mrf.mxu0 }
0x1d16   :  { %8109 = vrcp.f32 %v6574_v19  ;;  %v6576_v9 = vadd.f32 1e-06, %v6575_v44  ;;  %v10495_v19 = vld [vmem:[%s10609_s4 + $0x8] sm:$0xff]   ;;  %v10511_v44 = vld [vmem:[%s10609_s4 + $0x18] sm:$0xff]  }
0x1d17   :  { %8111 = vrcp.f32 %v6570_v63  ;;  %v10486_v63 = vld [vmem:[%s10609_s4] sm:$0xff]  }
0x1d18   :  { %8113 = vrcp.f32 %v6576_v9  ;;  %v6911_v26 = vpop.trf.xlu1 }
0x1d19   :  { %8115 = vrcp.f32 %v6564_v14  ;;  %v10454_v4 = vpop.f32.mrf.mxu1  ;;  %v8104_v13 = vpop.eup %8103  ;;  %v10503_v14 = vld [vmem:[%s10609_s4 + $0x10] sm:$0xff]   ;;  %s8187_s4 = smov [#allocation5]  }
0x1d1a   :  { %8117 = vrcp.f32 %v6560_v40  ;;  %v6587_v24 = vmul.f32 %v8104_v13, %v6512_v6  ;;  %s7152_s15 = sshll.u32 %s8187_s4, 4  ;;  %s7153_s15 = int_to_ptr.vmem [resolvable:$true] %s7152_s15 }
0x1d1b   :  { %v10456_v47 = vpop.f32.mrf.mxu1  ;;  %s8159_s16 = scalar_lea.vmem %s7153_s15, 4096  ;;  %p8164_p6 = scmp.lt.s32.totalorder %s7153_s15, %s7153_s15 }
0x1d1c   :  { %p8160_p5 = scmp.ne.s32.totalorder %s7153_s15, %s8159_s16  ;;  %p8165_p7 = scmp.lt.s32.totalorder %s8159_s16, %s8159_s16 }
0x1d1d   :  { %v10458_v59 = vpop.f32.mrf.mxu1  ;;  %v8106_v51 = vpop.eup %8105 }
0x1d1e   :  { %v6589_v52 = vmul.f32 %v8106_v51, %v6514_v58  ;;  %v6699_v43 = vpack.c.bf16 %v10458_v59, %v10454_v4  ;;  %p8166_p8 = por %p8165_p7, %p8164_p6 }
0x1d1f   :  { %v10460_v45 = vpop.f32.mrf.mxu1 }
0x1d20   :  { %v6595_v49 = vpack.c.bf16 %v6589_v52, %v6587_v24  ;;  %v6700_v25 = vpack.c.bf16 %v10460_v45, %v10456_v47  ;;  %p8167_p9 = pnand %p8166_p8, %p8160_p5 }
0x1d21   :  { %v10462_v38 = vpop.f32.mrf.mxu1  ;;  %v8108_v36 = vpop.eup %8107 }
0x1d22   :  { %v6591_v0 = vmul.f32 %v8108_v36, %v6516_v1 }
0x1d23   :  { %v8110_v16 = vpop.eup %8109  ;;  %v6672_v30 = vpop.f32.mrf.mxu1 }
0x1d24   :  { %v8112_v61 = vpop.eup %8111  ;;  %v6592_v31 = vmul.f32 %v8110_v16, %v6517_v57  ;;  %v10532_v57 = vpop.permute.xlu0 %6709 }
0x1d25   :  { %v8114_v11 = vpop.eup %8113  ;;  %v6674_v3 = vpop.f32.mrf.mxu1  ;;  %v6590_v32 = vmul.f32 %v8112_v61, %v6515_v27  ;;  %v8123_v27 = vld [vmem:[#allocation2] sm:$0xff] }
0x1d26   :  { %v8116_v12 = vpop.eup %8115  ;;  %v6593_v20 = vmul.f32 %v8114_v11, %v6518_v5  ;;  %v6701_v15 = vpack.c.bf16 %v6674_v3, %v10462_v38  ;;  %v10535_v11 = vpop.permute.xlu1 %6714 }
0x1d27   :  { %v6676_v37 = vpop.f32.mrf.mxu1  ;;  %v8118_v18 = vpop.eup %8117  ;;  %v6596_v41 = vpack.c.bf16 %v6592_v31, %v6590_v32  ;;  %v6588_v56 = vmul.f32 %v8116_v12, %v6513_v46 }
0x1d28   :  { %v6597_v42 = vpack.c.bf16 %v6593_v20, %v6591_v0  ;;  %v6586_v34 = vmul.f32 %v8118_v18, %v6511_v62  ;;  %v6702_v33 = vpack.c.bf16 %v6676_v37, %v6672_v30  ;;  %v8124_v20 = vld [vmem:[#allocation2 + $0x8] sm:$0xff] }
0x1d29   :  { %v6680_v54 = vpop.f32.mrf.mxu1 }
0x1d2a   :  { %6940 = vmatprep.subr.bf16.mxu1 %v6597_v42  ;;  %v6594_v2 = vpack.c.bf16 %v6588_v56, %v6586_v34  ;;  %v8125_v42 = vld [vmem:[#allocation2 + $0x10] sm:$0xff] }
0x1d2b   :  { %v6682_v10 = vpop.f32.mrf.mxu1  ;;  %6941 = vmatpush1.bf16.msra.mxu1 %v6596_v41  ;;  %v10540_v41 = vpop.permute.xlu0 %6719 }
0x1d2c   :  { %6942 = vmatprep.subr.bf16.mxu1 %v6595_v49 }
0x1d2d   :  { %v6684_v8 = vpop.f32.mrf.mxu1 }
0x1d2e   :  { %v6703_v29 = vpack.c.bf16 %v6684_v8, %v6680_v54  ;;  %v8126_v8 = vld [vmem:[#allocation2 + $0x18] sm:$0xff] }
0x1d2f   :  { %v6686_v50 = vpop.f32.mrf.mxu1  ;;  %6943 = vmatpush1.bf16.msra.mxu1 %v6594_v2 }
0x1d30   :  { %v6704_v48 = vpack.c.bf16 %v6686_v50, %v6682_v10 }
0x1d31   :  { %v6690_v55 = vpop.f32.mrf.mxu1 }
0x1d32   :  { %7310 = vmatmul.mubr.msk.bf16.vlgmr.msra.gmra.mxu1 %vm753_vm1, %v6908_v22 }
0x1d33   :  { %v6692_v35 = vpop.f32.mrf.mxu1  ;;  %6970 = vmatprep.mubr.bf16.mxu1 %v10671_v28 }
0x1d35   :  { %v6694_v21 = vpop.f32.mrf.mxu1 }
0x1d36   :  { %v6705_v39 = vpack.c.bf16 %v6694_v21, %v6690_v55 }
0x1d37   :  { %v6696_v53 = vpop.f32.mrf.mxu1 }
0x1d38   :  { %v6706_v17 = vpack.c.bf16 %v6696_v53, %v6692_v35  ;;  %v8127_v35 = vld [vmem:[#allocation2 + $0x20] sm:$0xff]  ;;  %v10544_v53 = vpop.permute.xlu1 %6724 }
0x1d3a   :  { %6787 = vmatprep.subr.bf16.mxu0 %v6706_v17  ;;  %7311 = vmatmul.mubr.msk.bf16.gmra.mxu1 %vm753_vm1, %v6909_v60 }
0x1d3b   :  { %6788 = vmatpush1.bf16.msra.mxu0 %v6705_v39  ;;  %6980 = vmatprep.mubr.bf16.mxu1 %v10671_v28 }
0x1d3c   :  { %6789 = vmatprep.subr.bf16.mxu0 %v6704_v48 }
0x1d3f   :  { %6790 = vmatpush1.bf16.msra.mxu0 %v6703_v29 }
0x1d40   :  { %6791 = vmatprep.subr.bf16.mxu0 %v6702_v33  ;;  %v8128_v33 = vld [vmem:[#allocation2 + $0x28] sm:$0xff] }
0x1d42   :  { %7312 = vmatmul.mubr.msk.bf16.gmra.mxu1 %vm753_vm1, %v6910_v7 }
0x1d43   :  { %6792 = vmatpush1.bf16.msra.mxu0 %v6701_v15  ;;  %6990 = vmatprep.mubr.bf16.mxu1 %v10671_v28 }
0x1d44   :  { %6793 = vmatprep.subr.bf16.mxu0 %v6700_v25 }
0x1d47   :  { %6794 = vmatpush1.bf16.msra.mxu0 %v6699_v43 }
0x1d4a   :  { %7306 = vmatmul.mubr.msk.bf16.vlgmr.msra.gmra.mxu0 %vm170_vm0, %v10486_v63  ;;  %7313 = vmatmul.mubr.msk.bf16.gmra.mxu1 %vm753_vm1, %v6911_v26  ;;  %v8129_v26 = vld [vmem:[#allocation2 + $0x30] sm:$0xff] }
0x1d4b   :  { %6821 = vmatprep.mubr.bf16.mxu0 %v10671_v28 }
0x1d52   :  { %7307 = vmatmul.mubr.msk.bf16.gmra.mxu0 %vm170_vm0, %v10495_v19 }
0x1d53   :  { %6831 = vmatprep.mubr.bf16.mxu0 %v10671_v28 }
0x1d5a   :  { %7308 = vmatmul.mubr.msk.bf16.gmra.mxu0 %vm170_vm0, %v10503_v14 }
0x1d5b   :  { %6841 = vmatprep.mubr.bf16.mxu0 %v10671_v28 }
0x1d62   :  { %7309 = vmatmul.mubr.msk.bf16.gmra.mxu0 %vm170_vm0, %v10511_v44 }
0x1d63   :  { %7041 = vmatprep.mubr.bf16.mxu0 %v10671_v28 }
0x1df2   :  { %v10516_v9 = vpop.f32.mrf.mxu1 }
0x1df4   :  { %v10518_v23 = vpop.f32.mrf.mxu1 }
0x1df6   :  { %v10520_v40 = vpop.f32.mrf.mxu1 }
0x1df8   :  { %v10522_v4 = vpop.f32.mrf.mxu1 }
0x1dfa   :  { %v10524_v47 = vpop.f32.mrf.mxu1 }
0x1dfc   :  { %v10526_v59 = vpop.f32.mrf.mxu1 }
0x1dfe   :  { %v10528_v45 = vpop.f32.mrf.mxu1 }
0x1e00   :  { %v10530_v13 = vpop.f32.mrf.mxu1 }
0x1e01   :  { %v7004_v60 = vpack.c.bf16 %v10530_v13, %v10526_v59  ;;  %v7003_v59 = vpack.c.bf16 %v10528_v45, %v10524_v47  ;;  %v10558_v47 = vpop.permute.xlu1 %6734 }
0x1e02   :  { %v6982_v51 = vpop.f32.mrf.mxu1 }
0x1e04   :  { %v6984_v38 = vpop.f32.mrf.mxu1 }
0x1e06   :  { %v6986_v36 = vpop.f32.mrf.mxu1 }
0x1e07   :  { %v7005_v48 = vpack.c.bf16 %v6986_v36, %v6982_v51  ;;  %v10550_v51 = vpop.permute.xlu0 %6729  ;;  %v7002_v36 = vpack.c.bf16 %v10522_v4, %v10518_v23  ;;  %v7001_v23 = vpack.c.bf16 %v10520_v40, %v10516_v9  ;;  %v8134_v40 = vld [vmem:[#allocation2 + $0x58] sm:$0xff] }
0x1e08   :  { %v6988_v16 = vpop.f32.mrf.mxu1 }
0x1e09   :  { %v7006_v10 = vpack.c.bf16 %v6988_v16, %v6984_v38 }
0x1e0a   :  { %v6813_v30 = vpop.f32.mrf.mxu0  ;;  %v6992_v61 = vpop.f32.mrf.mxu1 }
0x1e0b   :  { %v6814_v58 = vadd.f32 %v6813_v30, %v10532_v57 }
0x1e0c   :  { %v6815_v1 = vpop.f32.mrf.mxu0  ;;  %v6994_v5 = vpop.f32.mrf.mxu1 }
0x1e0d   :  { %v6852_v3 = vadd.f32 %v8123_v27, %v6814_v58  ;;  %v6816_v31 = vadd.f32 %v6815_v1, %v10532_v57 }
0x1e0e   :  { %v6817_v12 = vpop.f32.mrf.mxu0  ;;  %v6996_v6 = vpop.f32.mrf.mxu1 }
0x1e0f   :  { %v6868_v0 = vmax.f32 %v6852_v3, 0.0  ;;  %v6853_v52 = vadd.f32 %v8124_v20, %v6816_v31  ;;  %v6818_v46 = vadd.f32 %v6817_v12, %v10535_v11  ;;  %v7007_v56 = vpack.c.bf16 %v6996_v6, %v6992_v61  ;;  %v8130_v61 = vld [vmem:[#allocation2 + $0x38] sm:$0xff]  ;;  %v8131_v3 = vld [vmem:[#allocation2 + $0x40] sm:$0xff]  ;;  %v8132_v6 = vld [vmem:[#allocation2 + $0x48] sm:$0xff] }
0x1e10   :  { %v6819_v37 = vpop.f32.mrf.mxu0  ;;  %v6998_v32 = vpop.f32.mrf.mxu1 }
0x1e11   :  { %6884 = vst [vmem:[#allocation5] sm:$0xff] %v6868_v0  ;;  %v6869_v18 = vmax.f32 %v6853_v52, 0.0  ;;  %v6854_v24 = vadd.f32 %v8125_v42, %v6818_v46  ;;  %v6820_v62 = vadd.f32 %v6819_v37, %v10535_v11  ;;  %v7008_v54 = vpack.c.bf16 %v6998_v32, %v6994_v5  ;;  %v8133_v37 = vld [vmem:[#allocation2 + $0x50] sm:$0xff]  ;;  %v10564_v42 = vpop.permute.xlu0 %6739 }
0x1e12   :  { %v6823_v49 = vpop.f32.mrf.mxu0 }
0x1e13   :  { %6885 = vst [vmem:[#allocation5 + $0x8] sm:$0xff] %v6869_v18  ;;  %v6870_v34 = vmax.f32 %v6854_v24, 0.0  ;;  %v6855_v2 = vadd.f32 %v8126_v8, %v6820_v62  ;;  %v6824_v50 = vadd.f32 %v6823_v49, %v10540_v41  ;;  %7017 = vmatprep.subr.bf16.mxu0 %v7008_v54 }
0x1e14   :  { %v6825_v22 = vpop.f32.mrf.mxu0  ;;  %7018 = vmatpush1.bf16.msra.mxu0 %v7007_v56 }
0x1e15   :  { %6886 = vst [vmem:[#allocation5 + $0x10] sm:$0xff] %v6870_v34  ;;  %v6871_v55 = vmax.f32 %v6855_v2, 0.0  ;;  %v6856_v21 = vadd.f32 %v8127_v35, %v6824_v50  ;;  %v6826_v39 = vadd.f32 %v6825_v22, %v10540_v41  ;;  %7019 = vmatprep.subr.bf16.mxu0 %v7006_v10  ;;  %v8135_v10 = vld [vmem:[#allocation2 + $0x60] sm:$0xff]  ;;  %v10571_v2 = vpop.permute.xlu1 %6744 }
0x1e16   :  { %v6827_v17 = vpop.f32.mrf.mxu0 }
0x1e17   :  { %6887 = vst [vmem:[#allocation5 + $0x18] sm:$0xff] %v6871_v55  ;;  %v6872_v29 = vmax.f32 %v6856_v21, 0.0  ;;  %v6857_v15 = vadd.f32 %v8128_v33, %v6826_v39  ;;  %v6828_v25 = vadd.f32 %v6827_v17, %v10544_v53  ;;  %v8136_v55 = vld [vmem:[#allocation2 + $0x68] sm:$0xff]  ;;  %v8138_v33 = vld [vmem:[#allocation2 + $0x78] sm:$0xff] }
0x1e18   :  { %v6829_v7 = vpop.f32.mrf.mxu0  ;;  %7020 = vmatpush1.bf16.msra.mxu0 %v7005_v48  ;;  %v8137_v48 = vld [vmem:[#allocation2 + $0x70] sm:$0xff] }
0x1e19   :  { %6888 = vst [vmem:[#allocation5 + $0x20] sm:$0xff] %v6872_v29  ;;  %v6873_v43 = vmax.f32 %v6857_v15, 0.0  ;;  %v6858_v38 = vadd.f32 %v8129_v26, %v6828_v25  ;;  %v6830_v16 = vadd.f32 %v6829_v7, %v10544_v53  ;;  %7021 = vmatprep.subr.bf16.mxu0 %v7004_v60 }
0x1e1a   :  { %v6833_v13 = vpop.f32.mrf.mxu0 }
0x1e1b   :  { %6889 = vst [vmem:[#allocation5 + $0x28] sm:$0xff] %v6873_v43  ;;  %v6874_v30 = vmax.f32 %v6858_v38, 0.0  ;;  %v6859_v58 = vadd.f32 %v8130_v61, %v6830_v16  ;;  %v6834_v1 = vadd.f32 %v6833_v13, %v10550_v51  ;;  %v7082_v43 = vld [vmem:[#allocation2 + $0x80] sm:$0xff]  ;;  %v7083_v16 = vld [vmem:[#allocation2 + $0x88] sm:$0xff] }
0x1e1c   :  { %v6835_v5 = vpop.f32.mrf.mxu0  ;;  %7022 = vmatpush1.bf16.msra.mxu0 %v7003_v59 }
0x1e1d   :  { %6890 = vst [vmem:[#allocation5 + $0x30] sm:$0xff] %v6874_v30  ;;  %v6875_v27 = vmax.f32 %v6859_v58, 0.0  ;;  %v6860_v31 = vadd.f32 %v8131_v3, %v6834_v1  ;;  %v6836_v12 = vadd.f32 %v6835_v5, %v10550_v51  ;;  %7023 = vmatprep.subr.bf16.mxu0 %v7002_v36  ;;  %v7084_v36 = vld [vmem:[#allocation2 + $0x90] sm:$0xff]  ;;  %v7086_v3 = vld [vmem:[#allocation2 + $0xa0] sm:$0xff] }
0x1e1e   :  { %v6837_v4 = vpop.f32.mrf.mxu0 }
0x1e1f   :  { %6891 = vst [vmem:[#allocation5 + $0x38] sm:$0xff] %v6875_v27  ;;  %v6876_v45 = vmax.f32 %v6860_v31, 0.0  ;;  %v6861_v0 = vadd.f32 %v8132_v6, %v6836_v12  ;;  %v6838_v20 = vadd.f32 %v6837_v4, %v10558_v47  ;;  %v7087_v4 = vld [vmem:[#allocation2 + $0xa8] sm:$0xff] }
0x1e20   :  { %v6839_v52 = vpop.f32.mrf.mxu0  ;;  %7024 = vmatpush1.bf16.msra.mxu0 %v7001_v23 }
0x1e21   :  { %6892 = vst [vmem:[#allocation5 + $0x40] sm:$0xff] %v6876_v45  ;;  %v6877_v46 = vmax.f32 %v6861_v0, 0.0  ;;  %v6862_v32 = vadd.f32 %v8133_v37, %v6838_v20  ;;  %v6840_v18 = vadd.f32 %v6839_v52, %v10558_v47  ;;  %v7088_v52 = vld [vmem:[#allocation2 + $0xb0] sm:$0xff] }
0x1e22   :  { %v6843_v24 = vpop.f32.mrf.mxu0 }
0x1e23   :  { %6893 = vst [vmem:[#allocation5 + $0x48] sm:$0xff] %v6877_v46  ;;  %v6878_v9 = vmax.f32 %v6862_v32, 0.0  ;;  %v6863_v62 = vadd.f32 %v8134_v40, %v6840_v18  ;;  %v6844_v54 = vadd.f32 %v6843_v24, %v10564_v42  ;;  %7314 = vmatmul.mubr.msk.bf16.vlgmr.msra.gmra.mxu0 %vm170_vm0, %v10486_v63  ;;  %v7089_v18 = vld [vmem:[#allocation2 + $0xb8] sm:$0xff] }
0x1e24   :  { %v6845_v56 = vpop.f32.mrf.mxu0  ;;  %7051 = vmatprep.mubr.bf16.mxu0 %v10671_v28 }
0x1e25   :  { %6894 = vst [vmem:[#allocation5 + $0x50] sm:$0xff] %v6878_v9  ;;  %v6879_v49 = vmax.f32 %v6863_v62, 0.0  ;;  %v6864_v34 = vadd.f32 %v8135_v10, %v6844_v54  ;;  %v6846_v8 = vadd.f32 %v6845_v56, %v10564_v42  ;;  %v7090_v54 = vld [vmem:[#allocation2 + $0xc0] sm:$0xff] }
0x1e26   :  { %v6847_v50 = vpop.f32.mrf.mxu0 }
0x1e27   :  { %6895 = vst [vmem:[#allocation5 + $0x58] sm:$0xff] %v6879_v49  ;;  %v6880_v22 = vmax.f32 %v6864_v34, 0.0  ;;  %v6865_v35 = vadd.f32 %v8136_v55, %v6846_v8  ;;  %v6848_v21 = vadd.f32 %v6847_v50, %v10571_v2  ;;  %v7091_v34 = vld [vmem:[#allocation2 + $0xc8] sm:$0xff] }
0x1e28   :  { %v6849_v39 = vpop.f32.mrf.mxu0 }
0x1e29   :  { %6896 = vst [vmem:[#allocation5 + $0x60] sm:$0xff] %v6880_v22  ;;  %v6881_v63 = vmax.f32 %v6865_v35, 0.0  ;;  %v6866_v17 = vadd.f32 %v8137_v48, %v6848_v21  ;;  %v6850_v60 = vadd.f32 %v6849_v39, %v10571_v2  ;;  %v7092_v35 = vld [vmem:[#allocation2 + $0xd0] sm:$0xff]  ;;  %v7093_v48 = vld [vmem:[#allocation2 + $0xd8] sm:$0xff] }
0x1e2b   :  { %6897 = vst [vmem:[#allocation5 + $0x68] sm:$0xff] %v6881_v63  ;;  %v6882_v29 = vmax.f32 %v6866_v17, 0.0  ;;  %v6867_v15 = vadd.f32 %v8138_v33, %v6850_v60  ;;  %7315 = vmatmul.mubr.msk.bf16.gmra.mxu0 %vm170_vm0, %v10495_v19 }
0x1e2c   :  { %7061 = vmatprep.mubr.bf16.mxu0 %v10671_v28 }
0x1e2d   :  { %6898 = vst [vmem:[#allocation5 + $0x70] sm:$0xff] %v6882_v29  ;;  %v6883_v25 = vmax.f32 %v6867_v15, 0.0  ;;  %v7094_v15 = vld [vmem:[#allocation2 + $0xe0] sm:$0xff] }
0x1e2f   :  { %6899 = vst [vmem:[#allocation5 + $0x78] sm:$0xff] %v6883_v25 }
0x1e33   :  { %7316 = vmatmul.mubr.msk.bf16.gmra.mxu0 %vm170_vm0, %v10503_v14 }
0x1e34   :  { %7071 = vmatprep.mubr.bf16.mxu0 %v10671_v28  ;;  %v7085_v28 = vld [vmem:[#allocation2 + $0x98] sm:$0xff] }
0x1e3b   :  { %7317 = vmatmul.mubr.msk.bf16.gmra.mxu0 %vm170_vm0, %v10511_v44 }
0x1ee3   :  { %v7043_v7 = vpop.f32.mrf.mxu0 }
0x1ee4   :  { %v7044_v26 = vadd.f32 %v7043_v7, %v10532_v57 }
0x1ee5   :  { %v7045_v38 = vpop.f32.mrf.mxu0 }
0x1ee6   :  { %v7098_v19 = vadd.f32 %v7082_v43, %v7044_v26  ;;  %v7046_v59 = vadd.f32 %v7045_v38, %v10532_v57  ;;  %v7095_v26 = vld [vmem:[#allocation2 + $0xe8] sm:$0xff] }
0x1ee7   :  { %v7047_v13 = vpop.f32.mrf.mxu0 }
0x1ee8   :  { %v7114_v30 = vmax.f32 %v7098_v19, 0.0  ;;  %v7099_v61 = vadd.f32 %v7083_v16, %v7046_v59  ;;  %v7048_v14 = vadd.f32 %v7047_v13, %v10535_v11  ;;  %v7096_v13 = vld [vmem:[#allocation2 + $0xf0] sm:$0xff] }
0x1ee9   :  { %v7049_v58 = vpop.f32.mrf.mxu0 }
0x1eea   :  { %7131 = vst [vmem:[#allocation5 + $0x80] sm:$0xff] %v7114_v30  ;;  %v7115_v1 = vmax.f32 %v7099_v61, 0.0  ;;  %v7100_v44 = vadd.f32 %v7084_v36, %v7048_v14  ;;  %v7050_v5 = vadd.f32 %v7049_v58, %v10535_v11  ;;  %v7097_v14 = vld [vmem:[#allocation2 + $0xf8] sm:$0xff] }
0x1eeb   :  { %v7053_v27 = vpop.f32.mrf.mxu0 }
0x1eec   :  { %7132 = vst [vmem:[#allocation5 + $0x88] sm:$0xff] %v7115_v1  ;;  %v7116_v31 = vmax.f32 %v7100_v44, 0.0  ;;  %v7101_v12 = vadd.f32 %v7085_v28, %v7050_v5  ;;  %v7054_v57 = vadd.f32 %v7053_v27, %v10540_v41 }
0x1eed   :  { %v7055_v23 = vpop.f32.mrf.mxu0 }
0x1eee   :  { %7133 = vst [vmem:[#allocation5 + $0x90] sm:$0xff] %v7116_v31  ;;  %v7117_v45 = vmax.f32 %v7101_v12, 0.0  ;;  %v7102_v6 = vadd.f32 %v7086_v3, %v7054_v57  ;;  %v7056_v0 = vadd.f32 %v7055_v23, %v10540_v41 }
0x1eef   :  { %v7057_v20 = vpop.f32.mrf.mxu0 }
0x1ef0   :  { %7134 = vst [vmem:[#allocation5 + $0x98] sm:$0xff] %v7117_v45  ;;  %v7118_v46 = vmax.f32 %v7102_v6, 0.0  ;;  %v7103_v37 = vadd.f32 %v7087_v4, %v7056_v0  ;;  %v7058_v11 = vadd.f32 %v7057_v20, %v10544_v53 }
0x1ef1   :  { %v7059_v32 = vpop.f32.mrf.mxu0 }
0x1ef2   :  { %7135 = vst [vmem:[#allocation5 + $0xa0] sm:$0xff] %v7118_v46  ;;  %v7119_v24 = vmax.f32 %v7103_v37, 0.0  ;;  %v7104_v9 = vadd.f32 %v7088_v52, %v7058_v11  ;;  %v7060_v40 = vadd.f32 %v7059_v32, %v10544_v53 }
0x1ef3   :  { %v7063_v62 = vpop.f32.mrf.mxu0 }
0x1ef4   :  { %7136 = vst [vmem:[#allocation5 + $0xa8] sm:$0xff] %v7119_v24  ;;  %v7120_v56 = vmax.f32 %v7104_v9, 0.0  ;;  %v7105_v49 = vadd.f32 %v7089_v18, %v7060_v40  ;;  %v7064_v41 = vadd.f32 %v7063_v62, %v10550_v51 }
0x1ef5   :  { %v7065_v10 = vpop.f32.mrf.mxu0 }
0x1ef6   :  { %7137 = vst [vmem:[#allocation5 + $0xb0] sm:$0xff] %v7120_v56  ;;  %v7121_v8 = vmax.f32 %v7105_v49, 0.0  ;;  %v7106_v50 = vadd.f32 %v7090_v54, %v7064_v41  ;;  %v7066_v22 = vadd.f32 %v7065_v10, %v10550_v51 }
0x1ef7   :  { %v7067_v55 = vpop.f32.mrf.mxu0 }
0x1ef8   :  { %7138 = vst [vmem:[#allocation5 + $0xb8] sm:$0xff] %v7121_v8  ;;  %v7122_v21 = vmax.f32 %v7106_v50, 0.0  ;;  %v7107_v39 = vadd.f32 %v7091_v34, %v7066_v22  ;;  %v7068_v53 = vadd.f32 %v7067_v55, %v10558_v47 }
0x1ef9   :  { %v7069_v63 = vpop.f32.mrf.mxu0 }
0x1efa   :  { %7139 = vst [vmem:[#allocation5 + $0xc0] sm:$0xff] %v7122_v21  ;;  %v7123_v17 = vmax.f32 %v7107_v39, 0.0  ;;  %v7108_v60 = vadd.f32 %v7092_v35, %v7068_v53  ;;  %v7070_v29 = vadd.f32 %v7069_v63, %v10558_v47 }
0x1efb   :  { %v7073_v33 = vpop.f32.mrf.mxu0 }
0x1efc   :  { %7140 = vst [vmem:[#allocation5 + $0xc8] sm:$0xff] %v7123_v17  ;;  %v7124_v25 = vmax.f32 %v7108_v60, 0.0  ;;  %v7109_v7 = vadd.f32 %v7093_v48, %v7070_v29  ;;  %v7074_v51 = vadd.f32 %v7073_v33, %v10564_v42 }
0x1efd   :  { %v7075_v43 = vpop.f32.mrf.mxu0 }
0x1efe   :  { %7141 = vst [vmem:[#allocation5 + $0xd0] sm:$0xff] %v7124_v25  ;;  %v7125_v38 = vmax.f32 %v7109_v7, 0.0  ;;  %v7110_v16 = vadd.f32 %v7094_v15, %v7074_v51  ;;  %v7076_v19 = vadd.f32 %v7075_v43, %v10564_v42 }
0x1eff   :  { %v7077_v59 = vpop.f32.mrf.mxu0 }
0x1f00   :  { %7142 = vst [vmem:[#allocation5 + $0xd8] sm:$0xff] %v7125_v38  ;;  %v7126_v36 = vmax.f32 %v7110_v16, 0.0  ;;  %v7111_v30 = vadd.f32 %v7095_v26, %v7076_v19  ;;  %v7078_v47 = vadd.f32 %v7077_v59, %v10571_v2 }
0x1f01   :  { %v7079_v61 = vpop.f32.mrf.mxu0 }
0x1f02   :  { %7143 = vst [vmem:[#allocation5 + $0xe0] sm:$0xff] %v7126_v36  ;;  %v7127_v58 = vmax.f32 %v7111_v30, 0.0  ;;  %v7112_v28 = vadd.f32 %v7096_v13, %v7078_v47  ;;  %v7080_v1 = vadd.f32 %v7079_v61, %v10571_v2 }
0x1f04   :  { %7144 = vst [vmem:[#allocation5 + $0xe8] sm:$0xff] %v7127_v58  ;;  %v7128_v44 = vmax.f32 %v7112_v28, 0.0  ;;  %v7113_v5 = vadd.f32 %v7097_v14, %v7080_v1 }
0x1f06   :  { %7145 = vst [vmem:[#allocation5 + $0xf0] sm:$0xff] %v7128_v44  ;;  %v7129_v42 = vmax.f32 %v7113_v5, 0.0 }
0x1f08   :  { %7146 = vst [vmem:[#allocation5 + $0xf8] sm:$0xff] %v7129_v42 }
0x1f09   :  { %8170 = shalt.err (!%p8167_p9)
}
0x1f0a   :  { %7158 = dma.vmem_to_hbm [thread:$0]  %s7153_s15, 4096, %s10611_s6, [#allocation4], %s8184_s24, %s8184_s24, %s8185_s25  }
0x1f0b   :  { %8181 = dma.done.wait [#allocation4], 4096  }
0x1f0c   :  { %8182 = vsyncadd [#allocation4], 4294963200 }
0x1f0d   :  { %7162 = vsyncpa [#allocation3], 1 }
0x1f0e   :  { %7163 = vsyncpa [#allocation4], 1 }

</bundles_post_ra>
